<compile_context>
chip_gen: v5e
topology: v5e:2x2
jax: 0.10.0
libtpu: 0.0.40
codegen_flags: <defaults>
</compile_context>

<pallas_src>
import jax
import jax.numpy as jnp
import numpy as np
from jax.experimental import pallas as pl
from jax.experimental.pallas import tpu as pltpu

# ----------------------------------------------------------------------------
# Small (but structurally faithful) configuration of ST_ECGFormer
# ----------------------------------------------------------------------------
SEQ_LEN = 8        # seq_len
WINDOW = 16        # window_size  (Conv1d in_channels)
NUM_LEADS = 4      # num_leads    (number of cls tokens)
NUM_SECONDS = 4    # num_seconds
NUM_LAYERS = 2     # num_layers
NUM_HEADS = 4      # num_heads
EMBED = 32         # embed_dim
HIDDEN = 64        # hidden_dim (FFN)
HEAD_DIM = EMBED // NUM_HEADS
S_TOT = SEQ_LEN + NUM_LEADS          # total tokens after cls concat
LN_EPS = 1e-5
NEG_INF = -1e30                      # cross-batch mask value


def _layer_norm(x, g, b):
    mu = jnp.mean(x, axis=-1, keepdims=True)
    var = jnp.mean((x - mu) ** 2, axis=-1, keepdims=True)
    return (x - mu) * jax.lax.rsqrt(var + LN_EPS) * g + b


# ----------------------------------------------------------------------------
# Fused kernel: embedding matmul + additive embeddings + NUM_LAYERS post-norm
# encoder layers for ALL batch elements in a single invocation.
#
# Packed inputs (see pack_params / wrapper):
#   x_ref    (B*S_TOT, WINDOW)  bf16   x for body rows, zeros for cls rows
#   add_ref  (B*S_TOT, EMBED)   f32    cls+pos  /  emb_bias+pos+time+spatial
#   we_ref   (WINDOW, EMBED)    bf16   Conv1d(k=1) weight, (in, out)
#   wqkv_ref (L*3*H, EMBED, D)  bf16   per-head q/k/v weights (q pre-scaled)
#   bqkv_ref (L*3*H, 1, D)      f32    per-head q/k/v biases  (q pre-scaled)
#   wo_ref   (L, EMBED, EMBED)  bf16   attention output projection
#   wf1_ref  (L, EMBED, HIDDEN) bf16   FFN layer 1
#   wf2_ref  (L, HIDDEN, EMBED) bf16   FFN layer 2
#   vece_ref (L, 6, EMBED)      f32    rows: [bo, g1, be1, bb2, g2, be2]
#   bf1_ref  (L, 1, HIDDEN)     f32    FFN layer-1 bias
# ----------------------------------------------------------------------------
def fused_kernel(x_ref, add_ref, we_ref, wqkv_ref, bqkv_ref, wo_ref,
                 wf1_ref, wf2_ref, vece_ref, bf1_ref, o_ref):
    f32 = jnp.float32
    bf16 = jnp.bfloat16
    N = x_ref.shape[0]               # B * S_TOT (static at trace time)
    B = N // S_TOT

    # ---- token embedding (Conv1d k=1) over ALL rows; cls rows of x are zero,
    # and every additive term (cls token, pos, embed bias, time, spatial) was
    # pre-folded into add_ref by the wrapper -> a single add.
    h = jnp.dot(x_ref[...], we_ref[...],
                preferred_element_type=f32) + add_ref[...]            # (N, E)

    # ---- block-diagonal batch mask (built once, iota + compares, no int div)
    ri = jax.lax.broadcasted_iota(jnp.int32, (N, N), 0)
    ci = jax.lax.broadcasted_iota(jnp.int32, (N, N), 1)
    same = None
    for b in range(B):                              # unrolled at trace time
        lo, hi = b * S_TOT, (b + 1) * S_TOT
        blk = (ri >= lo) & (ri < hi) & (ci >= lo) & (ci < hi)
        same = blk if same is None else (same | blk)
    neg_mask = jnp.where(same, f32(0.0), f32(NEG_INF))                 # (N, N)
    # stacked over heads once (reused by every layer)
    neg_mask_all = jnp.concatenate([neg_mask] * NUM_HEADS, axis=0)     # (H*N, N)

    for layer in range(NUM_LAYERS):                 # unrolled at trace time
        hb = h.astype(bf16)
        vec = vece_ref[layer]                       # (6, E) f32

        # ---- multi-head self-attention ------------------------------------
        # per-head q/k/v straight from small matmuls (no lane slicing);
        # scores are computed over ALL batch rows at once, cross-batch
        # entries are killed by the block-diagonal mask.
        scores, vals = [], []
        base = layer * 3 * NUM_HEADS
        for hh in range(NUM_HEADS):                 # unrolled, H=4
            qi = base + 0 * NUM_HEADS + hh
            ki = base + 1 * NUM_HEADS + hh
            vi = base + 2 * NUM_HEADS + hh
            qh = jnp.dot(hb, wqkv_ref[qi],
                         preferred_element_type=f32) + bqkv_ref[qi]    # (N, D)
            kh = jnp.dot(hb, wqkv_ref[ki],
                         preferred_element_type=f32) + bqkv_ref[ki]
            vh = jnp.dot(hb, wqkv_ref[vi],
                         preferred_element_type=f32) + bqkv_ref[vi]
            # transpose-free Q @ K^T (contract last dims of both operands)
            s = jax.lax.dot_general(qh, kh, (((1,), (1,)), ((), ())),
                                    preferred_element_type=f32)        # (N, N)
            scores.append(s)
            vals.append(vh)

        # ONE softmax chain for all heads and all batch elements.
        s_all = jnp.concatenate(scores, axis=0) + neg_mask_all         # (H*N, N)
        s_all = s_all - jnp.max(s_all, axis=-1, keepdims=True)
        p_all = jnp.exp(s_all)
        p_all = p_all * pl.reciprocal(
            jnp.sum(p_all, axis=-1, keepdims=True), approx=True)

        heads = []
        for hh in range(NUM_HEADS):
            p_h = p_all[hh * N:(hh + 1) * N]                           # sublane slice
            heads.append(jnp.dot(p_h, vals[hh],
                                 preferred_element_type=f32))          # (N, D)
        attn = jnp.concatenate(heads, axis=-1)                         # (N, E)
        attn = jnp.dot(attn.astype(bf16), wo_ref[layer],
                       preferred_element_type=f32) + vec[0:1]

        # ---- residual + LayerNorm 1 (post-norm) ----------------------------
        h1 = _layer_norm(h + attn, vec[1:2], vec[2:3])

        # ---- FFN -----------------------------------------------------------
        f = jnp.dot(h1.astype(bf16), wf1_ref[layer],
                    preferred_element_type=f32) + bf1_ref[layer]
        f = jnp.maximum(f, 0.0)
        f = jnp.dot(f.astype(bf16), wf2_ref[layer],
                    preferred_element_type=f32) + vec[3:4]

        # ---- residual + LayerNorm 2 ----------------------------------------
        h = _layer_norm(h1 + f, vec[4:5], vec[5:6])

    o_ref[...] = h


def fused_call(x_full, add_full, pk):
    N = x_full.shape[0]
    vmem = pl.BlockSpec(memory_space=pltpu.MemorySpace.VMEM)
    return pl.pallas_call(
        fused_kernel,
        out_shape=jax.ShapeDtypeStruct((N, EMBED), jnp.float32),
        in_specs=[vmem] * 10,
        out_specs=vmem,
    )(x_full, add_full, pk["we_t"], pk["w_qkv"], pk["b_qkv"], pk["w_o"],
      pk["w_f1"], pk["w_f2"], pk["vec_e"], pk["b_f1"])


# ----------------------------------------------------------------------------
# Full forward: tiny gathers / constant folding in the jitted wrapper, one
# kernel dispatch, reshape back to (B, S_TOT, E).
# ----------------------------------------------------------------------------
def st_ecgformer_forward(x, t_indices, s_indices, packed):
    B = x.shape[0]
    # time + spatial embedding gather (tiny), pre-added to (emb_bias + pos)
    ts = packed["time_table"][t_indices] + packed["spatial_table"][s_indices]
    body_add = ts + packed["body_add"]                                  # (B, L, E)
    cls_add = jnp.broadcast_to(packed["cls_pos"], (B, NUM_LEADS, EMBED))
    add_full = jnp.concatenate([cls_add, body_add],
                               axis=1).reshape(B * S_TOT, EMBED)
    # zero-pad x over the cls rows so the embedding matmul runs on the full
    # batch-folded token axis (cls rows contribute 0 from the matmul).
    x_pad = jnp.concatenate(
        [jnp.zeros((B, NUM_LEADS, WINDOW), x.dtype), x], axis=1)
    x_full = x_pad.reshape(B * S_TOT, WINDOW).astype(jnp.bfloat16)
    out = fused_call(x_full, add_full, packed)
    return out.reshape(B, S_TOT, EMBED)


# ----------------------------------------------------------------------------
# Parameter init (PyTorch layout) + one-time packing
# ----------------------------------------------------------------------------
def init_params(key):
    keys = iter(jax.random.split(key, 64))
    nrm = lambda shape, s=1.0: (s * jax.random.normal(next(keys), shape)
                                ).astype(jnp.float32)
    params = {
        "embed_w": nrm((EMBED, WINDOW), 0.05),          # Conv1d(k=1) weight
        "embed_b": nrm((1, EMBED), 0.05),               # Conv1d bias
        "pos": nrm((S_TOT, EMBED)),                     # (1, S, E) squeezed
        "cls": nrm((NUM_LEADS, EMBED)),                 # cls tokens
        "time_table": nrm((NUM_SECONDS + 1, EMBED)),    # time_embed_set
        "spatial_table": nrm((NUM_LEADS + 1, EMBED)),   # sqatial_embed_set
        "layers": [],
    }
    for _ in range(NUM_LAYERS):
        params["layers"].append({
            "wqkv": nrm((3 * EMBED, EMBED), 0.05),
            "bqkv": nrm((1, 3 * EMBED), 0.05),
            "wo": nrm((EMBED, EMBED), 0.05),
            "bo": nrm((1, EMBED), 0.05),
            "g1": jnp.ones((1, EMBED), jnp.float32),
            "be1": jnp.zeros((1, EMBED), jnp.float32),
            "w1": nrm((HIDDEN, EMBED), 0.05),
            "bb1": nrm((1, HIDDEN), 0.05),
            "w2": nrm((EMBED, HIDDEN), 0.05),
            "bb2": nrm((1, EMBED), 0.05),
            "g2": jnp.ones((1, EMBED), jnp.float32),
            "be2": jnp.zeros((1, EMBED), jnp.float32),
        })
    return params


def pack_params(params):
    """One-time layout plumbing.

    * weights -> (in, out), stacked over layers, cast to bf16
    * qkv weights/biases split per head (q pre-scaled by 1/sqrt(HEAD_DIM))
    * per-layer E-wide vectors stacked into a single (L, 6, E) tensor
    * pos / cls / embed-bias pre-folded into two small additive tables
    """
    bf16 = jnp.bfloat16
    scale = float(1.0 / np.sqrt(HEAD_DIM))

    w_qkv_blocks, b_qkv_blocks = [], []
    wo_l, wf1_l, wf2_l, vec_rows, bf1_rows = [], [], [], [], []
    for lp in params["layers"]:
        wqkv, bqkv = lp["wqkv"], lp["bqkv"]
        for idx in range(3):                                  # q, k, v
            w = wqkv[idx * EMBED:(idx + 1) * EMBED]           # (E, E) out x in
            b = bqkv[:, idx * EMBED:(idx + 1) * EMBED]        # (1, E)
            if idx == 0:                                      # fold 1/sqrt(D)
                w = w * scale
                b = b * scale
            for hh in range(NUM_HEADS):
                w_qkv_blocks.append(w[hh * HEAD_DIM:(hh + 1) * HEAD_DIM, :].T)
                b_qkv_blocks.append(b[:, hh * HEAD_DIM:(hh + 1) * HEAD_DIM])
        wo_l.append(lp["wo"].T)
        wf1_l.append(lp["w1"].T)
        wf2_l.append(lp["w2"].T)
        vec_rows.append(jnp.concatenate(
            [lp["bo"], lp["g1"], lp["be1"], lp["bb2"], lp["g2"], lp["be2"]],
            axis=0))                                          # (6, E)
        bf1_rows.append(lp["bb1"])                            # (1, HIDDEN)

    return {
        "we_t": params["embed_w"].T.astype(bf16),             # (WINDOW, E)
        "body_add": params["embed_b"] + params["pos"][NUM_LEADS:],   # (L, E)
        "cls_pos": params["cls"] + params["pos"][:NUM_LEADS],        # (NL, E)
        "time_table": params["time_table"],
        "spatial_table": params["spatial_table"],
        "w_qkv": jnp.stack(w_qkv_blocks).astype(bf16),        # (L*3*H, E, D)
        "b_qkv": jnp.stack(b_qkv_blocks),                     # (L*3*H, 1, D)
        "w_o": jnp.stack(wo_l).astype(bf16),                  # (L, E, E)
        "w_f1": jnp.stack(wf1_l).astype(bf16),                # (L, E, HIDDEN)
        "w_f2": jnp.stack(wf2_l).astype(bf16),                # (L, HIDDEN, E)
        "vec_e": jnp.stack(vec_rows),                         # (L, 6, E)
        "b_f1": jnp.stack(bf1_rows),                          # (L, 1, HIDDEN)
    }


# ----------------------------------------------------------------------------
# Pure-JAX reference (for correctness check)
# ----------------------------------------------------------------------------
def reference_forward(x, t_indices, s_indices, params):
    def ln(v, g, b):
        mu = jnp.mean(v, axis=-1, keepdims=True)
        var = jnp.mean((v - mu) ** 2, axis=-1, keepdims=True)
        return (v - mu) * jax.lax.rsqrt(var + LN_EPS) * g + b

    B = x.shape[0]
    hp = jax.lax.Precision.HIGHEST
    temb = params["time_table"][t_indices]
    semb = params["spatial_table"][s_indices]
    proj = jnp.einsum("blt,et->ble", x, params["embed_w"],
                      precision=hp) + params["embed_b"]
    cls = jnp.broadcast_to(params["cls"], (B, NUM_LEADS, EMBED))
    h = jnp.concatenate([cls, proj], axis=1) + params["pos"]
    h = h.at[:, NUM_LEADS:, :].add(temb + semb)
    for p in params["layers"]:
        qkv = jnp.einsum("bse,fe->bsf", h, p["wqkv"], precision=hp) + p["bqkv"]
        q, k, v = jnp.split(qkv, 3, axis=-1)
        Bc, Sc, _ = h.shape
        q = q.reshape(Bc, Sc, NUM_HEADS, HEAD_DIM)
        k = k.reshape(Bc, Sc, NUM_HEADS, HEAD_DIM)
        v = v.reshape(Bc, Sc, NUM_HEADS, HEAD_DIM)
        s = jnp.einsum("bqhd,bkhd->bhqk", q, k, precision=hp) / jnp.sqrt(
            jnp.float32(HEAD_DIM))
        a = jax.nn.softmax(s, axis=-1)
        o = jnp.einsum("bhqk,bkhd->bqhd", a, v,
                       precision=hp).reshape(Bc, Sc, EMBED)
        o = jnp.einsum("bse,fe->bsf", o, p["wo"], precision=hp) + p["bo"]
        h1 = ln(h + o, p["g1"], p["be1"])
        f = jax.nn.relu(
            jnp.einsum("bse,fe->bsf", h1, p["w1"], precision=hp) + p["bb1"])
        f = jnp.einsum("bsf,ef->bse", f, p["w2"], precision=hp) + p["bb2"]
        h = ln(h1 + f, p["g2"], p["be2"])
    return h


# ----------------------------------------------------------------------------
if __name__ == "__main__":
    key = jax.random.PRNGKey(0)
    k_p, k_x, k_t, k_s = jax.random.split(key, 4)

    params = init_params(k_p)
    packed = pack_params(params)

    B = 2
    x = jax.random.normal(k_x, (B, SEQ_LEN, WINDOW), jnp.float32)
    t_indices = jax.random.randint(k_t, (B, SEQ_LEN), 0, NUM_SECONDS + 1)
    s_indices = jax.random.randint(k_s, (B, SEQ_LEN), 0, NUM_LEADS + 1)

    fwd = jax.jit(st_ecgformer_forward)
    out = jax.block_until_ready(fwd(x, t_indices, s_indices, packed))

    ref = reference_forward(x, t_indices, s_indices, params)
    # Kernel uses bf16 weights / bf16 MXU inputs and an approximate softmax
    # reciprocal while the reference runs at Precision.HIGHEST f32 -> the
    # loose tolerance is intentional (inference-grade numerics).
    np.testing.assert_allclose(np.asarray(out), np.asarray(ref),
                               rtol=3e-2, atol=3e-2)

    print("KERNEL_OK")
</pallas_src>

<mosaic_0001>
module attributes {stable_mosaic.version = 11 : i64} {
  func.func @fused_kernel(%arg0: memref<24x16xbf16, #tpu.memory_space<vmem>>, %arg1: memref<24x32xf32, #tpu.memory_space<vmem>>, %arg2: memref<16x32xbf16, #tpu.memory_space<vmem>>, %arg3: memref<24x32x8xbf16, #tpu.memory_space<vmem>>, %arg4: memref<24x1x8xf32, #tpu.memory_space<vmem>>, %arg5: memref<2x32x32xbf16, #tpu.memory_space<vmem>>, %arg6: memref<2x32x64xbf16, #tpu.memory_space<vmem>>, %arg7: memref<2x64x32xbf16, #tpu.memory_space<vmem>>, %arg8: memref<2x6x32xf32, #tpu.memory_space<vmem>>, %arg9: memref<2x1x64xf32, #tpu.memory_space<vmem>>, %arg10: memref<24x32xf32, #tpu.memory_space<vmem>>) attributes {dimension_semantics = [], scalar_prefetch = 0 : i64, scratch_operands = 0 : i64, tpu.core_type = #tpu.core_type<tc>} {
    %c0 = arith.constant 0 : index
    %c0_0 = arith.constant 0 : index
    %0 = vector.load %arg0[%c0, %c0_0] : memref<24x16xbf16, #tpu.memory_space<vmem>>, vector<24x16xbf16>
    %c0_1 = arith.constant 0 : index
    %c0_2 = arith.constant 0 : index
    %1 = vector.load %arg2[%c0_1, %c0_2] : memref<16x32xbf16, #tpu.memory_space<vmem>>, vector<16x32xbf16>
    %cst = arith.constant dense<0.000000e+00> : vector<24x32xf32>
    %2 = tpu.matmul %0, %1, %cst {dimension_numbers = #tpu.dot_dimension_numbers<[1], [0], [0], [1], [0, 0, 1, 1], [], []>} : vector<24x16xbf16>, vector<16x32xbf16>, vector<24x32xf32> -> vector<24x32xf32>
    %c0_3 = arith.constant 0 : index
    %c0_4 = arith.constant 0 : index
    %3 = vector.load %arg1[%c0_3, %c0_4] : memref<24x32xf32, #tpu.memory_space<vmem>>, vector<24x32xf32>
    %4 = arith.addf %2, %3 : vector<24x32xf32>
    %5 = tpu.iota {dimensions = array<i32: 0>} : vector<24x24xi32>
    %6 = tpu.iota {dimensions = array<i32: 1>} : vector<24x24xi32>
    %c0_i32 = arith.constant 0 : i32
    %7 = vector.broadcast %c0_i32 : i32 to vector<24x24xi32>
    %8 = arith.cmpi sge, %5, %7 : vector<24x24xi32>
    %c12_i32 = arith.constant 12 : i32
    %9 = vector.broadcast %c12_i32 : i32 to vector<24x24xi32>
    %10 = arith.cmpi slt, %5, %9 : vector<24x24xi32>
    %11 = arith.andi %8, %10 : vector<24x24xi1>
    %c0_i32_5 = arith.constant 0 : i32
    %12 = vector.broadcast %c0_i32_5 : i32 to vector<24x24xi32>
    %13 = arith.cmpi sge, %6, %12 : vector<24x24xi32>
    %14 = arith.andi %11, %13 : vector<24x24xi1>
    %c12_i32_6 = arith.constant 12 : i32
    %15 = vector.broadcast %c12_i32_6 : i32 to vector<24x24xi32>
    %16 = arith.cmpi slt, %6, %15 : vector<24x24xi32>
    %17 = arith.andi %14, %16 : vector<24x24xi1>
    %c12_i32_7 = arith.constant 12 : i32
    %18 = vector.broadcast %c12_i32_7 : i32 to vector<24x24xi32>
    %19 = arith.cmpi sge, %5, %18 : vector<24x24xi32>
    %c24_i32 = arith.constant 24 : i32
    %20 = vector.broadcast %c24_i32 : i32 to vector<24x24xi32>
    %21 = arith.cmpi slt, %5, %20 : vector<24x24xi32>
    %22 = arith.andi %19, %21 : vector<24x24xi1>
    %c12_i32_8 = arith.constant 12 : i32
    %23 = vector.broadcast %c12_i32_8 : i32 to vector<24x24xi32>
    %24 = arith.cmpi sge, %6, %23 : vector<24x24xi32>
    %25 = arith.andi %22, %24 : vector<24x24xi1>
    %c24_i32_9 = arith.constant 24 : i32
    %26 = vector.broadcast %c24_i32_9 : i32 to vector<24x24xi32>
    %27 = arith.cmpi slt, %6, %26 : vector<24x24xi32>
    %28 = arith.andi %25, %27 : vector<24x24xi1>
    %29 = arith.ori %17, %28 : vector<24x24xi1>
    %cst_10 = arith.constant 0.000000e+00 : f32
    %cst_11 = arith.constant -1.000000e+30 : f32
    %30 = vector.broadcast %cst_10 : f32 to vector<24x24xf32>
    %31 = vector.broadcast %cst_11 : f32 to vector<24x24xf32>
    %32 = arith.select %29, %30, %31 : vector<24x24xi1>, vector<24x24xf32>
    %33 = tpu.concatenate %32, %32, %32, %32 in 0 : vector<24x24xf32>, vector<24x24xf32>, vector<24x24xf32>, vector<24x24xf32> -> vector<96x24xf32>
    %34 = arith.truncf %4 : vector<24x32xf32> to vector<24x32xbf16>
    %c0_12 = arith.constant 0 : index
    %c0_13 = arith.constant 0 : index
    %c0_14 = arith.constant 0 : index
    %35 = vector.load %arg8[%c0_12, %c0_13, %c0_14] : memref<2x6x32xf32, #tpu.memory_space<vmem>>, vector<1x6x32xf32>
    %36 = vector.shape_cast %35 : vector<1x6x32xf32> to vector<6x32xf32>
    %c0_15 = arith.constant 0 : index
    %c0_16 = arith.constant 0 : index
    %c0_17 = arith.constant 0 : index
    %37 = vector.load %arg3[%c0_15, %c0_16, %c0_17] : memref<24x32x8xbf16, #tpu.memory_space<vmem>>, vector<1x32x8xbf16>
    %38 = vector.shape_cast %37 : vector<1x32x8xbf16> to vector<32x8xbf16>
    %cst_18 = arith.constant dense<0.000000e+00> : vector<24x8xf32>
    %39 = tpu.matmul %34, %38, %cst_18 {dimension_numbers = #tpu.dot_dimension_numbers<[1], [0], [0], [1], [0, 0, 1, 1], [], []>} : vector<24x32xbf16>, vector<32x8xbf16>, vector<24x8xf32> -> vector<24x8xf32>
    %c0_19 = arith.constant 0 : index
    %c0_20 = arith.constant 0 : index
    %c0_21 = arith.constant 0 : index
    %40 = vector.load %arg4[%c0_19, %c0_20, %c0_21] : memref<24x1x8xf32, #tpu.memory_space<vmem>>, vector<1x1x8xf32>
    %41 = vector.shape_cast %40 : vector<1x1x8xf32> to vector<1x8xf32>
    %42 = vector.broadcast %41 : vector<1x8xf32> to vector<24x8xf32>
    %43 = arith.addf %39, %42 : vector<24x8xf32>
    %c4 = arith.constant 4 : index
    %c0_22 = arith.constant 0 : index
    %c0_23 = arith.constant 0 : index
    %44 = vector.load %arg3[%c4, %c0_22, %c0_23] : memref<24x32x8xbf16, #tpu.memory_space<vmem>>, vector<1x32x8xbf16>
    %45 = vector.shape_cast %44 : vector<1x32x8xbf16> to vector<32x8xbf16>
    %cst_24 = arith.constant dense<0.000000e+00> : vector<24x8xf32>
    %46 = tpu.matmul %34, %45, %cst_24 {dimension_numbers = #tpu.dot_dimension_numbers<[1], [0], [0], [1], [0, 0, 1, 1], [], []>} : vector<24x32xbf16>, vector<32x8xbf16>, vector<24x8xf32> -> vector<24x8xf32>
    %c4_25 = arith.constant 4 : index
    %c0_26 = arith.constant 0 : index
    %c0_27 = arith.constant 0 : index
    %47 = vector.load %arg4[%c4_25, %c0_26, %c0_27] : memref<24x1x8xf32, #tpu.memory_space<vmem>>, vector<1x1x8xf32>
    %48 = vector.shape_cast %47 : vector<1x1x8xf32> to vector<1x8xf32>
    %49 = vector.broadcast %48 : vector<1x8xf32> to vector<24x8xf32>
    %50 = arith.addf %46, %49 : vector<24x8xf32>
    %c8 = arith.constant 8 : index
    %c0_28 = arith.constant 0 : index
    %c0_29 = arith.constant 0 : index
    %51 = vector.load %arg3[%c8, %c0_28, %c0_29] : memref<24x32x8xbf16, #tpu.memory_space<vmem>>, vector<1x32x8xbf16>
    %52 = vector.shape_cast %51 : vector<1x32x8xbf16> to vector<32x8xbf16>
    %cst_30 = arith.constant dense<0.000000e+00> : vector<24x8xf32>
    %53 = tpu.matmul %34, %52, %cst_30 {dimension_numbers = #tpu.dot_dimension_numbers<[1], [0], [0], [1], [0, 0, 1, 1], [], []>} : vector<24x32xbf16>, vector<32x8xbf16>, vector<24x8xf32> -> vector<24x8xf32>
    %c8_31 = arith.constant 8 : index
    %c0_32 = arith.constant 0 : index
    %c0_33 = arith.constant 0 : index
    %54 = vector.load %arg4[%c8_31, %c0_32, %c0_33] : memref<24x1x8xf32, #tpu.memory_space<vmem>>, vector<1x1x8xf32>
    %55 = vector.shape_cast %54 : vector<1x1x8xf32> to vector<1x8xf32>
    %56 = vector.broadcast %55 : vector<1x8xf32> to vector<24x8xf32>
    %57 = arith.addf %53, %56 : vector<24x8xf32>
    %cst_34 = arith.constant dense<0.000000e+00> : vector<24x24xf32>
    %58 = tpu.matmul %43, %50, %cst_34 {dimension_numbers = #tpu.dot_dimension_numbers<[1], [1], [0], [0], [0, 0, 1, 0], [], []>} : vector<24x8xf32>, vector<24x8xf32>, vector<24x24xf32> -> vector<24x24xf32>
    %c1 = arith.constant 1 : index
    %c0_35 = arith.constant 0 : index
    %c0_36 = arith.constant 0 : index
    %59 = vector.load %arg3[%c1, %c0_35, %c0_36] : memref<24x32x8xbf16, #tpu.memory_space<vmem>>, vector<1x32x8xbf16>
    %60 = vector.shape_cast %59 : vector<1x32x8xbf16> to vector<32x8xbf16>
    %cst_37 = arith.constant dense<0.000000e+00> : vector<24x8xf32>
    %61 = tpu.matmul %34, %60, %cst_37 {dimension_numbers = #tpu.dot_dimension_numbers<[1], [0], [0], [1], [0, 0, 1, 1], [], []>} : vector<24x32xbf16>, vector<32x8xbf16>, vector<24x8xf32> -> vector<24x8xf32>
    %c1_38 = arith.constant 1 : index
    %c0_39 = arith.constant 0 : index
    %c0_40 = arith.constant 0 : index
    %62 = vector.load %arg4[%c1_38, %c0_39, %c0_40] : memref<24x1x8xf32, #tpu.memory_space<vmem>>, vector<1x1x8xf32>
    %63 = vector.shape_cast %62 : vector<1x1x8xf32> to vector<1x8xf32>
    %64 = vector.broadcast %63 : vector<1x8xf32> to vector<24x8xf32>
    %65 = arith.addf %61, %64 : vector<24x8xf32>
    %c5 = arith.constant 5 : index
    %c0_41 = arith.constant 0 : index
    %c0_42 = arith.constant 0 : index
    %66 = vector.load %arg3[%c5, %c0_41, %c0_42] : memref<24x32x8xbf16, #tpu.memory_space<vmem>>, vector<1x32x8xbf16>
    %67 = vector.shape_cast %66 : vector<1x32x8xbf16> to vector<32x8xbf16>
    %cst_43 = arith.constant dense<0.000000e+00> : vector<24x8xf32>
    %68 = tpu.matmul %34, %67, %cst_43 {dimension_numbers = #tpu.dot_dimension_numbers<[1], [0], [0], [1], [0, 0, 1, 1], [], []>} : vector<24x32xbf16>, vector<32x8xbf16>, vector<24x8xf32> -> vector<24x8xf32>
    %c5_44 = arith.constant 5 : index
    %c0_45 = arith.constant 0 : index
    %c0_46 = arith.constant 0 : index
    %69 = vector.load %arg4[%c5_44, %c0_45, %c0_46] : memref<24x1x8xf32, #tpu.memory_space<vmem>>, vector<1x1x8xf32>
    %70 = vector.shape_cast %69 : vector<1x1x8xf32> to vector<1x8xf32>
    %71 = vector.broadcast %70 : vector<1x8xf32> to vector<24x8xf32>
    %72 = arith.addf %68, %71 : vector<24x8xf32>
    %c9 = arith.constant 9 : index
    %c0_47 = arith.constant 0 : index
    %c0_48 = arith.constant 0 : index
    %73 = vector.load %arg3[%c9, %c0_47, %c0_48] : memref<24x32x8xbf16, #tpu.memory_space<vmem>>, vector<1x32x8xbf16>
    %74 = vector.shape_cast %73 : vector<1x32x8xbf16> to vector<32x8xbf16>
    %cst_49 = arith.constant dense<0.000000e+00> : vector<24x8xf32>
    %75 = tpu.matmul %34, %74, %cst_49 {dimension_numbers = #tpu.dot_dimension_numbers<[1], [0], [0], [1], [0, 0, 1, 1], [], []>} : vector<24x32xbf16>, vector<32x8xbf16>, vector<24x8xf32> -> vector<24x8xf32>
    %c9_50 = arith.constant 9 : index
    %c0_51 = arith.constant 0 : index
    %c0_52 = arith.constant 0 : index
    %76 = vector.load %arg4[%c9_50, %c0_51, %c0_52] : memref<24x1x8xf32, #tpu.memory_space<vmem>>, vector<1x1x8xf32>
    %77 = vector.shape_cast %76 : vector<1x1x8xf32> to vector<1x8xf32>
    %78 = vector.broadcast %77 : vector<1x8xf32> to vector<24x8xf32>
    %79 = arith.addf %75, %78 : vector<24x8xf32>
    %cst_53 = arith.constant dense<0.000000e+00> : vector<24x24xf32>
    %80 = tpu.matmul %65, %72, %cst_53 {dimension_numbers = #tpu.dot_dimension_numbers<[1], [1], [0], [0], [0, 0, 1, 0], [], []>} : vector<24x8xf32>, vector<24x8xf32>, vector<24x24xf32> -> vector<24x24xf32>
    %c2 = arith.constant 2 : index
    %c0_54 = arith.constant 0 : index
    %c0_55 = arith.constant 0 : index
    %81 = vector.load %arg3[%c2, %c0_54, %c0_55] : memref<24x32x8xbf16, #tpu.memory_space<vmem>>, vector<1x32x8xbf16>
    %82 = vector.shape_cast %81 : vector<1x32x8xbf16> to vector<32x8xbf16>
    %cst_56 = arith.constant dense<0.000000e+00> : vector<24x8xf32>
    %83 = tpu.matmul %34, %82, %cst_56 {dimension_numbers = #tpu.dot_dimension_numbers<[1], [0], [0], [1], [0, 0, 1, 1], [], []>} : vector<24x32xbf16>, vector<32x8xbf16>, vector<24x8xf32> -> vector<24x8xf32>
    %c2_57 = arith.constant 2 : index
    %c0_58 = arith.constant 0 : index
    %c0_59 = arith.constant 0 : index
    %84 = vector.load %arg4[%c2_57, %c0_58, %c0_59] : memref<24x1x8xf32, #tpu.memory_space<vmem>>, vector<1x1x8xf32>
    %85 = vector.shape_cast %84 : vector<1x1x8xf32> to vector<1x8xf32>
    %86 = vector.broadcast %85 : vector<1x8xf32> to vector<24x8xf32>
    %87 = arith.addf %83, %86 : vector<24x8xf32>
    %c6 = arith.constant 6 : index
    %c0_60 = arith.constant 0 : index
    %c0_61 = arith.constant 0 : index
    %88 = vector.load %arg3[%c6, %c0_60, %c0_61] : memref<24x32x8xbf16, #tpu.memory_space<vmem>>, vector<1x32x8xbf16>
    %89 = vector.shape_cast %88 : vector<1x32x8xbf16> to vector<32x8xbf16>
    %cst_62 = arith.constant dense<0.000000e+00> : vector<24x8xf32>
    %90 = tpu.matmul %34, %89, %cst_62 {dimension_numbers = #tpu.dot_dimension_numbers<[1], [0], [0], [1], [0, 0, 1, 1], [], []>} : vector<24x32xbf16>, vector<32x8xbf16>, vector<24x8xf32> -> vector<24x8xf32>
    %c6_63 = arith.constant 6 : index
    %c0_64 = arith.constant 0 : index
    %c0_65 = arith.constant 0 : index
    %91 = vector.load %arg4[%c6_63, %c0_64, %c0_65] : memref<24x1x8xf32, #tpu.memory_space<vmem>>, vector<1x1x8xf32>
    %92 = vector.shape_cast %91 : vector<1x1x8xf32> to vector<1x8xf32>
    %93 = vector.broadcast %92 : vector<1x8xf32> to vector<24x8xf32>
    %94 = arith.addf %90, %93 : vector<24x8xf32>
    %c10 = arith.constant 10 : index
    %c0_66 = arith.constant 0 : index
    %c0_67 = arith.constant 0 : index
    %95 = vector.load %arg3[%c10, %c0_66, %c0_67] : memref<24x32x8xbf16, #tpu.memory_space<vmem>>, vector<1x32x8xbf16>
    %96 = vector.shape_cast %95 : vector<1x32x8xbf16> to vector<32x8xbf16>
    %cst_68 = arith.constant dense<0.000000e+00> : vector<24x8xf32>
    %97 = tpu.matmul %34, %96, %cst_68 {dimension_numbers = #tpu.dot_dimension_numbers<[1], [0], [0], [1], [0, 0, 1, 1], [], []>} : vector<24x32xbf16>, vector<32x8xbf16>, vector<24x8xf32> -> vector<24x8xf32>
    %c10_69 = arith.constant 10 : index
    %c0_70 = arith.constant 0 : index
    %c0_71 = arith.constant 0 : index
    %98 = vector.load %arg4[%c10_69, %c0_70, %c0_71] : memref<24x1x8xf32, #tpu.memory_space<vmem>>, vector<1x1x8xf32>
    %99 = vector.shape_cast %98 : vector<1x1x8xf32> to vector<1x8xf32>
    %100 = vector.broadcast %99 : vector<1x8xf32> to vector<24x8xf32>
    %101 = arith.addf %97, %100 : vector<24x8xf32>
    %cst_72 = arith.constant dense<0.000000e+00> : vector<24x24xf32>
    %102 = tpu.matmul %87, %94, %cst_72 {dimension_numbers = #tpu.dot_dimension_numbers<[1], [1], [0], [0], [0, 0, 1, 0], [], []>} : vector<24x8xf32>, vector<24x8xf32>, vector<24x24xf32> -> vector<24x24xf32>
    %c3 = arith.constant 3 : index
    %c0_73 = arith.constant 0 : index
    %c0_74 = arith.constant 0 : index
    %103 = vector.load %arg3[%c3, %c0_73, %c0_74] : memref<24x32x8xbf16, #tpu.memory_space<vmem>>, vector<1x32x8xbf16>
    %104 = vector.shape_cast %103 : vector<1x32x8xbf16> to vector<32x8xbf16>
    %cst_75 = arith.constant dense<0.000000e+00> : vector<24x8xf32>
    %105 = tpu.matmul %34, %104, %cst_75 {dimension_numbers = #tpu.dot_dimension_numbers<[1], [0], [0], [1], [0, 0, 1, 1], [], []>} : vector<24x32xbf16>, vector<32x8xbf16>, vector<24x8xf32> -> vector<24x8xf32>
    %c3_76 = arith.constant 3 : index
    %c0_77 = arith.constant 0 : index
    %c0_78 = arith.constant 0 : index
    %106 = vector.load %arg4[%c3_76, %c0_77, %c0_78] : memref<24x1x8xf32, #tpu.memory_space<vmem>>, vector<1x1x8xf32>
    %107 = vector.shape_cast %106 : vector<1x1x8xf32> to vector<1x8xf32>
    %108 = vector.broadcast %107 : vector<1x8xf32> to vector<24x8xf32>
    %109 = arith.addf %105, %108 : vector<24x8xf32>
    %c7 = arith.constant 7 : index
    %c0_79 = arith.constant 0 : index
    %c0_80 = arith.constant 0 : index
    %110 = vector.load %arg3[%c7, %c0_79, %c0_80] : memref<24x32x8xbf16, #tpu.memory_space<vmem>>, vector<1x32x8xbf16>
    %111 = vector.shape_cast %110 : vector<1x32x8xbf16> to vector<32x8xbf16>
    %cst_81 = arith.constant dense<0.000000e+00> : vector<24x8xf32>
    %112 = tpu.matmul %34, %111, %cst_81 {dimension_numbers = #tpu.dot_dimension_numbers<[1], [0], [0], [1], [0, 0, 1, 1], [], []>} : vector<24x32xbf16>, vector<32x8xbf16>, vector<24x8xf32> -> vector<24x8xf32>
    %c7_82 = arith.constant 7 : index
    %c0_83 = arith.constant 0 : index
    %c0_84 = arith.constant 0 : index
    %113 = vector.load %arg4[%c7_82, %c0_83, %c0_84] : memref<24x1x8xf32, #tpu.memory_space<vmem>>, vector<1x1x8xf32>
    %114 = vector.shape_cast %113 : vector<1x1x8xf32> to vector<1x8xf32>
    %115 = vector.broadcast %114 : vector<1x8xf32> to vector<24x8xf32>
    %116 = arith.addf %112, %115 : vector<24x8xf32>
    %c11 = arith.constant 11 : index
    %c0_85 = arith.constant 0 : index
    %c0_86 = arith.constant 0 : index
    %117 = vector.load %arg3[%c11, %c0_85, %c0_86] : memref<24x32x8xbf16, #tpu.memory_space<vmem>>, vector<1x32x8xbf16>
    %118 = vector.shape_cast %117 : vector<1x32x8xbf16> to vector<32x8xbf16>
    %cst_87 = arith.constant dense<0.000000e+00> : vector<24x8xf32>
    %119 = tpu.matmul %34, %118, %cst_87 {dimension_numbers = #tpu.dot_dimension_numbers<[1], [0], [0], [1], [0, 0, 1, 1], [], []>} : vector<24x32xbf16>, vector<32x8xbf16>, vector<24x8xf32> -> vector<24x8xf32>
    %c11_88 = arith.constant 11 : index
    %c0_89 = arith.constant 0 : index
    %c0_90 = arith.constant 0 : index
    %120 = vector.load %arg4[%c11_88, %c0_89, %c0_90] : memref<24x1x8xf32, #tpu.memory_space<vmem>>, vector<1x1x8xf32>
    %121 = vector.shape_cast %120 : vector<1x1x8xf32> to vector<1x8xf32>
    %122 = vector.broadcast %121 : vector<1x8xf32> to vector<24x8xf32>
    %123 = arith.addf %119, %122 : vector<24x8xf32>
    %cst_91 = arith.constant dense<0.000000e+00> : vector<24x24xf32>
    %124 = tpu.matmul %109, %116, %cst_91 {dimension_numbers = #tpu.dot_dimension_numbers<[1], [1], [0], [0], [0, 0, 1, 0], [], []>} : vector<24x8xf32>, vector<24x8xf32>, vector<24x24xf32> -> vector<24x24xf32>
    %125 = tpu.concatenate %58, %80, %102, %124 in 0 : vector<24x24xf32>, vector<24x24xf32>, vector<24x24xf32>, vector<24x24xf32> -> vector<96x24xf32>
    %126 = arith.addf %125, %33 : vector<96x24xf32>
    %cst_92 = arith.constant dense<0xFF800000> : vector<96xf32>
    %127 = vector.multi_reduction <maximumf>, %126, %cst_92 [1] : vector<96x24xf32> to vector<96xf32>
    %128 = vector.shape_cast %127 : vector<96xf32> to vector<96x1xf32>
    %129 = vector.broadcast %128 : vector<96x1xf32> to vector<96x24xf32>
    %130 = arith.subf %126, %129 : vector<96x24xf32>
    %131 = math.exp %130 : vector<96x24xf32>
    %cst_93 = arith.constant dense<0.000000e+00> : vector<96xf32>
    %132 = vector.multi_reduction <add>, %131, %cst_93 [1] : vector<96x24xf32> to vector<96xf32>
    %133 = vector.shape_cast %132 : vector<96xf32> to vector<96x1xf32>
    %134 = tpu.reciprocal %133 {approx = true} : vector<96x1xf32> -> vector<96x1xf32>
    %135 = vector.broadcast %134 : vector<96x1xf32> to vector<96x24xf32>
    %136 = arith.mulf %131, %135 : vector<96x24xf32>
    %137 = vector.extract_strided_slice %136 {offsets = [0, 0], sizes = [24, 24], strides = [1, 1]} : vector<96x24xf32> to vector<24x24xf32>
    %cst_94 = arith.constant dense<0.000000e+00> : vector<24x8xf32>
    %138 = tpu.matmul %137, %57, %cst_94 {dimension_numbers = #tpu.dot_dimension_numbers<[1], [0], [0], [1], [0, 0, 1, 1], [], []>} : vector<24x24xf32>, vector<24x8xf32>, vector<24x8xf32> -> vector<24x8xf32>
    %139 = vector.extract_strided_slice %136 {offsets = [24, 0], sizes = [24, 24], strides = [1, 1]} : vector<96x24xf32> to vector<24x24xf32>
    %cst_95 = arith.constant dense<0.000000e+00> : vector<24x8xf32>
    %140 = tpu.matmul %139, %79, %cst_95 {dimension_numbers = #tpu.dot_dimension_numbers<[1], [0], [0], [1], [0, 0, 1, 1], [], []>} : vector<24x24xf32>, vector<24x8xf32>, vector<24x8xf32> -> vector<24x8xf32>
    %141 = vector.extract_strided_slice %136 {offsets = [48, 0], sizes = [24, 24], strides = [1, 1]} : vector<96x24xf32> to vector<24x24xf32>
    %cst_96 = arith.constant dense<0.000000e+00> : vector<24x8xf32>
    %142 = tpu.matmul %141, %101, %cst_96 {dimension_numbers = #tpu.dot_dimension_numbers<[1], [0], [0], [1], [0, 0, 1, 1], [], []>} : vector<24x24xf32>, vector<24x8xf32>, vector<24x8xf32> -> vector<24x8xf32>
    %143 = vector.extract_strided_slice %136 {offsets = [72, 0], sizes = [24, 24], strides = [1, 1]} : vector<96x24xf32> to vector<24x24xf32>
    %cst_97 = arith.constant dense<0.000000e+00> : vector<24x8xf32>
    %144 = tpu.matmul %143, %123, %cst_97 {dimension_numbers = #tpu.dot_dimension_numbers<[1], [0], [0], [1], [0, 0, 1, 1], [], []>} : vector<24x24xf32>, vector<24x8xf32>, vector<24x8xf32> -> vector<24x8xf32>
    %145 = tpu.concatenate %138, %140, %142, %144 in 1 : vector<24x8xf32>, vector<24x8xf32>, vector<24x8xf32>, vector<24x8xf32> -> vector<24x32xf32>
    %146 = arith.truncf %145 : vector<24x32xf32> to vector<24x32xbf16>
    %c0_98 = arith.constant 0 : index
    %c0_99 = arith.constant 0 : index
    %c0_100 = arith.constant 0 : index
    %147 = vector.load %arg5[%c0_98, %c0_99, %c0_100] : memref<2x32x32xbf16, #tpu.memory_space<vmem>>, vector<1x32x32xbf16>
    %148 = vector.shape_cast %147 : vector<1x32x32xbf16> to vector<32x32xbf16>
    %cst_101 = arith.constant dense<0.000000e+00> : vector<24x32xf32>
    %149 = tpu.matmul %146, %148, %cst_101 {dimension_numbers = #tpu.dot_dimension_numbers<[1], [0], [0], [1], [0, 0, 1, 1], [], []>} : vector<24x32xbf16>, vector<32x32xbf16>, vector<24x32xf32> -> vector<24x32xf32>
    %150 = vector.extract_strided_slice %36 {offsets = [0, 0], sizes = [1, 32], strides = [1, 1]} : vector<6x32xf32> to vector<1x32xf32>
    %151 = vector.broadcast %150 : vector<1x32xf32> to vector<24x32xf32>
    %152 = arith.addf %149, %151 : vector<24x32xf32>
    %153 = arith.addf %4, %152 : vector<24x32xf32>
    %154 = vector.extract_strided_slice %36 {offsets = [1, 0], sizes = [1, 32], strides = [1, 1]} : vector<6x32xf32> to vector<1x32xf32>
    %155 = vector.extract_strided_slice %36 {offsets = [2, 0], sizes = [1, 32], strides = [1, 1]} : vector<6x32xf32> to vector<1x32xf32>
    %cst_102 = arith.constant dense<0.000000e+00> : vector<24xf32>
    %156 = vector.multi_reduction <add>, %153, %cst_102 [1] : vector<24x32xf32> to vector<24xf32>
    %157 = vector.shape_cast %156 : vector<24xf32> to vector<24x1xf32>
    %cst_103 = arith.constant 3.200000e+01 : f32
    %158 = vector.broadcast %cst_103 : f32 to vector<24x1xf32>
    %159 = arith.divf %157, %158 : vector<24x1xf32>
    %160 = vector.broadcast %159 : vector<24x1xf32> to vector<24x32xf32>
    %161 = arith.subf %153, %160 : vector<24x32xf32>
    %162 = arith.mulf %161, %161 : vector<24x32xf32>
    %cst_104 = arith.constant dense<0.000000e+00> : vector<24xf32>
    %163 = vector.multi_reduction <add>, %162, %cst_104 [1] : vector<24x32xf32> to vector<24xf32>
    %164 = vector.shape_cast %163 : vector<24xf32> to vector<24x1xf32>
    %cst_105 = arith.constant 3.200000e+01 : f32
    %165 = vector.broadcast %cst_105 : f32 to vector<24x1xf32>
    %166 = arith.divf %164, %165 : vector<24x1xf32>
    %167 = vector.broadcast %159 : vector<24x1xf32> to vector<24x32xf32>
    %168 = arith.subf %153, %167 : vector<24x32xf32>
    %cst_106 = arith.constant 9.99999974E-6 : f32
    %169 = vector.broadcast %cst_106 : f32 to vector<24x1xf32>
    %170 = arith.addf %166, %169 : vector<24x1xf32>
    %171 = math.rsqrt %170 : vector<24x1xf32>
    %172 = vector.broadcast %171 : vector<24x1xf32> to vector<24x32xf32>
    %173 = arith.mulf %168, %172 : vector<24x32xf32>
    %174 = vector.broadcast %154 : vector<1x32xf32> to vector<24x32xf32>
    %175 = arith.mulf %173, %174 : vector<24x32xf32>
    %176 = vector.broadcast %155 : vector<1x32xf32> to vector<24x32xf32>
    %177 = arith.addf %175, %176 : vector<24x32xf32>
    %178 = arith.truncf %177 : vector<24x32xf32> to vector<24x32xbf16>
    %c0_107 = arith.constant 0 : index
    %c0_108 = arith.constant 0 : index
    %c0_109 = arith.constant 0 : index
    %179 = vector.load %arg6[%c0_107, %c0_108, %c0_109] : memref<2x32x64xbf16, #tpu.memory_space<vmem>>, vector<1x32x64xbf16>
    %180 = vector.shape_cast %179 : vector<1x32x64xbf16> to vector<32x64xbf16>
    %cst_110 = arith.constant dense<0.000000e+00> : vector<24x64xf32>
    %181 = tpu.matmul %178, %180, %cst_110 {dimension_numbers = #tpu.dot_dimension_numbers<[1], [0], [0], [1], [0, 0, 1, 1], [], []>} : vector<24x32xbf16>, vector<32x64xbf16>, vector<24x64xf32> -> vector<24x64xf32>
    %c0_111 = arith.constant 0 : index
    %c0_112 = arith.constant 0 : index
    %c0_113 = arith.constant 0 : index
    %182 = vector.load %arg9[%c0_111, %c0_112, %c0_113] : memref<2x1x64xf32, #tpu.memory_space<vmem>>, vector<1x1x64xf32>
    %183 = vector.shape_cast %182 : vector<1x1x64xf32> to vector<1x64xf32>
    %184 = vector.broadcast %183 : vector<1x64xf32> to vector<24x64xf32>
    %185 = arith.addf %181, %184 : vector<24x64xf32>
    %cst_114 = arith.constant 0.000000e+00 : f32
    %186 = vector.broadcast %cst_114 : f32 to vector<24x64xf32>
    %187 = arith.maximumf %185, %186 : vector<24x64xf32>
    %188 = arith.truncf %187 : vector<24x64xf32> to vector<24x64xbf16>
    %c0_115 = arith.constant 0 : index
    %c0_116 = arith.constant 0 : index
    %c0_117 = arith.constant 0 : index
    %189 = vector.load %arg7[%c0_115, %c0_116, %c0_117] : memref<2x64x32xbf16, #tpu.memory_space<vmem>>, vector<1x64x32xbf16>
    %190 = vector.shape_cast %189 : vector<1x64x32xbf16> to vector<64x32xbf16>
    %cst_118 = arith.constant dense<0.000000e+00> : vector<24x32xf32>
    %191 = tpu.matmul %188, %190, %cst_118 {dimension_numbers = #tpu.dot_dimension_numbers<[1], [0], [0], [1], [0, 0, 1, 1], [], []>} : vector<24x64xbf16>, vector<64x32xbf16>, vector<24x32xf32> -> vector<24x32xf32>
    %192 = vector.extract_strided_slice %36 {offsets = [3, 0], sizes = [1, 32], strides = [1, 1]} : vector<6x32xf32> to vector<1x32xf32>
    %193 = vector.broadcast %192 : vector<1x32xf32> to vector<24x32xf32>
    %194 = arith.addf %191, %193 : vector<24x32xf32>
    %195 = arith.addf %177, %194 : vector<24x32xf32>
    %196 = vector.extract_strided_slice %36 {offsets = [4, 0], sizes = [1, 32], strides = [1, 1]} : vector<6x32xf32> to vector<1x32xf32>
    %197 = vector.extract_strided_slice %36 {offsets = [5, 0], sizes = [1, 32], strides = [1, 1]} : vector<6x32xf32> to vector<1x32xf32>
    %cst_119 = arith.constant dense<0.000000e+00> : vector<24xf32>
    %198 = vector.multi_reduction <add>, %195, %cst_119 [1] : vector<24x32xf32> to vector<24xf32>
    %199 = vector.shape_cast %198 : vector<24xf32> to vector<24x1xf32>
    %cst_120 = arith.constant 3.200000e+01 : f32
    %200 = vector.broadcast %cst_120 : f32 to vector<24x1xf32>
    %201 = arith.divf %199, %200 : vector<24x1xf32>
    %202 = vector.broadcast %201 : vector<24x1xf32> to vector<24x32xf32>
    %203 = arith.subf %195, %202 : vector<24x32xf32>
    %204 = arith.mulf %203, %203 : vector<24x32xf32>
    %cst_121 = arith.constant dense<0.000000e+00> : vector<24xf32>
    %205 = vector.multi_reduction <add>, %204, %cst_121 [1] : vector<24x32xf32> to vector<24xf32>
    %206 = vector.shape_cast %205 : vector<24xf32> to vector<24x1xf32>
    %cst_122 = arith.constant 3.200000e+01 : f32
    %207 = vector.broadcast %cst_122 : f32 to vector<24x1xf32>
    %208 = arith.divf %206, %207 : vector<24x1xf32>
    %209 = vector.broadcast %201 : vector<24x1xf32> to vector<24x32xf32>
    %210 = arith.subf %195, %209 : vector<24x32xf32>
    %cst_123 = arith.constant 9.99999974E-6 : f32
    %211 = vector.broadcast %cst_123 : f32 to vector<24x1xf32>
    %212 = arith.addf %208, %211 : vector<24x1xf32>
    %213 = math.rsqrt %212 : vector<24x1xf32>
    %214 = vector.broadcast %213 : vector<24x1xf32> to vector<24x32xf32>
    %215 = arith.mulf %210, %214 : vector<24x32xf32>
    %216 = vector.broadcast %196 : vector<1x32xf32> to vector<24x32xf32>
    %217 = arith.mulf %215, %216 : vector<24x32xf32>
    %218 = vector.broadcast %197 : vector<1x32xf32> to vector<24x32xf32>
    %219 = arith.addf %217, %218 : vector<24x32xf32>
    %220 = arith.truncf %219 : vector<24x32xf32> to vector<24x32xbf16>
    %c1_124 = arith.constant 1 : index
    %c0_125 = arith.constant 0 : index
    %c0_126 = arith.constant 0 : index
    %221 = vector.load %arg8[%c1_124, %c0_125, %c0_126] : memref<2x6x32xf32, #tpu.memory_space<vmem>>, vector<1x6x32xf32>
    %222 = vector.shape_cast %221 : vector<1x6x32xf32> to vector<6x32xf32>
    %c12 = arith.constant 12 : index
    %c0_127 = arith.constant 0 : index
    %c0_128 = arith.constant 0 : index
    %223 = vector.load %arg3[%c12, %c0_127, %c0_128] : memref<24x32x8xbf16, #tpu.memory_space<vmem>>, vector<1x32x8xbf16>
    %224 = vector.shape_cast %223 : vector<1x32x8xbf16> to vector<32x8xbf16>
    %cst_129 = arith.constant dense<0.000000e+00> : vector<24x8xf32>
    %225 = tpu.matmul %220, %224, %cst_129 {dimension_numbers = #tpu.dot_dimension_numbers<[1], [0], [0], [1], [0, 0, 1, 1], [], []>} : vector<24x32xbf16>, vector<32x8xbf16>, vector<24x8xf32> -> vector<24x8xf32>
    %c12_130 = arith.constant 12 : index
    %c0_131 = arith.constant 0 : index
    %c0_132 = arith.constant 0 : index
    %226 = vector.load %arg4[%c12_130, %c0_131, %c0_132] : memref<24x1x8xf32, #tpu.memory_space<vmem>>, vector<1x1x8xf32>
    %227 = vector.shape_cast %226 : vector<1x1x8xf32> to vector<1x8xf32>
    %228 = vector.broadcast %227 : vector<1x8xf32> to vector<24x8xf32>
    %229 = arith.addf %225, %228 : vector<24x8xf32>
    %c16 = arith.constant 16 : index
    %c0_133 = arith.constant 0 : index
    %c0_134 = arith.constant 0 : index
    %230 = vector.load %arg3[%c16, %c0_133, %c0_134] : memref<24x32x8xbf16, #tpu.memory_space<vmem>>, vector<1x32x8xbf16>
    %231 = vector.shape_cast %230 : vector<1x32x8xbf16> to vector<32x8xbf16>
    %cst_135 = arith.constant dense<0.000000e+00> : vector<24x8xf32>
    %232 = tpu.matmul %220, %231, %cst_135 {dimension_numbers = #tpu.dot_dimension_numbers<[1], [0], [0], [1], [0, 0, 1, 1], [], []>} : vector<24x32xbf16>, vector<32x8xbf16>, vector<24x8xf32> -> vector<24x8xf32>
    %c16_136 = arith.constant 16 : index
    %c0_137 = arith.constant 0 : index
    %c0_138 = arith.constant 0 : index
    %233 = vector.load %arg4[%c16_136, %c0_137, %c0_138] : memref<24x1x8xf32, #tpu.memory_space<vmem>>, vector<1x1x8xf32>
    %234 = vector.shape_cast %233 : vector<1x1x8xf32> to vector<1x8xf32>
    %235 = vector.broadcast %234 : vector<1x8xf32> to vector<24x8xf32>
    %236 = arith.addf %232, %235 : vector<24x8xf32>
    %c20 = arith.constant 20 : index
    %c0_139 = arith.constant 0 : index
    %c0_140 = arith.constant 0 : index
    %237 = vector.load %arg3[%c20, %c0_139, %c0_140] : memref<24x32x8xbf16, #tpu.memory_space<vmem>>, vector<1x32x8xbf16>
    %238 = vector.shape_cast %237 : vector<1x32x8xbf16> to vector<32x8xbf16>
    %cst_141 = arith.constant dense<0.000000e+00> : vector<24x8xf32>
    %239 = tpu.matmul %220, %238, %cst_141 {dimension_numbers = #tpu.dot_dimension_numbers<[1], [0], [0], [1], [0, 0, 1, 1], [], []>} : vector<24x32xbf16>, vector<32x8xbf16>, vector<24x8xf32> -> vector<24x8xf32>
    %c20_142 = arith.constant 20 : index
    %c0_143 = arith.constant 0 : index
    %c0_144 = arith.constant 0 : index
    %240 = vector.load %arg4[%c20_142, %c0_143, %c0_144] : memref<24x1x8xf32, #tpu.memory_space<vmem>>, vector<1x1x8xf32>
    %241 = vector.shape_cast %240 : vector<1x1x8xf32> to vector<1x8xf32>
    %242 = vector.broadcast %241 : vector<1x8xf32> to vector<24x8xf32>
    %243 = arith.addf %239, %242 : vector<24x8xf32>
    %cst_145 = arith.constant dense<0.000000e+00> : vector<24x24xf32>
    %244 = tpu.matmul %229, %236, %cst_145 {dimension_numbers = #tpu.dot_dimension_numbers<[1], [1], [0], [0], [0, 0, 1, 0], [], []>} : vector<24x8xf32>, vector<24x8xf32>, vector<24x24xf32> -> vector<24x24xf32>
    %c13 = arith.constant 13 : index
    %c0_146 = arith.constant 0 : index
    %c0_147 = arith.constant 0 : index
    %245 = vector.load %arg3[%c13, %c0_146, %c0_147] : memref<24x32x8xbf16, #tpu.memory_space<vmem>>, vector<1x32x8xbf16>
    %246 = vector.shape_cast %245 : vector<1x32x8xbf16> to vector<32x8xbf16>
    %cst_148 = arith.constant dense<0.000000e+00> : vector<24x8xf32>
    %247 = tpu.matmul %220, %246, %cst_148 {dimension_numbers = #tpu.dot_dimension_numbers<[1], [0], [0], [1], [0, 0, 1, 1], [], []>} : vector<24x32xbf16>, vector<32x8xbf16>, vector<24x8xf32> -> vector<24x8xf32>
    %c13_149 = arith.constant 13 : index
    %c0_150 = arith.constant 0 : index
    %c0_151 = arith.constant 0 : index
    %248 = vector.load %arg4[%c13_149, %c0_150, %c0_151] : memref<24x1x8xf32, #tpu.memory_space<vmem>>, vector<1x1x8xf32>
    %249 = vector.shape_cast %248 : vector<1x1x8xf32> to vector<1x8xf32>
    %250 = vector.broadcast %249 : vector<1x8xf32> to vector<24x8xf32>
    %251 = arith.addf %247, %250 : vector<24x8xf32>
    %c17 = arith.constant 17 : index
    %c0_152 = arith.constant 0 : index
    %c0_153 = arith.constant 0 : index
    %252 = vector.load %arg3[%c17, %c0_152, %c0_153] : memref<24x32x8xbf16, #tpu.memory_space<vmem>>, vector<1x32x8xbf16>
    %253 = vector.shape_cast %252 : vector<1x32x8xbf16> to vector<32x8xbf16>
    %cst_154 = arith.constant dense<0.000000e+00> : vector<24x8xf32>
    %254 = tpu.matmul %220, %253, %cst_154 {dimension_numbers = #tpu.dot_dimension_numbers<[1], [0], [0], [1], [0, 0, 1, 1], [], []>} : vector<24x32xbf16>, vector<32x8xbf16>, vector<24x8xf32> -> vector<24x8xf32>
    %c17_155 = arith.constant 17 : index
    %c0_156 = arith.constant 0 : index
    %c0_157 = arith.constant 0 : index
    %255 = vector.load %arg4[%c17_155, %c0_156, %c0_157] : memref<24x1x8xf32, #tpu.memory_space<vmem>>, vector<1x1x8xf32>
    %256 = vector.shape_cast %255 : vector<1x1x8xf32> to vector<1x8xf32>
    %257 = vector.broadcast %256 : vector<1x8xf32> to vector<24x8xf32>
    %258 = arith.addf %254, %257 : vector<24x8xf32>
    %c21 = arith.constant 21 : index
    %c0_158 = arith.constant 0 : index
    %c0_159 = arith.constant 0 : index
    %259 = vector.load %arg3[%c21, %c0_158, %c0_159] : memref<24x32x8xbf16, #tpu.memory_space<vmem>>, vector<1x32x8xbf16>
    %260 = vector.shape_cast %259 : vector<1x32x8xbf16> to vector<32x8xbf16>
    %cst_160 = arith.constant dense<0.000000e+00> : vector<24x8xf32>
    %261 = tpu.matmul %220, %260, %cst_160 {dimension_numbers = #tpu.dot_dimension_numbers<[1], [0], [0], [1], [0, 0, 1, 1], [], []>} : vector<24x32xbf16>, vector<32x8xbf16>, vector<24x8xf32> -> vector<24x8xf32>
    %c21_161 = arith.constant 21 : index
    %c0_162 = arith.constant 0 : index
    %c0_163 = arith.constant 0 : index
    %262 = vector.load %arg4[%c21_161, %c0_162, %c0_163] : memref<24x1x8xf32, #tpu.memory_space<vmem>>, vector<1x1x8xf32>
    %263 = vector.shape_cast %262 : vector<1x1x8xf32> to vector<1x8xf32>
    %264 = vector.broadcast %263 : vector<1x8xf32> to vector<24x8xf32>
    %265 = arith.addf %261, %264 : vector<24x8xf32>
    %cst_164 = arith.constant dense<0.000000e+00> : vector<24x24xf32>
    %266 = tpu.matmul %251, %258, %cst_164 {dimension_numbers = #tpu.dot_dimension_numbers<[1], [1], [0], [0], [0, 0, 1, 0], [], []>} : vector<24x8xf32>, vector<24x8xf32>, vector<24x24xf32> -> vector<24x24xf32>
    %c14 = arith.constant 14 : index
    %c0_165 = arith.constant 0 : index
    %c0_166 = arith.constant 0 : index
    %267 = vector.load %arg3[%c14, %c0_165, %c0_166] : memref<24x32x8xbf16, #tpu.memory_space<vmem>>, vector<1x32x8xbf16>
    %268 = vector.shape_cast %267 : vector<1x32x8xbf16> to vector<32x8xbf16>
    %cst_167 = arith.constant dense<0.000000e+00> : vector<24x8xf32>
    %269 = tpu.matmul %220, %268, %cst_167 {dimension_numbers = #tpu.dot_dimension_numbers<[1], [0], [0], [1], [0, 0, 1, 1], [], []>} : vector<24x32xbf16>, vector<32x8xbf16>, vector<24x8xf32> -> vector<24x8xf32>
    %c14_168 = arith.constant 14 : index
    %c0_169 = arith.constant 0 : index
    %c0_170 = arith.constant 0 : index
    %270 = vector.load %arg4[%c14_168, %c0_169, %c0_170] : memref<24x1x8xf32, #tpu.memory_space<vmem>>, vector<1x1x8xf32>
    %271 = vector.shape_cast %270 : vector<1x1x8xf32> to vector<1x8xf32>
    %272 = vector.broadcast %271 : vector<1x8xf32> to vector<24x8xf32>
    %273 = arith.addf %269, %272 : vector<24x8xf32>
    %c18 = arith.constant 18 : index
    %c0_171 = arith.constant 0 : index
    %c0_172 = arith.constant 0 : index
    %274 = vector.load %arg3[%c18, %c0_171, %c0_172] : memref<24x32x8xbf16, #tpu.memory_space<vmem>>, vector<1x32x8xbf16>
    %275 = vector.shape_cast %274 : vector<1x32x8xbf16> to vector<32x8xbf16>
    %cst_173 = arith.constant dense<0.000000e+00> : vector<24x8xf32>
    %276 = tpu.matmul %220, %275, %cst_173 {dimension_numbers = #tpu.dot_dimension_numbers<[1], [0], [0], [1], [0, 0, 1, 1], [], []>} : vector<24x32xbf16>, vector<32x8xbf16>, vector<24x8xf32> -> vector<24x8xf32>
    %c18_174 = arith.constant 18 : index
    %c0_175 = arith.constant 0 : index
    %c0_176 = arith.constant 0 : index
    %277 = vector.load %arg4[%c18_174, %c0_175, %c0_176] : memref<24x1x8xf32, #tpu.memory_space<vmem>>, vector<1x1x8xf32>
    %278 = vector.shape_cast %277 : vector<1x1x8xf32> to vector<1x8xf32>
    %279 = vector.broadcast %278 : vector<1x8xf32> to vector<24x8xf32>
    %280 = arith.addf %276, %279 : vector<24x8xf32>
    %c22 = arith.constant 22 : index
    %c0_177 = arith.constant 0 : index
    %c0_178 = arith.constant 0 : index
    %281 = vector.load %arg3[%c22, %c0_177, %c0_178] : memref<24x32x8xbf16, #tpu.memory_space<vmem>>, vector<1x32x8xbf16>
    %282 = vector.shape_cast %281 : vector<1x32x8xbf16> to vector<32x8xbf16>
    %cst_179 = arith.constant dense<0.000000e+00> : vector<24x8xf32>
    %283 = tpu.matmul %220, %282, %cst_179 {dimension_numbers = #tpu.dot_dimension_numbers<[1], [0], [0], [1], [0, 0, 1, 1], [], []>} : vector<24x32xbf16>, vector<32x8xbf16>, vector<24x8xf32> -> vector<24x8xf32>
    %c22_180 = arith.constant 22 : index
    %c0_181 = arith.constant 0 : index
    %c0_182 = arith.constant 0 : index
    %284 = vector.load %arg4[%c22_180, %c0_181, %c0_182] : memref<24x1x8xf32, #tpu.memory_space<vmem>>, vector<1x1x8xf32>
    %285 = vector.shape_cast %284 : vector<1x1x8xf32> to vector<1x8xf32>
    %286 = vector.broadcast %285 : vector<1x8xf32> to vector<24x8xf32>
    %287 = arith.addf %283, %286 : vector<24x8xf32>
    %cst_183 = arith.constant dense<0.000000e+00> : vector<24x24xf32>
    %288 = tpu.matmul %273, %280, %cst_183 {dimension_numbers = #tpu.dot_dimension_numbers<[1], [1], [0], [0], [0, 0, 1, 0], [], []>} : vector<24x8xf32>, vector<24x8xf32>, vector<24x24xf32> -> vector<24x24xf32>
    %c15 = arith.constant 15 : index
    %c0_184 = arith.constant 0 : index
    %c0_185 = arith.constant 0 : index
    %289 = vector.load %arg3[%c15, %c0_184, %c0_185] : memref<24x32x8xbf16, #tpu.memory_space<vmem>>, vector<1x32x8xbf16>
    %290 = vector.shape_cast %289 : vector<1x32x8xbf16> to vector<32x8xbf16>
    %cst_186 = arith.constant dense<0.000000e+00> : vector<24x8xf32>
    %291 = tpu.matmul %220, %290, %cst_186 {dimension_numbers = #tpu.dot_dimension_numbers<[1], [0], [0], [1], [0, 0, 1, 1], [], []>} : vector<24x32xbf16>, vector<32x8xbf16>, vector<24x8xf32> -> vector<24x8xf32>
    %c15_187 = arith.constant 15 : index
    %c0_188 = arith.constant 0 : index
    %c0_189 = arith.constant 0 : index
    %292 = vector.load %arg4[%c15_187, %c0_188, %c0_189] : memref<24x1x8xf32, #tpu.memory_space<vmem>>, vector<1x1x8xf32>
    %293 = vector.shape_cast %292 : vector<1x1x8xf32> to vector<1x8xf32>
    %294 = vector.broadcast %293 : vector<1x8xf32> to vector<24x8xf32>
    %295 = arith.addf %291, %294 : vector<24x8xf32>
    %c19 = arith.constant 19 : index
    %c0_190 = arith.constant 0 : index
    %c0_191 = arith.constant 0 : index
    %296 = vector.load %arg3[%c19, %c0_190, %c0_191] : memref<24x32x8xbf16, #tpu.memory_space<vmem>>, vector<1x32x8xbf16>
    %297 = vector.shape_cast %296 : vector<1x32x8xbf16> to vector<32x8xbf16>
    %cst_192 = arith.constant dense<0.000000e+00> : vector<24x8xf32>
    %298 = tpu.matmul %220, %297, %cst_192 {dimension_numbers = #tpu.dot_dimension_numbers<[1], [0], [0], [1], [0, 0, 1, 1], [], []>} : vector<24x32xbf16>, vector<32x8xbf16>, vector<24x8xf32> -> vector<24x8xf32>
    %c19_193 = arith.constant 19 : index
    %c0_194 = arith.constant 0 : index
    %c0_195 = arith.constant 0 : index
    %299 = vector.load %arg4[%c19_193, %c0_194, %c0_195] : memref<24x1x8xf32, #tpu.memory_space<vmem>>, vector<1x1x8xf32>
    %300 = vector.shape_cast %299 : vector<1x1x8xf32> to vector<1x8xf32>
    %301 = vector.broadcast %300 : vector<1x8xf32> to vector<24x8xf32>
    %302 = arith.addf %298, %301 : vector<24x8xf32>
    %c23 = arith.constant 23 : index
    %c0_196 = arith.constant 0 : index
    %c0_197 = arith.constant 0 : index
    %303 = vector.load %arg3[%c23, %c0_196, %c0_197] : memref<24x32x8xbf16, #tpu.memory_space<vmem>>, vector<1x32x8xbf16>
    %304 = vector.shape_cast %303 : vector<1x32x8xbf16> to vector<32x8xbf16>
    %cst_198 = arith.constant dense<0.000000e+00> : vector<24x8xf32>
    %305 = tpu.matmul %220, %304, %cst_198 {dimension_numbers = #tpu.dot_dimension_numbers<[1], [0], [0], [1], [0, 0, 1, 1], [], []>} : vector<24x32xbf16>, vector<32x8xbf16>, vector<24x8xf32> -> vector<24x8xf32>
    %c23_199 = arith.constant 23 : index
    %c0_200 = arith.constant 0 : index
    %c0_201 = arith.constant 0 : index
    %306 = vector.load %arg4[%c23_199, %c0_200, %c0_201] : memref<24x1x8xf32, #tpu.memory_space<vmem>>, vector<1x1x8xf32>
    %307 = vector.shape_cast %306 : vector<1x1x8xf32> to vector<1x8xf32>
    %308 = vector.broadcast %307 : vector<1x8xf32> to vector<24x8xf32>
    %309 = arith.addf %305, %308 : vector<24x8xf32>
    %cst_202 = arith.constant dense<0.000000e+00> : vector<24x24xf32>
    %310 = tpu.matmul %295, %302, %cst_202 {dimension_numbers = #tpu.dot_dimension_numbers<[1], [1], [0], [0], [0, 0, 1, 0], [], []>} : vector<24x8xf32>, vector<24x8xf32>, vector<24x24xf32> -> vector<24x24xf32>
    %311 = tpu.concatenate %244, %266, %288, %310 in 0 : vector<24x24xf32>, vector<24x24xf32>, vector<24x24xf32>, vector<24x24xf32> -> vector<96x24xf32>
    %312 = arith.addf %311, %33 : vector<96x24xf32>
    %cst_203 = arith.constant dense<0xFF800000> : vector<96xf32>
    %313 = vector.multi_reduction <maximumf>, %312, %cst_203 [1] : vector<96x24xf32> to vector<96xf32>
    %314 = vector.shape_cast %313 : vector<96xf32> to vector<96x1xf32>
    %315 = vector.broadcast %314 : vector<96x1xf32> to vector<96x24xf32>
    %316 = arith.subf %312, %315 : vector<96x24xf32>
    %317 = math.exp %316 : vector<96x24xf32>
    %cst_204 = arith.constant dense<0.000000e+00> : vector<96xf32>
    %318 = vector.multi_reduction <add>, %317, %cst_204 [1] : vector<96x24xf32> to vector<96xf32>
    %319 = vector.shape_cast %318 : vector<96xf32> to vector<96x1xf32>
    %320 = tpu.reciprocal %319 {approx = true} : vector<96x1xf32> -> vector<96x1xf32>
    %321 = vector.broadcast %320 : vector<96x1xf32> to vector<96x24xf32>
    %322 = arith.mulf %317, %321 : vector<96x24xf32>
    %323 = vector.extract_strided_slice %322 {offsets = [0, 0], sizes = [24, 24], strides = [1, 1]} : vector<96x24xf32> to vector<24x24xf32>
    %cst_205 = arith.constant dense<0.000000e+00> : vector<24x8xf32>
    %324 = tpu.matmul %323, %243, %cst_205 {dimension_numbers = #tpu.dot_dimension_numbers<[1], [0], [0], [1], [0, 0, 1, 1], [], []>} : vector<24x24xf32>, vector<24x8xf32>, vector<24x8xf32> -> vector<24x8xf32>
    %325 = vector.extract_strided_slice %322 {offsets = [24, 0], sizes = [24, 24], strides = [1, 1]} : vector<96x24xf32> to vector<24x24xf32>
    %cst_206 = arith.constant dense<0.000000e+00> : vector<24x8xf32>
    %326 = tpu.matmul %325, %265, %cst_206 {dimension_numbers = #tpu.dot_dimension_numbers<[1], [0], [0], [1], [0, 0, 1, 1], [], []>} : vector<24x24xf32>, vector<24x8xf32>, vector<24x8xf32> -> vector<24x8xf32>
    %327 = vector.extract_strided_slice %322 {offsets = [48, 0], sizes = [24, 24], strides = [1, 1]} : vector<96x24xf32> to vector<24x24xf32>
    %cst_207 = arith.constant dense<0.000000e+00> : vector<24x8xf32>
    %328 = tpu.matmul %327, %287, %cst_207 {dimension_numbers = #tpu.dot_dimension_numbers<[1], [0], [0], [1], [0, 0, 1, 1], [], []>} : vector<24x24xf32>, vector<24x8xf32>, vector<24x8xf32> -> vector<24x8xf32>
    %329 = vector.extract_strided_slice %322 {offsets = [72, 0], sizes = [24, 24], strides = [1, 1]} : vector<96x24xf32> to vector<24x24xf32>
    %cst_208 = arith.constant dense<0.000000e+00> : vector<24x8xf32>
    %330 = tpu.matmul %329, %309, %cst_208 {dimension_numbers = #tpu.dot_dimension_numbers<[1], [0], [0], [1], [0, 0, 1, 1], [], []>} : vector<24x24xf32>, vector<24x8xf32>, vector<24x8xf32> -> vector<24x8xf32>
    %331 = tpu.concatenate %324, %326, %328, %330 in 1 : vector<24x8xf32>, vector<24x8xf32>, vector<24x8xf32>, vector<24x8xf32> -> vector<24x32xf32>
    %332 = arith.truncf %331 : vector<24x32xf32> to vector<24x32xbf16>
    %c1_209 = arith.constant 1 : index
    %c0_210 = arith.constant 0 : index
    %c0_211 = arith.constant 0 : index
    %333 = vector.load %arg5[%c1_209, %c0_210, %c0_211] : memref<2x32x32xbf16, #tpu.memory_space<vmem>>, vector<1x32x32xbf16>
    %334 = vector.shape_cast %333 : vector<1x32x32xbf16> to vector<32x32xbf16>
    %cst_212 = arith.constant dense<0.000000e+00> : vector<24x32xf32>
    %335 = tpu.matmul %332, %334, %cst_212 {dimension_numbers = #tpu.dot_dimension_numbers<[1], [0], [0], [1], [0, 0, 1, 1], [], []>} : vector<24x32xbf16>, vector<32x32xbf16>, vector<24x32xf32> -> vector<24x32xf32>
    %336 = vector.extract_strided_slice %222 {offsets = [0, 0], sizes = [1, 32], strides = [1, 1]} : vector<6x32xf32> to vector<1x32xf32>
    %337 = vector.broadcast %336 : vector<1x32xf32> to vector<24x32xf32>
    %338 = arith.addf %335, %337 : vector<24x32xf32>
    %339 = arith.addf %219, %338 : vector<24x32xf32>
    %340 = vector.extract_strided_slice %222 {offsets = [1, 0], sizes = [1, 32], strides = [1, 1]} : vector<6x32xf32> to vector<1x32xf32>
    %341 = vector.extract_strided_slice %222 {offsets = [2, 0], sizes = [1, 32], strides = [1, 1]} : vector<6x32xf32> to vector<1x32xf32>
    %cst_213 = arith.constant dense<0.000000e+00> : vector<24xf32>
    %342 = vector.multi_reduction <add>, %339, %cst_213 [1] : vector<24x32xf32> to vector<24xf32>
    %343 = vector.shape_cast %342 : vector<24xf32> to vector<24x1xf32>
    %cst_214 = arith.constant 3.200000e+01 : f32
    %344 = vector.broadcast %cst_214 : f32 to vector<24x1xf32>
    %345 = arith.divf %343, %344 : vector<24x1xf32>
    %346 = vector.broadcast %345 : vector<24x1xf32> to vector<24x32xf32>
    %347 = arith.subf %339, %346 : vector<24x32xf32>
    %348 = arith.mulf %347, %347 : vector<24x32xf32>
    %cst_215 = arith.constant dense<0.000000e+00> : vector<24xf32>
    %349 = vector.multi_reduction <add>, %348, %cst_215 [1] : vector<24x32xf32> to vector<24xf32>
    %350 = vector.shape_cast %349 : vector<24xf32> to vector<24x1xf32>
    %cst_216 = arith.constant 3.200000e+01 : f32
    %351 = vector.broadcast %cst_216 : f32 to vector<24x1xf32>
    %352 = arith.divf %350, %351 : vector<24x1xf32>
    %353 = vector.broadcast %345 : vector<24x1xf32> to vector<24x32xf32>
    %354 = arith.subf %339, %353 : vector<24x32xf32>
    %cst_217 = arith.constant 9.99999974E-6 : f32
    %355 = vector.broadcast %cst_217 : f32 to vector<24x1xf32>
    %356 = arith.addf %352, %355 : vector<24x1xf32>
    %357 = math.rsqrt %356 : vector<24x1xf32>
    %358 = vector.broadcast %357 : vector<24x1xf32> to vector<24x32xf32>
    %359 = arith.mulf %354, %358 : vector<24x32xf32>
    %360 = vector.broadcast %340 : vector<1x32xf32> to vector<24x32xf32>
    %361 = arith.mulf %359, %360 : vector<24x32xf32>
    %362 = vector.broadcast %341 : vector<1x32xf32> to vector<24x32xf32>
    %363 = arith.addf %361, %362 : vector<24x32xf32>
    %364 = arith.truncf %363 : vector<24x32xf32> to vector<24x32xbf16>
    %c1_218 = arith.constant 1 : index
    %c0_219 = arith.constant 0 : index
    %c0_220 = arith.constant 0 : index
    %365 = vector.load %arg6[%c1_218, %c0_219, %c0_220] : memref<2x32x64xbf16, #tpu.memory_space<vmem>>, vector<1x32x64xbf16>
    %366 = vector.shape_cast %365 : vector<1x32x64xbf16> to vector<32x64xbf16>
    %cst_221 = arith.constant dense<0.000000e+00> : vector<24x64xf32>
    %367 = tpu.matmul %364, %366, %cst_221 {dimension_numbers = #tpu.dot_dimension_numbers<[1], [0], [0], [1], [0, 0, 1, 1], [], []>} : vector<24x32xbf16>, vector<32x64xbf16>, vector<24x64xf32> -> vector<24x64xf32>
    %c1_222 = arith.constant 1 : index
    %c0_223 = arith.constant 0 : index
    %c0_224 = arith.constant 0 : index
    %368 = vector.load %arg9[%c1_222, %c0_223, %c0_224] : memref<2x1x64xf32, #tpu.memory_space<vmem>>, vector<1x1x64xf32>
    %369 = vector.shape_cast %368 : vector<1x1x64xf32> to vector<1x64xf32>
    %370 = vector.broadcast %369 : vector<1x64xf32> to vector<24x64xf32>
    %371 = arith.addf %367, %370 : vector<24x64xf32>
    %cst_225 = arith.constant 0.000000e+00 : f32
    %372 = vector.broadcast %cst_225 : f32 to vector<24x64xf32>
    %373 = arith.maximumf %371, %372 : vector<24x64xf32>
    %374 = arith.truncf %373 : vector<24x64xf32> to vector<24x64xbf16>
    %c1_226 = arith.constant 1 : index
    %c0_227 = arith.constant 0 : index
    %c0_228 = arith.constant 0 : index
    %375 = vector.load %arg7[%c1_226, %c0_227, %c0_228] : memref<2x64x32xbf16, #tpu.memory_space<vmem>>, vector<1x64x32xbf16>
    %376 = vector.shape_cast %375 : vector<1x64x32xbf16> to vector<64x32xbf16>
    %cst_229 = arith.constant dense<0.000000e+00> : vector<24x32xf32>
    %377 = tpu.matmul %374, %376, %cst_229 {dimension_numbers = #tpu.dot_dimension_numbers<[1], [0], [0], [1], [0, 0, 1, 1], [], []>} : vector<24x64xbf16>, vector<64x32xbf16>, vector<24x32xf32> -> vector<24x32xf32>
    %378 = vector.extract_strided_slice %222 {offsets = [3, 0], sizes = [1, 32], strides = [1, 1]} : vector<6x32xf32> to vector<1x32xf32>
    %379 = vector.broadcast %378 : vector<1x32xf32> to vector<24x32xf32>
    %380 = arith.addf %377, %379 : vector<24x32xf32>
    %381 = arith.addf %363, %380 : vector<24x32xf32>
    %382 = vector.extract_strided_slice %222 {offsets = [4, 0], sizes = [1, 32], strides = [1, 1]} : vector<6x32xf32> to vector<1x32xf32>
    %383 = vector.extract_strided_slice %222 {offsets = [5, 0], sizes = [1, 32], strides = [1, 1]} : vector<6x32xf32> to vector<1x32xf32>
    %cst_230 = arith.constant dense<0.000000e+00> : vector<24xf32>
    %384 = vector.multi_reduction <add>, %381, %cst_230 [1] : vector<24x32xf32> to vector<24xf32>
    %385 = vector.shape_cast %384 : vector<24xf32> to vector<24x1xf32>
    %cst_231 = arith.constant 3.200000e+01 : f32
    %386 = vector.broadcast %cst_231 : f32 to vector<24x1xf32>
    %387 = arith.divf %385, %386 : vector<24x1xf32>
    %388 = vector.broadcast %387 : vector<24x1xf32> to vector<24x32xf32>
    %389 = arith.subf %381, %388 : vector<24x32xf32>
    %390 = arith.mulf %389, %389 : vector<24x32xf32>
    %cst_232 = arith.constant dense<0.000000e+00> : vector<24xf32>
    %391 = vector.multi_reduction <add>, %390, %cst_232 [1] : vector<24x32xf32> to vector<24xf32>
    %392 = vector.shape_cast %391 : vector<24xf32> to vector<24x1xf32>
    %cst_233 = arith.constant 3.200000e+01 : f32
    %393 = vector.broadcast %cst_233 : f32 to vector<24x1xf32>
    %394 = arith.divf %392, %393 : vector<24x1xf32>
    %395 = vector.broadcast %387 : vector<24x1xf32> to vector<24x32xf32>
    %396 = arith.subf %381, %395 : vector<24x32xf32>
    %cst_234 = arith.constant 9.99999974E-6 : f32
    %397 = vector.broadcast %cst_234 : f32 to vector<24x1xf32>
    %398 = arith.addf %394, %397 : vector<24x1xf32>
    %399 = math.rsqrt %398 : vector<24x1xf32>
    %400 = vector.broadcast %399 : vector<24x1xf32> to vector<24x32xf32>
    %401 = arith.mulf %396, %400 : vector<24x32xf32>
    %402 = vector.broadcast %382 : vector<1x32xf32> to vector<24x32xf32>
    %403 = arith.mulf %401, %402 : vector<24x32xf32>
    %404 = vector.broadcast %383 : vector<1x32xf32> to vector<24x32xf32>
    %405 = arith.addf %403, %404 : vector<24x32xf32>
    %c0_235 = arith.constant 0 : index
    %c0_236 = arith.constant 0 : index
    %406 = vector.load %arg10[%c0_235, %c0_236] : memref<24x32xf32, #tpu.memory_space<vmem>>, vector<24x32xf32>
    tpu.vector_store %arg10[%c0_235, %c0_236], %405 {strides = array<i32>} : memref<24x32xf32, #tpu.memory_space<vmem>>, vector<24x32xf32>,
    return
  }
}

</mosaic_0001>

<bundles_post_ra>
// kernel: st_ecgformer_forward.1
= control target key start
LH: loop header
LB: loop body
LE: loop exit
PB: predicated region body
PF: predicated region fallthrough
CT: control target
= control target key end

     0   :  { %vm58_vm0 = vcmask 130048   ;;  %vm152_vm1 = vcmask 261120   ;;  %vm257_vm2 = vcmask 64512   ;;  %vm806_vm12 = vcmask 195584   ;;  %s3533_s27 = smov 16   ;;  %s3534_s28 = smov 24   ;;  %s4443_s2 = inlined_call_operand.vmem [shape: bf16[16,32], index: 2, kind: input, shape index: {}]   ;;  %s4444_s0 = inlined_call_operand.vmem [shape: bf16[24,16], index: 0, kind: input, shape index: {}]   ;;  %s4445_s3 = inlined_call_operand.vmem [shape: bf16[24,32,8], index: 3, kind: input, shape index: {}]   ;;  %s4446_s4 = inlined_call_operand.vmem [shape: f32[24,1,8], index: 4, kind: input, shape index: {}]   ;;  %s4447_s1 = inlined_call_operand.vmem [shape: f32[24,32], index: 1, kind: input, shape index: {}]   ;;  %s4448_s5 = inlined_call_operand.vmem [shape: bf16[2,32,32], index: 5, kind: input, shape index: {}]   ;;  %s4449_s8 = inlined_call_operand.vmem [shape: f32[2,6,32], index: 8, kind: input, shape index: {}]   ;;  %s4450_s9 = inlined_call_operand.vmem [shape: f32[2,1,64], index: 9, kind: input, shape index: {}]   ;;  %s4451_s6 = inlined_call_operand.vmem [shape: bf16[2,32,64], index: 6, kind: input, shape index: {}]   ;;  %s4452_s7 = inlined_call_operand.vmem [shape: bf16[2,64,32], index: 7, kind: input, shape index: {}]   ;;  %s4453_s10 = inlined_call_operand.vmem [shape: f32[24,32], index: 10, kind: output, shape index: {}]  }
   0x1   :  { %v3280_v0 = vld [vmem:[%s4443_s2] sm:$0xff]  ;;  %v38_v1 = vld [vmem:[%s4444_s0 + $0x8] sm:$0xf]  ;;  %v3290_v11 = vld [vmem:[%s4445_s3 + $0x58] sm:$0xff] }
   0x2   :  { %v3279_v2 = vld [vmem:[%s4444_s0] sm:$0xff]  ;;  %v49_v3 = vunpack.c.l.b16 %v38_v1  ;;  %72 = vmatpush.bf16.msra.mxu0 %v3280_v0  ;;  %3345 = vmatpush.bf16.msra.mxu1 %v3280_v0  ;;  %v3282_v5 = vld [vmem:[%s4445_s3 + $0x8] sm:$0xff]  ;;  %v3288_v12 = vld [vmem:[%s4445_s3 + $0x18] sm:$0xff] }
   0x3   :  { %v3284_v6 = vld [vmem:[%s4445_s3 + $0x48] sm:$0xff]  ;;  %v3281_v8 = vld [vmem:[%s4445_s3] sm:$0xff]  ;;  %v3292_v13 = vld [vmem:[%s4445_s3 + $0x98] sm:$0xff] }
   0x4   :  { %v51_v4 = vpack.c.b16 %v49_v3, %v49_v3  ;;  %v3286_v7 = vld [vmem:[%s4445_s3 + $0x88] sm:$0xff]  ;;  %205 = vmatpush.bf16.msra.mxu2 %v3284_v6  ;;  %v3283_v9 = vld [vmem:[%s4445_s3 + $0x40] sm:$0xff]  ;;  %v3287_v14 = vld [vmem:[%s4445_s3 + $0x10] sm:$0xff] }
   0x5   :  { %2756 = vmatmul.msk.bf16.vlgmr.msra.gmra.mxu0 %vm58_vm0, %v3279_v2  ;;  %245 = vmatpush.bf16.msra.mxu3 %v3286_v7  ;;  %v3285_v10 = vld [vmem:[%s4445_s3 + $0x80] sm:$0xff]  ;;  %v3289_v15 = vld [vmem:[%s4445_s3 + $0x50] sm:$0xff]  ;;  %v42_v20 = vld [vmem:[%s4447_s1 + $0x8] sm:$0xff] }
   0x6   :  { %2757 = vmatmul.msk.bf16.vlgmr.msra.gmra.mxu1 %vm58_vm0, %v51_v4  ;;  %v3291_v16 = vld [vmem:[%s4445_s3 + $0x90] sm:$0xff]  ;;  %v41_v19 = vld [vmem:[%s4447_s1] sm:$0xff]  ;;  %v3296_v29 = vld [vmem:[%s4445_s3 + $0x68] sm:$0xff] }
   0x7   :  { %165 = vmatpush.bf16.msrb.mxu1 %v3282_v5  ;;  %v43_v26 = vld [vmem:[%s4447_s1 + $0x10] sm:$0xff]  ;;  %v3294_v30 = vld [vmem:[%s4445_s3 + $0x28] sm:$0xff]  ;;  %v3293_v32 = vld [vmem:[%s4445_s3 + $0x20] sm:$0xff]  ;;  %s3535_s1 = smov 8  }
   0x8   :  { %206 = vmatpush.bf16.msra.mxu2 %v3283_v9  ;;  %v3298_v31 = vld [vmem:[%s4445_s3 + $0xa8] sm:$0xff]  ;;  %v3295_v33 = vld [vmem:[%s4445_s3 + $0x60] sm:$0xff]  ;;  %v3302_v35 = vld [vmem:[%s4445_s3 + $0x78] sm:$0xff] }
   0x9   :  { %246 = vmatpush.bf16.msra.mxu3 %v3285_v10  ;;  %v3297_v34 = vld [vmem:[%s4445_s3 + $0xa0] sm:$0xff]  ;;  %v3300_v36 = vld [vmem:[%s4445_s3 + $0x38] sm:$0xff]  ;;  %v3299_v38 = vld [vmem:[%s4445_s3 + $0x30] sm:$0xff] }
   0xa   :  { %v3304_v37 = vld [vmem:[%s4445_s3 + $0xb8] sm:$0xff]  ;;  %v3301_v39 = vld [vmem:[%s4445_s3 + $0x70] sm:$0xff]  ;;  %v3385_v48 = vld [vmem:[%s4446_s4 + $0x4] ss:$0 sm:$0xff] }
   0xb   :  { %166 = vmatpush.bf16.msrb.mxu1 %v3281_v8  ;;  %v3303_v40 = vld [vmem:[%s4445_s3 + $0xb0] sm:$0xff]  ;;  %v3384_v54 = vld [vmem:[%s4446_s4] ss:$0 sm:$0xff]  ;;  %v3388_v4 = vld [vmem:[%s4446_s4 + $0x5] ss:$0 sm:$0xff] }
   0xc   :  { %370 = vmatpush.bf16.msrb.mxu2 %v3290_v11  ;;  %v3389_v5 = vld [vmem:[%s4446_s4 + $0x9] ss:$0 sm:$0xff] }
   0xd   :  { %410 = vmatpush.bf16.msrb.mxu3 %v3292_v13 }
   0xf   :  { %330 = vmatpush.bf16.msra.mxu1 %v3288_v12 }
  0x10   :  { %371 = vmatpush.bf16.msrb.mxu2 %v3289_v15 }
  0x11   :  { %411 = vmatpush.bf16.msrb.mxu3 %v3291_v16 }
  0x13   :  { %331 = vmatpush.bf16.msra.mxu1 %v3287_v14  ;;  %v3387_v14 = vld [vmem:[%s4446_s4 + $0x1] ss:$0 sm:$0xff] }
  0x82   :  { %v74_v17 = vpop.f32.mrf.mxu0 }
  0x83   :  { %v79_v18 = vpop.f32.mrf.mxu1  ;;  %v3645_v23 = vadd.f32 %v74_v17, %v41_v19 }
  0x84   :  { %v3657_v27 = vadd.f32 %v79_v18, %v43_v26 }
  0x86   :  { %v130_v28 = vpack.c.bf16 %v3657_v27, %v3657_v27 }
  0x8a   :  { %v76_v21 = vpop.f32.mrf.mxu0 }
  0x8b   :  { %v81_v22 = vpop.f32.mrf.mxu1  ;;  %v3647_v24 = vadd.f32 %v76_v21, %v42_v20 }
  0x8d   :  { %v129_v25 = vpack.c.bf16 %v3647_v24, %v3645_v23 }
  0x8f   :  { %2766 = vmatmul.msk.bf16.vlgmr.msrb.gmra.mxu1 %vm152_vm1, %v129_v25  ;;  %2781 = vmatmul.msk.bf16.vlgmr.msra.gmra.mxu2 %vm152_vm1, %v129_v25 }
  0x90   :  { %2796 = vmatmul.msk.bf16.vlgmr.msra.gmra.mxu3 %vm152_vm1, %v129_v25  ;;  %534 = vmatpush.bf16.msra.mxu2 %v3296_v29 }
  0x91   :  { %494 = vmatpush.bf16.msrb.mxu1 %v3294_v30  ;;  %574 = vmatpush.bf16.msra.mxu3 %v3298_v31  ;;  %v3391_v31 = vld [vmem:[%s4446_s4 + $0x6] ss:$0 sm:$0xff] }
  0x94   :  { %535 = vmatpush.bf16.msra.mxu2 %v3295_v33 }
  0x95   :  { %495 = vmatpush.bf16.msrb.mxu1 %v3293_v32  ;;  %575 = vmatpush.bf16.msra.mxu3 %v3297_v34  ;;  %v3392_v32 = vld [vmem:[%s4446_s4 + $0xa] ss:$0 sm:$0xff] }
  0x9f   :  { %2767 = vmatmul.msk.bf16.gmra.mxu1 %vm152_vm1, %v130_v28  ;;  %2782 = vmatmul.msk.bf16.gmra.mxu2 %vm152_vm1, %v130_v28 }
  0xa0   :  { %2797 = vmatmul.msk.bf16.gmra.mxu3 %vm152_vm1, %v130_v28 }
  0xaf   :  { %2817 = vmatmul.msk.bf16.vlgmr.msra.gmra.mxu1 %vm152_vm1, %v129_v25  ;;  %2832 = vmatmul.msk.bf16.vlgmr.msrb.gmra.mxu2 %vm152_vm1, %v129_v25 }
  0xb0   :  { %2847 = vmatmul.msk.bf16.vlgmr.msrb.gmra.mxu3 %vm152_vm1, %v129_v25  ;;  %698 = vmatpush.bf16.msrb.mxu2 %v3302_v35 }
  0xb1   :  { %658 = vmatpush.bf16.msra.mxu1 %v3300_v36  ;;  %738 = vmatpush.bf16.msrb.mxu3 %v3304_v37 }
  0xb4   :  { %699 = vmatpush.bf16.msrb.mxu2 %v3301_v39 }
  0xb5   :  { %659 = vmatpush.bf16.msra.mxu1 %v3299_v38  ;;  %739 = vmatpush.bf16.msrb.mxu3 %v3303_v40 }
  0xbf   :  { %2818 = vmatmul.msk.bf16.gmra.mxu1 %vm152_vm1, %v130_v28  ;;  %2833 = vmatmul.msk.bf16.gmra.mxu2 %vm152_vm1, %v130_v28 }
  0xc0   :  { %2848 = vmatmul.msk.bf16.gmra.mxu3 %vm152_vm1, %v130_v28 }
  0xcf   :  { %2868 = vmatmul.msk.bf16.vlgmr.msrb.gmra.mxu1 %vm152_vm1, %v129_v25  ;;  %2883 = vmatmul.msk.bf16.vlgmr.msra.gmra.mxu2 %vm152_vm1, %v129_v25 }
  0xd0   :  { %2898 = vmatmul.msk.bf16.vlgmr.msra.gmra.mxu3 %vm152_vm1, %v129_v25 }
  0xdf   :  { %2869 = vmatmul.msk.bf16.gmra.mxu1 %vm152_vm1, %v130_v28  ;;  %2884 = vmatmul.msk.bf16.gmra.mxu2 %vm152_vm1, %v130_v28 }
  0xe0   :  { %2899 = vmatmul.msk.bf16.gmra.mxu3 %vm152_vm1, %v130_v28 }
  0xef   :  { %2919 = vmatmul.msk.bf16.vlgmr.msra.gmra.mxu1 %vm152_vm1, %v129_v25  ;;  %2934 = vmatmul.msk.bf16.vlgmr.msrb.gmra.mxu2 %vm152_vm1, %v129_v25 }
  0xf0   :  { %2949 = vmatmul.msk.bf16.vlgmr.msrb.gmra.mxu3 %vm152_vm1, %v129_v25 }
  0xff   :  { %2920 = vmatmul.msk.bf16.gmra.mxu1 %vm152_vm1, %v130_v28  ;;  %2935 = vmatmul.msk.bf16.gmra.mxu2 %vm152_vm1, %v130_v28 }
 0x100   :  { %2950 = vmatmul.msk.bf16.gmra.mxu3 %vm152_vm1, %v130_v28 }
 0x10c   :  { %v168_v41 = vpop.f32.mrf.mxu1 }
 0x10d   :  { %v169_v59 = vadd.f32 %v3384_v54, %v168_v41  ;;  %v3390_v41 = vld [vmem:[%s4446_s4 + $0x2] ss:$0 sm:$0xff] }
 0x112   :  { %v208_v42 = vpop.f32.mrf.mxu2 }
 0x113   :  { %v3718_v43 = vpop.f32.mrf.mxu3  ;;  %v209_v56 = vadd.f32 %v3385_v48, %v208_v42 }
 0x114   :  { %v170_v44 = vpop.f32.mrf.mxu1 }
 0x115   :  { %v171_v63 = vadd.f32 %v3384_v54, %v170_v44 }
 0x11a   :  { %v210_v45 = vpop.f32.mrf.mxu2 }
 0x11b   :  { %v3720_v46 = vpop.f32.mrf.mxu3  ;;  %v211_v53 = vadd.f32 %v3385_v48, %v210_v45 }
 0x11c   :  { %v173_v47 = vpop.f32.mrf.mxu1 }
 0x11d   :  { %v174_v3 = vadd.f32 %v3384_v54, %v173_v47 }
 0x122   :  { %v213_v49 = vpop.f32.mrf.mxu2 }
 0x123   :  { %v214_v50 = vadd.f32 %v3385_v48, %v213_v49  ;;  %v3725_v51 = vpop.f32.mrf.mxu3 }
 0x124   :  { %v175_v52 = vpop.f32.mrf.mxu1 }
 0x125   :  { %2798 = vmatpush.xpose.msk.msrb.mxu0 %vm257_vm2, %v214_v50 }
 0x129   :  { %2799 = vmatpush.xpose.msk.msrb.mxu0 %vm257_vm2, %v211_v53 }
 0x12a   :  { %v215_v55 = vpop.f32.mrf.mxu2 }
 0x12b   :  { %v255_v57 = vpop.f32.mrf.mxu3 }
 0x12c   :  { %v333_v58 = vpop.f32.mrf.mxu1 }
 0x12d   :  { %2800 = vmatpush.xpose.msk.msrb.mxu0 %vm257_vm2, %v209_v56  ;;  %v334_v19 = vadd.f32 %v3387_v14, %v333_v58  ;;  %v3394_v58 = vld [vmem:[%s4446_s4 + $0x7] ss:$0 sm:$0xff] }
 0x130   :  { %2801 = vmatmul.msk.f32.vlgmr.msrb.gmra.mxu0 %vm257_vm2, %v169_v59  ;;  %v3395_v59 = vld [vmem:[%s4446_s4 + $0xb] ss:$0 sm:$0xff] }
 0x132   :  { %v373_v60 = vpop.f32.mrf.mxu2 }
 0x133   :  { %v413_v61 = vpop.f32.mrf.mxu3  ;;  %v374_v16 = vadd.f32 %v3388_v4, %v373_v60 }
 0x134   :  { %v335_v62 = vpop.f32.mrf.mxu1  ;;  %v414_v13 = vadd.f32 %v3389_v5, %v413_v61 }
 0x135   :  { %v336_v25 = vadd.f32 %v3387_v14, %v335_v62 }
 0x138   :  { %2802 = vmatmul.msk.f32.gmra.mxu0 %vm257_vm2, %v171_v63 }
 0x13a   :  { %v375_v0 = vpop.f32.mrf.mxu2 }
 0x13b   :  { %v415_v1 = vpop.f32.mrf.mxu3  ;;  %v376_v12 = vadd.f32 %v3388_v4, %v375_v0 }
 0x13c   :  { %v338_v2 = vpop.f32.mrf.mxu1  ;;  %v416_v11 = vadd.f32 %v3389_v5, %v415_v1 }
 0x13d   :  { %v339_v30 = vadd.f32 %v3387_v14, %v338_v2 }
 0x140   :  { %2803 = vmatmul.msk.f32.gmra.mxu0 %vm257_vm2, %v174_v3 }
 0x142   :  { %v378_v6 = vpop.f32.mrf.mxu2 }
 0x143   :  { %v379_v7 = vadd.f32 %v3388_v4, %v378_v6  ;;  %v418_v8 = vpop.f32.mrf.mxu3  ;;  %v3386_v4 = vld [vmem:[%s4446_s4 + $0x8] ss:$0 sm:$0xff] }
 0x144   :  { %v419_v9 = vadd.f32 %v3389_v5, %v418_v8  ;;  %v340_v10 = vpop.f32.mrf.mxu1  ;;  %v3393_v5 = vld [vmem:[%s4446_s4 + $0x3] ss:$0 sm:$0xff] }
 0x145   :  { %2849 = vmatpush.xpose.msk.msra.mxu0 %vm257_vm2, %v379_v7 }
 0x146   :  { %996 = vmatpush.msrb.mxu1 %v419_v9  ;;  %v254_v9 = vadd.f32 %v3386_v4, %v3725_v51 }
 0x148   :  { %997 = vmatpush.msrb.mxu1 %v416_v11  ;;  %v251_v11 = vadd.f32 %v3386_v4, %v3720_v46 }
 0x149   :  { %2850 = vmatpush.xpose.msk.msra.mxu0 %vm257_vm2, %v376_v12  ;;  %v249_v12 = vadd.f32 %v3386_v4, %v3718_v43 }
 0x14a   :  { %998 = vmatpush.msrb.mxu1 %v414_v13  ;;  %v380_v15 = vpop.f32.mrf.mxu2 }
 0x14b   :  { %v420_v17 = vpop.f32.mrf.mxu3 }
 0x14c   :  { %v497_v18 = vpop.f32.mrf.mxu1 }
 0x14d   :  { %2851 = vmatpush.xpose.msk.msra.mxu0 %vm257_vm2, %v374_v16  ;;  %v498_v48 = vadd.f32 %v3390_v41, %v497_v18 }
 0x150   :  { %2852 = vmatmul.msk.f32.vlgmr.msra.gmra.mxu0 %vm257_vm2, %v334_v19  ;;  %v83_v19 = vlaneseq }
 0x152   :  { %v537_v20 = vpop.f32.mrf.mxu2  ;;  %v84_v46 = vshrl.u32 %v83_v19, 7 }
 0x153   :  { %v577_v21 = vpop.f32.mrf.mxu3  ;;  %v538_v44 = vadd.f32 %v3391_v31, %v537_v20 }
 0x154   :  { %v499_v22 = vpop.f32.mrf.mxu1  ;;  %v578_v40 = vadd.f32 %v3392_v32, %v577_v21  ;;  %v85_v20 = vadd.s32 8, %v84_v46 }
 0x155   :  { %v500_v53 = vadd.f32 %v3390_v41, %v499_v22  ;;  %v88_v22 = vand.u32 127, %v83_v19 }
 0x156   :  { %vm107_vm3 = vcmp.ge.s32.totalorder %v85_v20, 12  ;;  %vm93_vm5 = vcmp.lt.s32.totalorder %v85_v20, 12 }
 0x157   :  { %vm115_vm4 = vcmp.ge.s32.totalorder %v88_v22, 12  ;;  %vm119_vm7 = vcmp.lt.s32.totalorder %v88_v22, 24  ;;  %vm102_vm8 = vcmp.lt.s32.totalorder %v88_v22, 12 }
 0x158   :  { %2853 = vmatmul.msk.f32.gmra.mxu0 %vm257_vm2, %v336_v25  ;;  %vm117_vm6 = vmand %vm107_vm3, %vm115_vm4  ;;  %v3532_v25 = vmov -1e+30  }
 0x159   :  { %vm104_vm9 = vmand %vm93_vm5, %vm102_vm8 }
 0x15a   :  { %v539_v26 = vpop.f32.mrf.mxu2  ;;  %vm121_vm10 = vmand %vm117_vm6, %vm119_vm7 }
 0x15b   :  { %v579_v28 = vpop.f32.mrf.mxu3  ;;  %v540_v39 = vadd.f32 %v3391_v31, %v539_v26  ;;  %vm124_vm11 = vmor %vm104_vm9, %vm121_vm10 }
 0x15c   :  { %v502_v29 = vpop.f32.mrf.mxu1  ;;  %v580_v38 = vadd.f32 %v3392_v32, %v579_v28  ;;  %v3791_v26 = vsel %vm124_vm11, 0.0, %v3532_v25  ;;  %vm122_vm13 = vmand %vm115_vm4, %vm119_vm7  ;;  %vm1335_vm11 = vcmask 523264  }
 0x15d   :  { %v503_v57 = vadd.f32 %v3390_v41, %v502_v29 }
 0x160   :  { %2854 = vmatmul.msk.f32.gmra.mxu0 %vm257_vm2, %v339_v30 }
 0x162   :  { %v542_v33 = vpop.f32.mrf.mxu2 }
 0x163   :  { %v543_v34 = vadd.f32 %v3391_v31, %v542_v33  ;;  %v582_v35 = vpop.f32.mrf.mxu3  ;;  %v3796_v31 = vsel %vm122_vm13, 0.0, %v3532_v25 }
 0x164   :  { %v583_v36 = vadd.f32 %v3392_v32, %v582_v35  ;;  %v504_v37 = vpop.f32.mrf.mxu1  ;;  %v3801_v35 = vsel %vm102_vm8, 0.0, %v3532_v25 }
 0x165   :  { %2900 = vmatpush.xpose.msk.msrb.mxu0 %vm257_vm2, %v543_v34 }
 0x166   :  { %1031 = vmatpush.msra.mxu2 %v583_v36  ;;  %3346 = vmatpush.msra.mxu3 %v583_v36 }
 0x168   :  { %1032 = vmatpush.msra.mxu2 %v580_v38  ;;  %3347 = vmatpush.msra.mxu3 %v580_v38 }
 0x169   :  { %2901 = vmatpush.xpose.msk.msrb.mxu0 %vm257_vm2, %v540_v39 }
 0x16a   :  { %1033 = vmatpush.msra.mxu2 %v578_v40  ;;  %3348 = vmatpush.msra.mxu3 %v578_v40  ;;  %v544_v42 = vpop.f32.mrf.mxu2 }
 0x16b   :  { %v584_v45 = vpop.f32.mrf.mxu3 }
 0x16c   :  { %v661_v47 = vpop.f32.mrf.mxu1 }
 0x16d   :  { %2902 = vmatpush.xpose.msk.msrb.mxu0 %vm257_vm2, %v538_v44  ;;  %v662_v10 = vadd.f32 %v3393_v5, %v661_v47 }
 0x170   :  { %2903 = vmatmul.msk.f32.vlgmr.msrb.gmra.mxu0 %vm257_vm2, %v498_v48 }
 0x172   :  { %v701_v49 = vpop.f32.mrf.mxu2 }
 0x173   :  { %v741_v50 = vpop.f32.mrf.mxu3  ;;  %v702_v7 = vadd.f32 %v3394_v58, %v701_v49 }
 0x174   :  { %v663_v52 = vpop.f32.mrf.mxu1  ;;  %v742_v3 = vadd.f32 %v3395_v59, %v741_v50 }
 0x175   :  { %v664_v13 = vadd.f32 %v3393_v5, %v663_v52 }
 0x178   :  { %2904 = vmatmul.msk.f32.gmra.mxu0 %vm257_vm2, %v500_v53 }
 0x17a   :  { %v703_v54 = vpop.f32.mrf.mxu2 }
 0x17b   :  { %v743_v55 = vpop.f32.mrf.mxu3  ;;  %v704_v2 = vadd.f32 %v3394_v58, %v703_v54 }
 0x17c   :  { %v666_v56 = vpop.f32.mrf.mxu1  ;;  %v744_v1 = vadd.f32 %v3395_v59, %v743_v55 }
 0x17d   :  { %v667_v14 = vadd.f32 %v3393_v5, %v666_v56 }
 0x180   :  { %2905 = vmatmul.msk.f32.gmra.mxu0 %vm257_vm2, %v503_v57 }
 0x182   :  { %v706_v60 = vpop.f32.mrf.mxu2 }
 0x183   :  { %v707_v61 = vadd.f32 %v3394_v58, %v706_v60  ;;  %v746_v62 = vpop.f32.mrf.mxu3 }
 0x184   :  { %v747_v63 = vadd.f32 %v3395_v59, %v746_v62  ;;  %v668_v0 = vpop.f32.mrf.mxu1 }
 0x185   :  { %2951 = vmatpush.xpose.msk.msra.mxu0 %vm257_vm2, %v707_v61 }
 0x186   :  { %1066 = vmatpush.msrb.mxu3 %v747_v63 }
 0x188   :  { %1067 = vmatpush.msrb.mxu3 %v744_v1 }
 0x189   :  { %2952 = vmatpush.xpose.msk.msra.mxu0 %vm257_vm2, %v704_v2 }
 0x18a   :  { %1068 = vmatpush.msrb.mxu3 %v742_v3  ;;  %v708_v6 = vpop.f32.mrf.mxu2 }
 0x18b   :  { %v748_v8 = vpop.f32.mrf.mxu3 }
 0x18d   :  { %2953 = vmatpush.xpose.msk.msra.mxu0 %vm257_vm2, %v702_v7 }
 0x190   :  { %2954 = vmatmul.msk.f32.vlgmr.msra.gmra.mxu0 %vm257_vm2, %v662_v10 }
 0x191   :  { %961 = vmatpush.msrb.mxu0 %v254_v9 }
 0x193   :  { %962 = vmatpush.msrb.mxu0 %v251_v11 }
 0x195   :  { %963 = vmatpush.msrb.mxu0 %v249_v12 }
 0x198   :  { %2955 = vmatmul.msk.f32.gmra.mxu0 %vm257_vm2, %v664_v13 }
 0x1a0   :  { %2956 = vmatmul.msk.f32.gmra.mxu0 %vm257_vm2, %v667_v14 }
 0x1ad   :  { %v293_v15 = vpop.f32.mrf.mxu0 }
 0x1ae   :  { %v794_v50 = vadd.f32 %v293_v15, %v3801_v35 }
 0x1b0   :  { %v807_v54 = vsel %vm806_vm12, %v794_v50, -inf }
 0x1b5   :  { %v296_v51 = vpop.f32.mrf.mxu0 }
 0x1b6   :  { %v3824_v56 = vadd.f32 %v296_v51, %v3791_v26 }
 0x1b8   :  { %v810_v58 = vsel %vm806_vm12, %v3824_v56, -inf }
 0x1bd   :  { %v3787_v16 = vpop.f32.mrf.mxu0 }
 0x1be   :  { %v3839_v4 = vadd.f32 %v3787_v16, %v3796_v31 }
 0x1c0   :  { %v813_v10 = vsel %vm806_vm12, %v3839_v4, -inf }
 0x1cd   :  { %v457_v17 = vpop.f32.mrf.mxu0 }
 0x1ce   :  { %v797_v44 = vadd.f32 %v457_v17, %v3801_v35 }
 0x1d0   :  { %v816_v48 = vsel %vm806_vm12, %v797_v44, -inf }
 0x1d5   :  { %v460_v18 = vpop.f32.mrf.mxu0 }
 0x1d6   :  { %v3806_v38 = vadd.f32 %v460_v18, %v3791_v26 }
 0x1d8   :  { %v819_v41 = vsel %vm806_vm12, %v3806_v38, -inf }
 0x1dd   :  { %v463_v21 = vpop.f32.mrf.mxu0 }
 0x1de   :  { %v3827_v57 = vadd.f32 %v463_v21, %v3796_v31 }
 0x1e0   :  { %v822_v59 = vsel %vm806_vm12, %v3827_v57, -inf }
 0x1ed   :  { %v621_v43 = vpop.f32.mrf.mxu0 }
 0x1ee   :  { %v800_v36 = vadd.f32 %v621_v43, %v3801_v35 }
 0x1f0   :  { %v825_v37 = vsel %vm806_vm12, %v800_v36, -inf }
 0x1f5   :  { %v624_v28 = vpop.f32.mrf.mxu0 }
 0x1f6   :  { %v801_v29 = vadd.f32 %v624_v28, %v3791_v26 }
 0x1f8   :  { %v828_v30 = vsel %vm806_vm12, %v801_v29, -inf }
 0x1f9   :  { %829 = vmax.xlane.f32.xlu2 %v828_v30 }
 0x1fd   :  { %v627_v32 = vpop.f32.mrf.mxu0 }
 0x1fe   :  { %v802_v33 = vadd.f32 %v627_v32, %v3796_v31 }
 0x200   :  { %v831_v34 = vsel %vm806_vm12, %v802_v33, -inf }
 0x201   :  { %832 = vmax.xlane.f32.xlu0 %v831_v34 }
 0x209   :  { %826 = vmax.xlane.f32.xlu0 %v825_v37 }
 0x20d   :  { %v785_v39 = vpop.f32.mrf.mxu0 }
 0x20e   :  { %v803_v40 = vadd.f32 %v785_v39, %v3801_v35 }
 0x210   :  { %v834_v42 = vsel %vm806_vm12, %v803_v40, -inf }
 0x211   :  { %820 = vmax.xlane.f32.xlu0 %v819_v41  ;;  %835 = vmax.xlane.f32.xlu1 %v834_v42 }
 0x215   :  { %v788_v45 = vpop.f32.mrf.mxu0 }
 0x216   :  { %v804_v47 = vadd.f32 %v788_v45, %v3791_v26 }
 0x218   :  { %v837_v49 = vsel %vm806_vm12, %v804_v47, -inf }
 0x219   :  { %817 = vmax.xlane.f32.xlu1 %v816_v48  ;;  %838 = vmax.xlane.f32.xlu2 %v837_v49 }
 0x21d   :  { %v791_v52 = vpop.f32.mrf.mxu0 }
 0x21e   :  { %v3818_v53 = vadd.f32 %v791_v52, %v3796_v31 }
 0x220   :  { %v840_v55 = vsel %vm806_vm12, %v3818_v53, -inf }
 0x221   :  { %808 = vmax.xlane.f32.xlu1 %v807_v54  ;;  %841 = vmax.xlane.f32.xlu0 %v840_v55 }
 0x229   :  { %811 = vmax.xlane.f32.xlu1 %v810_v58  ;;  %823 = vmax.xlane.f32.xlu0 %v822_v59 }
 0x26c   :  { %v830_v60 = vpop.xlane.xlu2 %829 }
 0x26d   :  { %v850_v61 = vsub.f32 %v801_v29, %v830_v60 }
 0x26f   :  { %v869_v62 = vmul.f32 1.442695, %v850_v61 }
 0x271   :  { %3410 = vpow2.f32 %v869_v62 }
 0x274   :  { %v833_v63 = vpop.xlane.xlu0 %832 }
 0x275   :  { %v851_v0 = vsub.f32 %v802_v33, %v833_v63 }
 0x277   :  { %v3833_v1 = vpop.eup %3410  ;;  %v871_v2 = vmul.f32 1.442695, %v851_v0 }
 0x278   :  { %v900_v3 = vsel %vm806_vm12, %v3833_v1, 0.0 }
 0x279   :  { %3412 = vpow2.f32 %v871_v2  ;;  %901 = vadd.xlane.f32.xlu0 %v900_v3 }
 0x27c   :  { %v827_v5 = vpop.xlane.xlu0 %826 }
 0x27d   :  { %v849_v6 = vsub.f32 %v800_v36, %v827_v5 }
 0x27f   :  { %v3841_v7 = vpop.eup %3412  ;;  %v867_v8 = vmul.f32 1.442695, %v849_v6 }
 0x280   :  { %v903_v9 = vsel %vm806_vm12, %v3841_v7, 0.0 }
 0x281   :  { %3414 = vpow2.f32 %v867_v8  ;;  %904 = vadd.xlane.f32.xlu2 %v903_v9  ;;  %814 = vmax.xlane.f32.xlu0 %v813_v10 }
 0x284   :  { %v836_v11 = vpop.xlane.xlu1 %835  ;;  %v821_v51 = vpop.xlane.xlu0 %820 }
 0x285   :  { %v852_v12 = vsub.f32 %v803_v40, %v836_v11  ;;  %v847_v46 = vsub.f32 %v3806_v38, %v821_v51 }
 0x287   :  { %v3847_v13 = vpop.eup %3414  ;;  %v873_v14 = vmul.f32 1.442695, %v852_v12  ;;  %v863_v25 = vmul.f32 1.442695, %v847_v46 }
 0x288   :  { %v897_v15 = vsel %vm806_vm12, %v3847_v13, 0.0 }
 0x289   :  { %898 = vadd.xlane.f32.xlu2 %v897_v15  ;;  %3416 = vpow2.f32 %v873_v14 }
 0x28c   :  { %v818_v16 = vpop.xlane.xlu1 %817  ;;  %v839_v17 = vpop.xlane.xlu2 %838 }
 0x28d   :  { %v846_v18 = vsub.f32 %v797_v44, %v818_v16  ;;  %v853_v19 = vsub.f32 %v804_v47, %v839_v17 }
 0x28f   :  { %v861_v20 = vmul.f32 1.442695, %v846_v18  ;;  %v875_v21 = vmul.f32 1.442695, %v853_v19  ;;  %v3852_v22 = vpop.eup %3416 }
 0x290   :  { %v906_v43 = vsel %vm806_vm12, %v3852_v22, 0.0 }
 0x291   :  { %3418 = vpow2.f32 %v861_v20  ;;  %907 = vadd.xlane.f32.xlu1 %v906_v43 }
 0x292   :  { %3420 = vpow2.f32 %v875_v21 }
 0x293   :  { %3422 = vpow2.f32 %v863_v25 }
 0x294   :  { %v809_v28 = vpop.xlane.xlu1 %808  ;;  %v842_v29 = vpop.xlane.xlu0 %841 }
 0x295   :  { %v843_v30 = vsub.f32 %v794_v50, %v809_v28  ;;  %v854_v34 = vsub.f32 %v3818_v53, %v842_v29 }
 0x297   :  { %v3856_v32 = vpop.eup %3418  ;;  %v855_v33 = vmul.f32 1.442695, %v843_v30  ;;  %v877_v39 = vmul.f32 1.442695, %v854_v34 }
 0x298   :  { %v3859_v36 = vpop.eup %3420  ;;  %v888_v37 = vsel %vm806_vm12, %v3856_v32, 0.0 }
 0x299   :  { %3424 = vpow2.f32 %v855_v33  ;;  %889 = vadd.xlane.f32.xlu2 %v888_v37  ;;  %v909_v38 = vsel %vm806_vm12, %v3859_v36, 0.0  ;;  %v3865_v42 = vpop.eup %3422 }
 0x29a   :  { %910 = vadd.xlane.f32.xlu1 %v909_v38  ;;  %3426 = vpow2.f32 %v877_v39  ;;  %v891_v50 = vsel %vm806_vm12, %v3865_v42, 0.0 }
 0x29c   :  { %v812_v40 = vpop.xlane.xlu1 %811  ;;  %v824_v41 = vpop.xlane.xlu0 %823 }
 0x29d   :  { %v844_v44 = vsub.f32 %v3824_v56, %v812_v40  ;;  %v848_v45 = vsub.f32 %v3827_v57, %v824_v41 }
 0x29f   :  { %v3869_v47 = vpop.eup %3424  ;;  %v857_v48 = vmul.f32 1.442695, %v844_v44  ;;  %v865_v49 = vmul.f32 1.442695, %v848_v45 }
 0x2a0   :  { %v879_v52 = vsel %vm806_vm12, %v3869_v47, 0.0  ;;  %v3875_v53 = vpop.eup %3426 }
 0x2a1   :  { %3428 = vpow2.f32 %v857_v48  ;;  %892 = vadd.xlane.f32.xlu2 %v891_v50  ;;  %v912_v57 = vsel %vm806_vm12, %v3875_v53, 0.0 }
 0x2a2   :  { %3430 = vpow2.f32 %v865_v49  ;;  %880 = vadd.xlane.f32.xlu1 %v879_v52 }
 0x2a7   :  { %v3877_v54 = vpop.eup %3428 }
 0x2a8   :  { %v3879_v55 = vpop.eup %3430  ;;  %v882_v56 = vsel %vm806_vm12, %v3877_v54, 0.0 }
 0x2a9   :  { %883 = vadd.xlane.f32.xlu0 %v882_v56  ;;  %913 = vadd.xlane.f32.xlu2 %v912_v57  ;;  %v894_v58 = vsel %vm806_vm12, %v3879_v55, 0.0 }
 0x2aa   :  { %895 = vadd.xlane.f32.xlu1 %v894_v58 }
 0x2ec   :  { %v902_v59 = vpop.xlane.xlu0 %901 }
 0x2f4   :  { %v905_v60 = vpop.xlane.xlu2 %904  ;;  %v815_v61 = vpop.xlane.xlu0 %814 }
 0x2f5   :  { %3432 = vrcp.f32 %v905_v60  ;;  %v845_v62 = vsub.f32 %v3839_v4, %v815_v61 }
 0x2f7   :  { %v859_v63 = vmul.f32 1.442695, %v845_v62 }
 0x2f9   :  { %3434 = vpow2.f32 %v859_v63 }
 0x2fb   :  { %v3433_v0 = vpop.eup %3432 }
 0x2fc   :  { %v935_v2 = vmul.f32 %v3433_v0, %v3841_v7  ;;  %v899_v3 = vpop.xlane.xlu2 %898 }
 0x2fd   :  { %3436 = vrcp.f32 %v899_v3 }
 0x2fe   :  { %2965 = vmatmul.msk.f32.vlgmr.msra.gmra.mxu3 %vm806_vm12, %v935_v2  ;;  %3438 = vrcp.f32 %v902_v59 }
 0x2ff   :  { %v3435_v5 = vpop.eup %3434 }
 0x300   :  { %v885_v6 = vsel %vm806_vm12, %v3435_v5, 0.0 }
 0x301   :  { %886 = vadd.xlane.f32.xlu2 %v885_v6 }
 0x303   :  { %v3437_v8 = vpop.eup %3436 }
 0x304   :  { %v933_v9 = vmul.f32 %v3437_v8, %v3847_v13  ;;  %v908_v10 = vpop.xlane.xlu1 %907  ;;  %v3439_v4 = vpop.eup %3438 }
 0x305   :  { %3440 = vrcp.f32 %v908_v10  ;;  %v934_v7 = vmul.f32 %v3439_v4, %v3833_v1 }
 0x306   :  { %2963 = vmatmul.msk.f32.vlgmr.msra.gmra.mxu2 %vm806_vm12, %v933_v9 }
 0x30b   :  { %v3441_v11 = vpop.eup %3440 }
 0x30c   :  { %v890_v12 = vpop.xlane.xlu2 %889  ;;  %v936_v14 = vmul.f32 %v3441_v11, %v3852_v22 }
 0x30d   :  { %v911_v15 = vpop.xlane.xlu1 %910  ;;  %3442 = vrcp.f32 %v890_v12 }
 0x30e   :  { %3444 = vrcp.f32 %v911_v15  ;;  %2964 = vmatmul.msk.f32.gmra.mxu2 %vm806_vm12, %v934_v7  ;;  %2966 = vmatmul.msk.f32.vlgmr.msrb.gmra.mxu3 %vm806_vm12, %v936_v14 }
 0x313   :  { %v3443_v51 = vpop.eup %3442 }
 0x314   :  { %v3445_v13 = vpop.eup %3444  ;;  %v930_v16 = vmul.f32 %v3443_v51, %v3856_v32  ;;  %v893_v17 = vpop.xlane.xlu2 %892 }
 0x315   :  { %v881_v18 = vpop.xlane.xlu1 %880  ;;  %3446 = vrcp.f32 %v893_v17  ;;  %v937_v19 = vmul.f32 %v3445_v13, %v3859_v36 }
 0x316   :  { %3448 = vrcp.f32 %v881_v18  ;;  %2960 = vmatmul.msk.f32.vlgmr.msrb.gmra.mxu1 %vm806_vm12, %v930_v16  ;;  %v3938_v18 = vld [vmem:[%s4449_s8] sm:$0x3f] }
 0x317   :  { %2967 = vmatmul.msk.f32.gmra.mxu3 %vm806_vm12, %v937_v19  ;;  %v1130_v19 = vperm.slane %v3938_v18, 0 }
 0x31b   :  { %v3447_v1 = vpop.eup %3446 }
 0x31c   :  { %v3449_v46 = vpop.eup %3448  ;;  %v914_v20 = vpop.xlane.xlu2 %913  ;;  %v931_v22 = vmul.f32 %v3447_v1, %v3865_v42 }
 0x31d   :  { %v884_v21 = vpop.xlane.xlu0 %883  ;;  %v927_v43 = vmul.f32 %v3449_v46, %v3869_v47  ;;  %3450 = vrcp.f32 %v914_v20  ;;  %v896_v25 = vpop.xlane.xlu1 %895 }
 0x31e   :  { %3452 = vrcp.f32 %v896_v25  ;;  %2961 = vmatmul.msk.f32.gmra.mxu1 %vm806_vm12, %v931_v22 }
 0x31f   :  { %3454 = vrcp.f32 %v884_v21  ;;  %2957 = vmatmul.msk.f32.vlgmr.msrb.gmra.mxu0 %vm806_vm12, %v927_v43 }
 0x323   :  { %v3451_v28 = vpop.eup %3450 }
 0x324   :  { %v3453_v29 = vpop.eup %3452  ;;  %v938_v30 = vmul.f32 %v3451_v28, %v3875_v53 }
 0x325   :  { %v3455_v32 = vpop.eup %3454  ;;  %v932_v33 = vmul.f32 %v3453_v29, %v3879_v55  ;;  %v3305_v55 = vld [vmem:[%s4448_s5] sm:$0xff] }
 0x326   :  { %v928_v34 = vmul.f32 %v3455_v32, %v3877_v54  ;;  %2968 = vmatmul.msk.f32.gmra.mxu3 %vm806_vm12, %v938_v30  ;;  %v3306_v54 = vld [vmem:[%s4448_s5 + $0x8] sm:$0xff] }
 0x327   :  { %2962 = vmatmul.msk.f32.gmra.mxu1 %vm806_vm12, %v932_v33  ;;  %1155 = vmatpush.bf16.msra.mxu0 %v3306_v54 }
 0x328   :  { %2958 = vmatmul.msk.f32.gmra.mxu0 %vm806_vm12, %v928_v34 }
 0x32b   :  { %1156 = vmatpush.bf16.msra.mxu0 %v3305_v55 }
 0x374   :  { %v887_v36 = vpop.xlane.xlu2 %886 }
 0x375   :  { %3456 = vrcp.f32 %v887_v36  ;;  %v3536_v36 = vmov 32.0  }
 0x376   :  { %3458 = vrcp.f32 %v3536_v36 }
 0x37b   :  { %v3457_v37 = vpop.eup %3456 }
 0x37c   :  { %v929_v38 = vmul.f32 %v3457_v37, %v3435_v5 }
 0x37e   :  { %2959 = vmatmul.msk.f32.gmra.mxu0 %vm806_vm12, %v929_v38 }
 0x381   :  { %v1041_v40 = vpop.f32.mrf.mxu3 }
 0x389   :  { %v1035_v39 = vpop.f32.mrf.mxu2 }
 0x391   :  { %v1038_v41 = vpop.f32.mrf.mxu2  ;;  %v1070_v44 = vpop.f32.mrf.mxu3 }
 0x392   :  { %v3359_v42 = vpack.i.bf16 %v1038_v41, %v1035_v39 }
 0x393   :  { %v1000_v45 = vpop.f32.mrf.mxu1 }
 0x394   :  { %3360 = vrot.lane.b32.xlu1 %v3359_v42, %s3533_s27 }
 0x39a   :  { %v1073_v47 = vpop.f32.mrf.mxu3 }
 0x39b   :  { %v3364_v48 = vpack.i.bf16 %v1073_v47, %v1070_v44  ;;  %v1003_v49 = vpop.f32.mrf.mxu1 }
 0x39c   :  { %v3354_v50 = vpack.i.bf16 %v1003_v49, %v1000_v45  ;;  %v965_v56 = vpop.f32.mrf.mxu0 }
 0x39d   :  { %3365 = vrot.lane.b32.xlu2 %v3364_v48, %s3534_s28 }
 0x39e   :  { %3355 = vrot.lane.b32.xlu0 %v3354_v50, %s3535_s1 }
 0x3a4   :  { %v1006_v52 = vpop.f32.mrf.mxu1 }
 0x3a5   :  { %1098 = vrot.lane.b32.xlu2 %v1041_v40, %s3533_s27  ;;  %v968_v62 = vpop.f32.mrf.mxu0 }
 0x3a6   :  { %1086 = vrot.lane.b32.xlu0 %v1006_v52, %s3535_s1 }
 0x3a9   :  { %v1076_v53 = vpop.f32.mrf.mxu3 }
 0x3aa   :  { %1110 = vrot.lane.b32.xlu1 %v1076_v53, %s3534_s28 }
 0x3f7   :  { %v3366_v58 = vpop.permute.xlu2 %3365 }
 0x3f8   :  { %v3368_v2 = vunpack.i.h.bf16 %v3366_v58  ;;  %v3367_v3 = vunpack.i.l.bf16 %v3366_v58 }
 0x3fb   :  { %v971_v7 = vpop.f32.mrf.mxu0 }
 0x3ff   :  { %v1099_v51 = vpop.permute.xlu2 %1098 }
 0x406   :  { %v3361_v57 = vpop.permute.xlu1 %3360 }
 0x407   :  { %v3363_v63 = vunpack.i.h.bf16 %v3361_v57  ;;  %v3362_v0 = vunpack.i.l.bf16 %v3361_v57 }
 0x410   :  { %v3356_v59 = vpop.permute.xlu0 %3355 }
 0x411   :  { %v3358_v60 = vunpack.i.h.bf16 %v3356_v59  ;;  %v3357_v61 = vunpack.i.l.bf16 %v3356_v59  ;;  %v3308_v59 = vld [vmem:[%s4451_s6 + $0x8] sm:$0xff] }
 0x412   :  { %1285 = vmatpush.bf16.msra.mxu1 %v3308_v59 }
 0x413   :  { %v1116_v5 = vsel %vm257_vm2, %v968_v62, %v3358_v60  ;;  %v1115_v6 = vsel %vm257_vm2, %v965_v56, %v3357_v61  ;;  %v3307_v62 = vld [vmem:[%s4451_s6] sm:$0xff] }
 0x414   :  { %v1119_v8 = vsel %vm58_vm0, %v1116_v5, %v3363_v63  ;;  %v1118_v9 = vsel %vm58_vm0, %v1115_v6, %v3362_v0 }
 0x415   :  { %v1122_v10 = vsel %vm806_vm12, %v1119_v8, %v3368_v2  ;;  %v1121_v4 = vsel %vm806_vm12, %v1118_v9, %v3367_v3 }
 0x416   :  { %v1124_v11 = vpack.c.bf16 %v1122_v10, %v1121_v4  ;;  %1286 = vmatpush.bf16.msra.mxu1 %v3307_v62 }
 0x418   :  { %2977 = vmatmul.msk.bf16.vlgmr.msra.gmra.mxu0 %vm152_vm1, %v1124_v11  ;;  %v1087_v12 = vpop.permute.xlu0 %1086 }
 0x419   :  { %v1117_v14 = vsel %vm257_vm2, %v971_v7, %v1087_v12 }
 0x41a   :  { %v1120_v13 = vsel %vm58_vm0, %v1117_v14, %v1099_v51 }
 0x41c   :  { %v1111_v15 = vpop.permute.xlu1 %1110 }
 0x41d   :  { %v1123_v16 = vsel %vm806_vm12, %v1120_v13, %v1111_v15 }
 0x41e   :  { %v1125_v17 = vpack.c.bf16 %v1123_v16, %v1123_v16 }
 0x428   :  { %2978 = vmatmul.msk.bf16.gmra.mxu0 %vm152_vm1, %v1125_v17 }
 0x495   :  { %v1158_v1 = vpop.f32.mrf.mxu0 }
 0x496   :  { %v1159_v46 = vadd.f32 %v1158_v1, %v1130_v19 }
 0x498   :  { %v1167_v20 = vadd.f32 %v1159_v46, %v3645_v23  ;;  %v3459_v23 = vpop.eup %3458 }
 0x499   :  { %v1180_v37 = vmul.f32 32.0, %v3459_v23  ;;  %vm1184_vm14 = vweird.f32 %v3459_v23 }
 0x49a   :  { %v1170_v21 = vsel %vm152_vm1, %v1167_v20, 0.0 }
 0x49b   :  { %1171 = vadd.xlane.f32.xlu0 %v1170_v21  ;;  %v1181_v38 = vsub.f32 1.0, %v1180_v37 }
 0x49d   :  { %v1160_v22 = vpop.f32.mrf.mxu0  ;;  %v1182_v39 = vmul.f32 %v3459_v23, %v1181_v38 }
 0x49e   :  { %v1161_v43 = vadd.f32 %v1160_v22, %v1130_v19 }
 0x49f   :  { %v1183_v40 = vadd.f32 %v3459_v23, %v1182_v39 }
 0x4a0   :  { %v1168_v25 = vadd.f32 %v1161_v43, %v3647_v24  ;;  %v1247_v43 = vperm.slane %v3938_v18, 2 }
 0x4a1   :  { %v3947_v24 = vsel %vm1184_vm14, %v3459_v23, %v1183_v40 }
 0x4a2   :  { %v1173_v28 = vsel %vm152_vm1, %v1168_v25, 0.0 }
 0x4a3   :  { %1174 = vadd.xlane.f32.xlu2 %v1173_v28 }
 0x4a5   :  { %v1163_v29 = vpop.f32.mrf.mxu0 }
 0x4a6   :  { %v1164_v30 = vadd.f32 %v1163_v29, %v1130_v19  ;;  %v1243_v19 = vperm.slane %v3938_v18, 1 }
 0x4a8   :  { %v1169_v32 = vadd.f32 %v1164_v30, %v3657_v27 }
 0x4aa   :  { %v1176_v33 = vsel %vm152_vm1, %v1169_v32, 0.0 }
 0x4ab   :  { %1177 = vadd.xlane.f32.xlu1 %v1176_v33 }
 0x4ad   :  { %v1165_v34 = vpop.f32.mrf.mxu0 }
 0x50e   :  { %v1172_v41 = vpop.xlane.xlu0 %1171 }
 0x50f   :  { %v1186_v42 = vmul.f32 %v3947_v24, %v1172_v41 }
 0x511   :  { %v1189_v44 = vsub.f32 %v1167_v20, %v1186_v42  ;;  %v3312_v42 = vld [vmem:[%s4452_s7 + $0x18] sm:$0xff] }
 0x512   :  { %1346 = vmatpush.bf16.msrb.mxu2 %v3312_v42 }
 0x513   :  { %v1192_v45 = vmul.f32 %v1189_v44, %v1189_v44 }
 0x515   :  { %v1195_v27 = vsel %vm152_vm1, %v1192_v45, 0.0  ;;  %v3310_v45 = vld [vmem:[%s4452_s7 + $0x8] sm:$0xff] }
 0x516   :  { %v1175_v47 = vpop.xlane.xlu2 %1174  ;;  %1196 = vadd.xlane.f32.xlu0 %v1195_v27  ;;  %v3309_v27 = vld [vmem:[%s4452_s7] sm:$0xff] }
 0x517   :  { %v1187_v48 = vmul.f32 %v3947_v24, %v1175_v47 }
 0x519   :  { %v1190_v49 = vsub.f32 %v1168_v25, %v1187_v48  ;;  %v3396_v48 = vld [vmem:[%s4450_s9] ss:$0 sm:$0xff] }
 0x51b   :  { %v1193_v50 = vmul.f32 %v1190_v49, %v1190_v49 }
 0x51d   :  { %v1198_v52 = vsel %vm152_vm1, %v1193_v50, 0.0 }
 0x51e   :  { %v1178_v53 = vpop.xlane.xlu1 %1177  ;;  %1199 = vadd.xlane.f32.xlu2 %v1198_v52 }
 0x51f   :  { %v1188_v54 = vmul.f32 %v3947_v24, %v1178_v53 }
 0x521   :  { %v1191_v55 = vsub.f32 %v1169_v32, %v1188_v54 }
 0x523   :  { %v1194_v56 = vmul.f32 %v1191_v55, %v1191_v55 }
 0x525   :  { %v1201_v57 = vsel %vm152_vm1, %v1194_v56, 0.0 }
 0x526   :  { %1202 = vadd.xlane.f32.xlu1 %v1201_v57 }
 0x589   :  { %v1197_v58 = vpop.xlane.xlu0 %1196 }
 0x58a   :  { %v1204_v60 = vmul.f32 %v1197_v58, %v3947_v24 }
 0x58c   :  { %v1207_v61 = vadd.f32 1e-05, %v1204_v60 }
 0x58e   :  { %3460 = vrsqrt.f32 %v1207_v61  ;;  %vm1216_vm3 = vweird.f32 %v1207_v61 }
 0x591   :  { %v1200_v63 = vpop.xlane.xlu2 %1199 }
 0x592   :  { %v1205_v0 = vmul.f32 %v1200_v63, %v3947_v24 }
 0x594   :  { %v3461_v2 = vpop.eup %3460  ;;  %v1208_v3 = vadd.f32 1e-05, %v1205_v0 }
 0x595   :  { %v1211_v5 = vmul.f32 %v3461_v2, %v1207_v61  ;;  %vm1217_vm15 = vweird.f32 %v3461_v2  ;;  %v1310_v61 = vperm.slane %v3938_v18, 3 }
 0x596   :  { %3462 = vrsqrt.f32 %v1208_v3  ;;  %vm1218_vm4 = vmor %vm1216_vm3, %vm1217_vm15  ;;  %vm1226_vm6 = vweird.f32 %v1208_v3 }
 0x597   :  { %v1212_v6 = vmul.f32 %v3461_v2, %v1211_v5 }
 0x599   :  { %v1213_v8 = vmul.f32 0.5, %v1212_v6  ;;  %v1203_v9 = vpop.xlane.xlu1 %1202 }
 0x59a   :  { %v1206_v10 = vmul.f32 %v1203_v9, %v3947_v24 }
 0x59b   :  { %v1214_v4 = vsub.f32 1.5, %v1213_v8 }
 0x59c   :  { %v3463_v11 = vpop.eup %3462  ;;  %v1209_v12 = vadd.f32 1e-05, %v1206_v10 }
 0x59d   :  { %v1215_v7 = vmul.f32 %v3461_v2, %v1214_v4  ;;  %v1221_v14 = vmul.f32 %v3463_v11, %v1208_v3  ;;  %vm1227_vm5 = vweird.f32 %v3463_v11 }
 0x59e   :  { %3464 = vrsqrt.f32 %v1209_v12  ;;  %vm1228_vm7 = vmor %vm1226_vm6, %vm1227_vm5  ;;  %vm1236_vm9 = vweird.f32 %v1209_v12 }
 0x59f   :  { %v1222_v15 = vmul.f32 %v3463_v11, %v1221_v14  ;;  %v1219_v51 = vsel %vm1218_vm4, %v3461_v2, %v1215_v7 }
 0x5a0   :  { %v1240_v1 = vmul.f32 %v1219_v51, %v1189_v44  ;;  %v3311_v44 = vld [vmem:[%s4452_s7 + $0x10] sm:$0xff] }
 0x5a1   :  { %v1223_v13 = vmul.f32 0.5, %v1222_v15  ;;  %1347 = vmatpush.bf16.msrb.mxu2 %v3311_v44 }
 0x5a2   :  { %v1244_v25 = vmul.f32 %v1243_v19, %v1240_v1 }
 0x5a3   :  { %v1224_v16 = vsub.f32 1.5, %v1223_v13 }
 0x5a4   :  { %v3465_v17 = vpop.eup %3464  ;;  %v1248_v33 = vadd.f32 %v1247_v43, %v1244_v25 }
 0x5a5   :  { %v1225_v46 = vmul.f32 %v3463_v11, %v1224_v16  ;;  %v1231_v20 = vmul.f32 %v3465_v17, %v1209_v12  ;;  %vm1237_vm8 = vweird.f32 %v3465_v17  ;;  %1348 = vmatpush.bf16.msrb.mxu2 %v3310_v45 }
 0x5a6   :  { %vm1238_vm10 = vmor %vm1236_vm9, %vm1237_vm8 }
 0x5a7   :  { %v1229_v21 = vsel %vm1228_vm7, %v3463_v11, %v1225_v46  ;;  %v1232_v22 = vmul.f32 %v3465_v17, %v1231_v20 }
 0x5a8   :  { %v1241_v28 = vmul.f32 %v1229_v21, %v1190_v49 }
 0x5a9   :  { %v1233_v29 = vmul.f32 0.5, %v1232_v22  ;;  %1349 = vmatpush.bf16.msrb.mxu2 %v3309_v27 }
 0x5aa   :  { %v1245_v30 = vmul.f32 %v1243_v19, %v1241_v28 }
 0x5ab   :  { %v1234_v32 = vsub.f32 1.5, %v1233_v29  ;;  %v3316_v29 = vld [vmem:[%s4445_s3 + $0x108] sm:$0xff] }
 0x5ac   :  { %v1249_v34 = vadd.f32 %v1247_v43, %v1245_v30  ;;  %v3314_v30 = vld [vmem:[%s4445_s3 + $0xc8] sm:$0xff]  ;;  %1515 = vmatpush.bf16.msrb.mxu0 %v3316_v29 }
 0x5ad   :  { %v1235_v36 = vmul.f32 %v3465_v17, %v1234_v32  ;;  %v3318_v32 = vld [vmem:[%s4445_s3 + $0x148] sm:$0xff]  ;;  %1475 = vmatpush.bf16.msra.mxu3 %v3314_v30 }
 0x5ae   :  { %v1251_v23 = vpack.c.bf16 %v1249_v34, %v1248_v33  ;;  %1555 = vmatpush.bf16.msrb.mxu1 %v3318_v32  ;;  %v3397_v32 = vld [vmem:[%s4446_s4 + $0x10] ss:$0 sm:$0xff] }
 0x5af   :  { %v1239_v37 = vsel %vm1238_vm10, %v3465_v17, %v1235_v36  ;;  %v3313_v36 = vld [vmem:[%s4445_s3 + $0xc0] sm:$0xff] }
 0x5b0   :  { %2987 = vmatmul.msk.bf16.vlgmr.msra.gmra.mxu1 %vm152_vm1, %v1251_v23  ;;  %v1242_v38 = vmul.f32 %v1239_v37, %v1191_v55  ;;  %v3315_v23 = vld [vmem:[%s4445_s3 + $0x100] sm:$0xff] }
 0x5b1   :  { %v3317_v37 = vld [vmem:[%s4445_s3 + $0x140] sm:$0xff]  ;;  %1476 = vmatpush.bf16.msra.mxu3 %v3313_v36  ;;  %1516 = vmatpush.bf16.msrb.mxu0 %v3315_v23 }
 0x5b2   :  { %v1246_v39 = vmul.f32 %v1243_v19, %v1242_v38  ;;  %1556 = vmatpush.bf16.msrb.mxu1 %v3317_v37 }
 0x5b4   :  { %v1250_v40 = vadd.f32 %v1247_v43, %v1246_v39 }
 0x5b6   :  { %v1252_v41 = vpack.c.bf16 %v1250_v40, %v1250_v40 }
 0x5c0   :  { %2988 = vmatmul.msk.bf16.gmra.mxu1 %vm152_vm1, %v1252_v41 }
 0x62d   :  { %v1288_v47 = vpop.f32.mrf.mxu1 }
 0x62e   :  { %v1289_v49 = vadd.f32 %v3396_v48, %v1288_v47 }
 0x630   :  { %v1297_v53 = vmax.f32 %v1289_v49, 0.0 }
 0x635   :  { %v1290_v50 = vpop.f32.mrf.mxu1 }
 0x636   :  { %v1291_v52 = vadd.f32 %v3396_v48, %v1290_v50 }
 0x638   :  { %v1298_v54 = vmax.f32 %v1291_v52, 0.0 }
 0x63a   :  { %v1300_v55 = vpack.c.bf16 %v1298_v54, %v1297_v53 }
 0x63c   :  { %3005 = vmatmul.msk.bf16.vlgmr.msrb.gmra.mxu2 %vm1335_vm11, %v1300_v55 }
 0x63d   :  { %v1293_v56 = vpop.f32.mrf.mxu1 }
 0x63e   :  { %v1294_v57 = vadd.f32 %v3396_v48, %v1293_v56 }
 0x640   :  { %v1299_v59 = vmax.f32 %v1294_v57, 0.0  ;;  %v3320_v57 = vld [vmem:[%s4445_s3 + $0xd8] sm:$0xff] }
 0x641   :  { %1639 = vmatpush.bf16.msrb.mxu3 %v3320_v57 }
 0x642   :  { %v1301_v60 = vpack.c.bf16 %v1299_v59, %v1299_v59 }
 0x645   :  { %v1295_v58 = vpop.f32.mrf.mxu1 }
 0x646   :  { %v3324_v58 = vld [vmem:[%s4445_s3 + $0x158] sm:$0xff] }
 0x647   :  { %1719 = vmatpush.bf16.msra.mxu0 %v3324_v58  ;;  %v3330_v58 = vld [vmem:[%s4445_s3 + $0x168] sm:$0xff] }
 0x64c   :  { %3006 = vmatmul.msk.bf16.gmra.mxu2 %vm1335_vm11, %v1301_v60  ;;  %v3319_v60 = vld [vmem:[%s4445_s3 + $0xd0] sm:$0xff] }
 0x64d   :  { %1640 = vmatpush.bf16.msrb.mxu3 %v3319_v60  ;;  %v3329_v60 = vld [vmem:[%s4445_s3 + $0x160] sm:$0xff] }
 0x6bf   :  { %v1351_v62 = vpop.f32.mrf.mxu2 }
 0x6c0   :  { %v1352_v63 = vadd.f32 %v1351_v62, %v1310_v61 }
 0x6c2   :  { %v1360_v0 = vadd.f32 %v1352_v63, %v1248_v33  ;;  %v1429_v63 = vperm.slane %v3938_v18, 4 }
 0x6c4   :  { %v1363_v2 = vsel %vm152_vm1, %v1360_v0, 0.0 }
 0x6c5   :  { %1364 = vadd.xlane.f32.xlu0 %v1363_v2 }
 0x6c7   :  { %v1353_v3 = vpop.f32.mrf.mxu2 }
 0x6c8   :  { %v1354_v5 = vadd.f32 %v1353_v3, %v1310_v61 }
 0x6ca   :  { %v1361_v6 = vadd.f32 %v1354_v5, %v1249_v34 }
 0x6cc   :  { %v1366_v8 = vsel %vm152_vm1, %v1361_v6, 0.0 }
 0x6cd   :  { %1367 = vadd.xlane.f32.xlu2 %v1366_v8  ;;  %v1433_v8 = vperm.slane %v3938_v18, 5 }
 0x6cf   :  { %v1356_v9 = vpop.f32.mrf.mxu2 }
 0x6d0   :  { %v1357_v10 = vadd.f32 %v1356_v9, %v1310_v61  ;;  %v3323_v61 = vld [vmem:[%s4445_s3 + $0x150] sm:$0xff] }
 0x6d1   :  { %1720 = vmatpush.bf16.msra.mxu0 %v3323_v61 }
 0x6d2   :  { %v1362_v4 = vadd.f32 %v1357_v10, %v1250_v40 }
 0x6d4   :  { %v1369_v11 = vsel %vm152_vm1, %v1362_v4, 0.0 }
 0x6d5   :  { %1370 = vadd.xlane.f32.xlu1 %v1369_v11 }
 0x6d7   :  { %v1358_v12 = vpop.f32.mrf.mxu2 }
 0x738   :  { %v1365_v7 = vpop.xlane.xlu0 %1364 }
 0x739   :  { %v1372_v14 = vmul.f32 %v1365_v7, %v3947_v24 }
 0x73b   :  { %v3990_v15 = vsub.f32 %v1360_v0, %v1372_v14 }
 0x73d   :  { %v1378_v51 = vmul.f32 %v3990_v15, %v3990_v15 }
 0x73f   :  { %v1381_v13 = vsel %vm152_vm1, %v1378_v51, 0.0 }
 0x740   :  { %v1368_v16 = vpop.xlane.xlu2 %1367  ;;  %1382 = vadd.xlane.f32.xlu0 %v1381_v13 }
 0x741   :  { %v1373_v17 = vmul.f32 %v1368_v16, %v3947_v24 }
 0x743   :  { %v3996_v19 = vsub.f32 %v1361_v6, %v1373_v17 }
 0x745   :  { %v1379_v1 = vmul.f32 %v3996_v19, %v3996_v19 }
 0x747   :  { %v1384_v46 = vsel %vm152_vm1, %v1379_v1, 0.0  ;;  %v3326_v1 = vld [vmem:[%s4445_s3 + $0xe8] sm:$0xff] }
 0x748   :  { %v1371_v20 = vpop.xlane.xlu1 %1370  ;;  %1385 = vadd.xlane.f32.xlu2 %v1384_v46  ;;  %v3325_v46 = vld [vmem:[%s4445_s3 + $0xe0] sm:$0xff] }
 0x749   :  { %v1374_v21 = vmul.f32 %v1371_v20, %v3947_v24  ;;  %v3332_v20 = vld [vmem:[%s4445_s3 + $0xf8] sm:$0xff] }
 0x74b   :  { %v4002_v22 = vsub.f32 %v1362_v4, %v1374_v21  ;;  %v3331_v21 = vld [vmem:[%s4445_s3 + $0xf0] sm:$0xff] }
 0x74d   :  { %v1380_v43 = vmul.f32 %v4002_v22, %v4002_v22 }
 0x74f   :  { %v1387_v25 = vsel %vm152_vm1, %v1380_v43, 0.0 }
 0x750   :  { %1388 = vadd.xlane.f32.xlu1 %v1387_v25 }
 0x7b3   :  { %v1383_v28 = vpop.xlane.xlu0 %1382 }
 0x7b4   :  { %v1390_v33 = vmul.f32 %v1383_v28, %v3947_v24 }
 0x7b6   :  { %v1393_v34 = vadd.f32 1e-05, %v1390_v33  ;;  %v3398_v33 = vld [vmem:[%s4446_s4 + $0x14] ss:$0 sm:$0xff] }
 0x7b8   :  { %3466 = vrsqrt.f32 %v1393_v34  ;;  %vm1402_vm14 = vweird.f32 %v1393_v34 }
 0x7bb   :  { %v1386_v38 = vpop.xlane.xlu2 %1385 }
 0x7bc   :  { %v1391_v39 = vmul.f32 %v1386_v38, %v3947_v24 }
 0x7be   :  { %v3467_v40 = vpop.eup %3466  ;;  %v1394_v41 = vadd.f32 1e-05, %v1391_v39 }
 0x7bf   :  { %v1397_v42 = vmul.f32 %v3467_v40, %v1393_v34  ;;  %vm1403_vm13 = vweird.f32 %v3467_v40 }
 0x7c0   :  { %3468 = vrsqrt.f32 %v1394_v41  ;;  %vm1404_vm15 = vmor %vm1402_vm14, %vm1403_vm13  ;;  %vm1412_vm4 = vweird.f32 %v1394_v41 }
 0x7c1   :  { %v1398_v44 = vmul.f32 %v3467_v40, %v1397_v42  ;;  %v3399_v42 = vld [vmem:[%s4446_s4 + $0xc] ss:$0 sm:$0xff] }
 0x7c3   :  { %v1399_v45 = vmul.f32 0.5, %v1398_v44  ;;  %v1389_v27 = vpop.xlane.xlu1 %1388 }
 0x7c4   :  { %v1392_v47 = vmul.f32 %v1389_v27, %v3947_v24 }
 0x7c5   :  { %v1400_v48 = vsub.f32 1.5, %v1399_v45  ;;  %v3322_v45 = vld [vmem:[%s4445_s3 + $0x118] sm:$0xff] }
 0x7c6   :  { %v3469_v49 = vpop.eup %3468  ;;  %v1395_v50 = vadd.f32 1e-05, %v1392_v47 }
 0x7c7   :  { %v1401_v52 = vmul.f32 %v3467_v40, %v1400_v48  ;;  %v1407_v53 = vmul.f32 %v3469_v49, %v1394_v41  ;;  %vm1413_vm3 = vweird.f32 %v3469_v49 }
 0x7c8   :  { %3470 = vrsqrt.f32 %v1395_v50  ;;  %vm1414_vm5 = vmor %vm1412_vm4, %vm1413_vm3  ;;  %vm1422_vm7 = vweird.f32 %v1395_v50 }
 0x7c9   :  { %v1408_v54 = vmul.f32 %v3469_v49, %v1407_v53  ;;  %v1405_v55 = vsel %vm1404_vm15, %v3467_v40, %v1401_v52 }
 0x7ca   :  { %v1426_v0 = vmul.f32 %v1405_v55, %v3990_v15 }
 0x7cb   :  { %v1409_v56 = vmul.f32 0.5, %v1408_v54 }
 0x7cc   :  { %v1430_v9 = vmul.f32 %v1429_v63, %v1426_v0 }
 0x7cd   :  { %v1410_v59 = vsub.f32 1.5, %v1409_v56 }
 0x7ce   :  { %v3471_v62 = vpop.eup %3470  ;;  %v4044_v7 = vadd.f32 %v1433_v8, %v1430_v9 }
 0x7cf   :  { %v1411_v2 = vmul.f32 %v3469_v49, %v1410_v59  ;;  %v1417_v3 = vmul.f32 %v3471_v62, %v1395_v50  ;;  %vm1423_vm6 = vweird.f32 %v3471_v62 }
 0x7d0   :  { %vm1424_vm8 = vmor %vm1422_vm7, %vm1423_vm6 }
 0x7d1   :  { %v1415_v5 = vsel %vm1414_vm5, %v3469_v49, %v1411_v2  ;;  %v1418_v6 = vmul.f32 %v3471_v62, %v1417_v3  ;;  %v3321_v49 = vld [vmem:[%s4445_s3 + $0x110] sm:$0xff] }
 0x7d2   :  { %v1427_v10 = vmul.f32 %v1415_v5, %v3996_v19 }
 0x7d3   :  { %v1419_v4 = vmul.f32 0.5, %v1418_v6 }
 0x7d4   :  { %v1431_v11 = vmul.f32 %v1429_v63, %v1427_v10 }
 0x7d5   :  { %v1420_v12 = vsub.f32 1.5, %v1419_v4 }
 0x7d6   :  { %v4046_v14 = vadd.f32 %v1433_v8, %v1431_v11 }
 0x7d7   :  { %v1421_v15 = vmul.f32 %v3471_v62, %v1420_v12 }
 0x7d8   :  { %v4050_v51 = vpack.c.bf16 %v4046_v14, %v4044_v7 }
 0x7d9   :  { %v1425_v13 = vsel %vm1424_vm8, %v3471_v62, %v1421_v15 }
 0x7da   :  { %3021 = vmatmul.msk.bf16.vlgmr.msra.gmra.mxu3 %vm152_vm1, %v4050_v51  ;;  %3036 = vmatmul.msk.bf16.vlgmr.msrb.gmra.mxu0 %vm152_vm1, %v4050_v51  ;;  %v1428_v18 = vmul.f32 %v1425_v13, %v4002_v22 }
 0x7db   :  { %3051 = vmatmul.msk.bf16.vlgmr.msrb.gmra.mxu1 %vm152_vm1, %v4050_v51  ;;  %1803 = vmatpush.bf16.msra.mxu3 %v3326_v1 }
 0x7dc   :  { %v1432_v16 = vmul.f32 %v1429_v63, %v1428_v18  ;;  %v3404_v18 = vld [vmem:[%s4446_s4 + $0x11] ss:$0 sm:$0xff] }
 0x7de   :  { %v4059_v17 = vadd.f32 %v1433_v8, %v1432_v16 }
 0x7df   :  { %1804 = vmatpush.bf16.msra.mxu3 %v3325_v46 }
 0x7e0   :  { %v4063_v19 = vpack.c.bf16 %v4059_v17, %v4059_v17 }
 0x7ea   :  { %3022 = vmatmul.msk.bf16.gmra.mxu3 %vm152_vm1, %v4063_v19  ;;  %3037 = vmatmul.msk.bf16.gmra.mxu0 %vm152_vm1, %v4063_v19 }
 0x7eb   :  { %3052 = vmatmul.msk.bf16.gmra.mxu1 %vm152_vm1, %v4063_v19 }
 0x7fa   :  { %3072 = vmatmul.msk.bf16.vlgmr.msrb.gmra.mxu3 %vm152_vm1, %v4050_v51  ;;  %3102 = vmatmul.msk.bf16.vlgmr.msra.gmra.mxu0 %vm152_vm1, %v4050_v51 }
 0x7fb   :  { %1967 = vmatpush.bf16.msrb.mxu3 %v3332_v20  ;;  %v3401_v20 = vld [vmem:[%s4446_s4 + $0xd] ss:$0 sm:$0xff] }
 0x7ff   :  { %1968 = vmatpush.bf16.msrb.mxu3 %v3331_v21 }
 0x80a   :  { %3073 = vmatmul.msk.bf16.gmra.mxu3 %vm152_vm1, %v4063_v19  ;;  %3103 = vmatmul.msk.bf16.gmra.mxu0 %vm152_vm1, %v4063_v19 }
 0x81a   :  { %3123 = vmatmul.msk.bf16.vlgmr.msra.gmra.mxu3 %vm152_vm1, %v4050_v51 }
 0x82a   :  { %3124 = vmatmul.msk.bf16.gmra.mxu3 %vm152_vm1, %v4063_v19 }
 0x83a   :  { %3174 = vmatmul.msk.bf16.vlgmr.msrb.gmra.mxu3 %vm152_vm1, %v4050_v51 }
 0x84a   :  { %3175 = vmatmul.msk.bf16.gmra.mxu3 %vm152_vm1, %v4063_v19 }
 0x857   :  { %v1518_v22 = vpop.f32.mrf.mxu0 }
 0x858   :  { %v1558_v43 = vpop.f32.mrf.mxu1  ;;  %v1519_v27 = vadd.f32 %v3397_v32, %v1518_v22  ;;  %v3328_v22 = vld [vmem:[%s4445_s3 + $0x128] sm:$0xff] }
 0x859   :  { %v1559_v40 = vadd.f32 %v3398_v33, %v1558_v43 }
 0x85d   :  { %v1478_v25 = vpop.f32.mrf.mxu3 }
 0x85e   :  { %v1479_v48 = vadd.f32 %v3399_v42, %v1478_v25 }
 0x85f   :  { %v1520_v28 = vpop.f32.mrf.mxu0 }
 0x860   :  { %v1560_v29 = vpop.f32.mrf.mxu1  ;;  %v1521_v39 = vadd.f32 %v3397_v32, %v1520_v28  ;;  %v3327_v28 = vld [vmem:[%s4445_s3 + $0x120] sm:$0xff] }
 0x861   :  { %v1561_v38 = vadd.f32 %v3398_v33, %v1560_v29 }
 0x865   :  { %v1480_v30 = vpop.f32.mrf.mxu3 }
 0x866   :  { %v1481_v53 = vadd.f32 %v3399_v42, %v1480_v30 }
 0x867   :  { %v1523_v34 = vpop.f32.mrf.mxu0 }
 0x868   :  { %v1524_v36 = vadd.f32 %v3397_v32, %v1523_v34  ;;  %v1563_v23 = vpop.f32.mrf.mxu1  ;;  %v3336_v32 = vld [vmem:[%s4445_s3 + $0x178] sm:$0xff]  ;;  %v3335_v34 = vld [vmem:[%s4445_s3 + $0x170] sm:$0xff] }
 0x869   :  { %v1564_v37 = vadd.f32 %v3398_v33, %v1563_v23 }
 0x86a   :  { %3053 = vmatpush.xpose.msk.msra.mxu2 %vm257_vm2, %v1524_v36 }
 0x86b   :  { %2269 = vmatpush.msra.mxu3 %v1564_v37 }
 0x86d   :  { %2270 = vmatpush.msra.mxu3 %v1561_v38  ;;  %v1483_v41 = vpop.f32.mrf.mxu3 }
 0x86e   :  { %3054 = vmatpush.xpose.msk.msra.mxu2 %vm257_vm2, %v1521_v39  ;;  %v1484_v56 = vadd.f32 %v3399_v42, %v1483_v41 }
 0x86f   :  { %2271 = vmatpush.msra.mxu3 %v1559_v40  ;;  %v1525_v44 = vpop.f32.mrf.mxu0 }
 0x870   :  { %v1565_v47 = vpop.f32.mrf.mxu1 }
 0x872   :  { %3055 = vmatpush.xpose.msk.msra.mxu2 %vm257_vm2, %v1519_v27 }
 0x875   :  { %v1485_v50 = vpop.f32.mrf.mxu3  ;;  %3056 = vmatmul.msk.f32.vlgmr.msra.gmra.mxu2 %vm257_vm2, %v1479_v48  ;;  %v3406_v48 = vld [vmem:[%s4446_s4 + $0x12] ss:$0 sm:$0xff] }
 0x876   :  { %1679 = vmatpush.bf16.msrb.mxu2 %v3322_v45 }
 0x877   :  { %v4118_v52 = vpop.f32.mrf.mxu0 }
 0x87a   :  { %1680 = vmatpush.bf16.msrb.mxu2 %v3321_v49 }
 0x87d   :  { %3057 = vmatmul.msk.f32.gmra.mxu2 %vm257_vm2, %v1481_v53  ;;  %v1642_v54 = vpop.f32.mrf.mxu3 }
 0x87e   :  { %1883 = vmatpush.bf16.msra.mxu2 %v3330_v58  ;;  %v1643_v25 = vadd.f32 %v3401_v20, %v1642_v54  ;;  %v3402_v54 = vld [vmem:[%s4446_s4 + $0xe] ss:$0 sm:$0xff] }
 0x87f   :  { %v4121_v55 = vpop.f32.mrf.mxu0 }
 0x882   :  { %1884 = vmatpush.bf16.msra.mxu2 %v3329_v60 }
 0x885   :  { %3058 = vmatmul.msk.f32.gmra.mxu2 %vm257_vm2, %v1484_v56  ;;  %v1644_v57 = vpop.f32.mrf.mxu3 }
 0x886   :  { %v1645_v30 = vadd.f32 %v3401_v20, %v1644_v57  ;;  %v3334_v57 = vld [vmem:[%s4445_s3 + $0x138] sm:$0xff] }
 0x887   :  { %v4127_v59 = vpop.f32.mrf.mxu0 }
 0x88d   :  { %v1647_v61 = vpop.f32.mrf.mxu3  ;;  %3087 = vmatmul.msk.bf16.vlgmr.msrb.gmra.mxu2 %vm152_vm1, %v4050_v51 }
 0x88e   :  { %v1648_v36 = vadd.f32 %v3401_v20, %v1647_v61  ;;  %v3333_v61 = vld [vmem:[%s4445_s3 + $0x130] sm:$0xff] }
 0x88f   :  { %v1729_v62 = vpop.f32.mrf.mxu0 }
 0x890   :  { %v3405_v62 = vld [vmem:[%s4446_s4 + $0x16] ss:$0 sm:$0xff] }
 0x895   :  { %v1649_v63 = vpop.f32.mrf.mxu3 }
 0x89d   :  { %3088 = vmatmul.msk.bf16.gmra.mxu2 %vm152_vm1, %v4063_v19  ;;  %v4136_v0 = vpop.f32.mrf.mxu3 }
 0x89e   :  { %v1807_v60 = vadd.f32 %v3402_v54, %v4136_v0 }
 0x8a5   :  { %v4138_v2 = vpop.f32.mrf.mxu3 }
 0x8a6   :  { %v1809_v0 = vadd.f32 %v3402_v54, %v4138_v2 }
 0x8ad   :  { %v4140_v3 = vpop.f32.mrf.mxu3  ;;  %3153 = vmatmul.msk.bf16.vlgmr.msra.gmra.mxu2 %vm152_vm1, %v4050_v51 }
 0x8b5   :  { %v1813_v5 = vpop.f32.mrf.mxu3 }
 0x8bd   :  { %3154 = vmatmul.msk.bf16.gmra.mxu2 %vm152_vm1, %v4063_v19  ;;  %v4146_v6 = vpop.f32.mrf.mxu3 }
 0x8c5   :  { %v4148_v8 = vpop.f32.mrf.mxu3 }
 0x8cd   :  { %v4150_v9 = vpop.f32.mrf.mxu3 }
 0x8d5   :  { %v1977_v10 = vpop.f32.mrf.mxu3 }
 0x8f8   :  { %v4152_v4 = vpop.f32.mrf.mxu2 }
 0x900   :  { %v4154_v11 = vpop.f32.mrf.mxu2 }
 0x908   :  { %v4156_v12 = vpop.f32.mrf.mxu2 }
 0x910   :  { %v1682_v15 = vpop.f32.mrf.mxu2 }
 0x911   :  { %v1683_v43 = vadd.f32 %v3404_v18, %v1682_v15 }
 0x918   :  { %v1684_v13 = vpop.f32.mrf.mxu2 }
 0x919   :  { %v1685_v46 = vadd.f32 %v3404_v18, %v1684_v13 }
 0x920   :  { %v1687_v16 = vpop.f32.mrf.mxu2 }
 0x921   :  { %v1688_v1 = vadd.f32 %v3404_v18, %v1687_v16  ;;  %v1812_v18 = vadd.f32 %v3402_v54, %v4140_v3  ;;  %v3407_v16 = vld [vmem:[%s4446_s4 + $0x17] ss:$0 sm:$0xff] }
 0x923   :  { %3104 = vmatpush.xpose.msk.msra.mxu1 %vm257_vm2, %v1688_v1 }
 0x927   :  { %3105 = vmatpush.xpose.msk.msra.mxu1 %vm257_vm2, %v1685_v46 }
 0x928   :  { %v1689_v21 = vpop.f32.mrf.mxu2 }
 0x92b   :  { %3106 = vmatpush.xpose.msk.msra.mxu1 %vm257_vm2, %v1683_v43 }
 0x92e   :  { %3107 = vmatmul.msk.f32.vlgmr.msra.gmra.mxu1 %vm257_vm2, %v1643_v25 }
 0x92f   :  { %1843 = vmatpush.bf16.msrb.mxu1 %v3328_v22 }
 0x930   :  { %v1886_v29 = vpop.f32.mrf.mxu2 }
 0x931   :  { %v1887_v15 = vadd.f32 %v3405_v62, %v1886_v29 }
 0x933   :  { %1844 = vmatpush.bf16.msrb.mxu1 %v3327_v28 }
 0x936   :  { %3108 = vmatmul.msk.f32.gmra.mxu1 %vm257_vm2, %v1645_v30 }
 0x937   :  { %2047 = vmatpush.bf16.msra.mxu1 %v3336_v32 }
 0x938   :  { %v1888_v33 = vpop.f32.mrf.mxu2 }
 0x939   :  { %v1889_v10 = vadd.f32 %v3405_v62, %v1888_v33 }
 0x93b   :  { %2048 = vmatpush.bf16.msra.mxu1 %v3335_v34  ;;  %v3408_v34 = vld [vmem:[%s4446_s4 + $0x13] ss:$0 sm:$0xff] }
 0x93e   :  { %3109 = vmatmul.msk.f32.gmra.mxu1 %vm257_vm2, %v1648_v36 }
 0x940   :  { %v1891_v23 = vpop.f32.mrf.mxu2 }
 0x941   :  { %v1892_v63 = vadd.f32 %v3405_v62, %v1891_v23 }
 0x946   :  { %3138 = vmatmul.msk.bf16.vlgmr.msrb.gmra.mxu1 %vm152_vm1, %v4050_v51 }
 0x948   :  { %v1893_v37 = vpop.f32.mrf.mxu2 }
 0x956   :  { %3139 = vmatmul.msk.bf16.gmra.mxu1 %vm152_vm1, %v4063_v19 }
 0x966   :  { %3204 = vmatmul.msk.bf16.vlgmr.msra.gmra.mxu1 %vm152_vm1, %v4050_v51 }
 0x976   :  { %3205 = vmatmul.msk.bf16.gmra.mxu1 %vm152_vm1, %v4063_v19 }
 0x9ab   :  { %v1766_v38 = vpop.f32.mrf.mxu1 }
 0x9ac   :  { %v4191_v39 = vadd.f32 %v1766_v38, %v3801_v35  ;;  %v3400_v38 = vld [vmem:[%s4446_s4 + $0x15] ss:$0 sm:$0xff] }
 0x9ae   :  { %v2124_v40 = vsel %vm806_vm12, %v4191_v39, -inf }
 0x9af   :  { %2125 = vmax.xlane.f32.xlu0 %v2124_v40  ;;  %v3403_v40 = vld [vmem:[%s4446_s4 + $0xf] ss:$0 sm:$0xff] }
 0x9b3   :  { %v1769_v41 = vpop.f32.mrf.mxu1 }
 0x9b4   :  { %v4196_v42 = vadd.f32 %v1769_v41, %v3791_v26 }
 0x9b6   :  { %v2127_v44 = vsel %vm806_vm12, %v4196_v42, -inf }
 0x9b7   :  { %2128 = vmax.xlane.f32.xlu1 %v2127_v44 }
 0x9bb   :  { %v1772_v45 = vpop.f32.mrf.mxu1 }
 0x9c3   :  { %v1846_v27 = vpop.f32.mrf.mxu1 }
 0x9c4   :  { %v1847_v58 = vadd.f32 %v3406_v48, %v1846_v27  ;;  %v1971_v27 = vadd.f32 %v3403_v40, %v4146_v6 }
 0x9cb   :  { %v1848_v47 = vpop.f32.mrf.mxu1 }
 0x9cc   :  { %v1849_v53 = vadd.f32 %v3406_v48, %v1848_v47  ;;  %v1725_v47 = vadd.f32 %v3400_v38, %v4121_v55 }
 0x9d3   :  { %v1851_v49 = vpop.f32.mrf.mxu1 }
 0x9d4   :  { %v1852_v50 = vadd.f32 %v3406_v48, %v1851_v49  ;;  %v1723_v48 = vadd.f32 %v3400_v38, %v4118_v52  ;;  %v1973_v49 = vadd.f32 %v3403_v40, %v4148_v8  ;;  %v2103_v52 = vadd.f32 %v4152_v4, %v3801_v35 }
 0x9d6   :  { %3155 = vmatpush.xpose.msk.msrb.mxu0 %vm257_vm2, %v1852_v50  ;;  %v1976_v50 = vadd.f32 %v3403_v40, %v4150_v9  ;;  %v4304_v40 = vadd.f32 %v4156_v12, %v3796_v31 }
 0x9da   :  { %3156 = vmatpush.xpose.msk.msrb.mxu0 %vm257_vm2, %v1849_v53 }
 0x9db   :  { %v1853_v56 = vpop.f32.mrf.mxu1 }
 0x9de   :  { %3157 = vmatpush.xpose.msk.msrb.mxu0 %vm257_vm2, %v1847_v58 }
 0x9e1   :  { %3158 = vmatmul.msk.f32.vlgmr.msrb.gmra.mxu0 %vm257_vm2, %v1807_v60 }
 0x9e2   :  { %2007 = vmatpush.bf16.msra.mxu0 %v3334_v57 }
 0x9e3   :  { %v2050_v5 = vpop.f32.mrf.mxu1 }
 0x9e4   :  { %v2051_v21 = vadd.f32 %v3407_v16, %v2050_v5 }
 0x9e6   :  { %2008 = vmatpush.bf16.msra.mxu0 %v3333_v61  ;;  %v2115_v61 = vsel %vm806_vm12, %v2103_v52, -inf }
 0x9e9   :  { %3159 = vmatmul.msk.f32.gmra.mxu0 %vm257_vm2, %v1809_v0 }
 0x9ea   :  { %2339 = vmatpush.msrb.mxu0 %v1892_v63 }
 0x9eb   :  { %v2052_v13 = vpop.f32.mrf.mxu1 }
 0x9ec   :  { %2340 = vmatpush.msrb.mxu0 %v1889_v10  ;;  %v2053_v20 = vadd.f32 %v3407_v16, %v2052_v13 }
 0x9ee   :  { %2341 = vmatpush.msrb.mxu0 %v1887_v15 }
 0x9f1   :  { %3160 = vmatmul.msk.f32.gmra.mxu0 %vm257_vm2, %v1812_v18 }
 0x9f3   :  { %v2055_v1 = vpop.f32.mrf.mxu1 }
 0x9f4   :  { %v2056_v46 = vadd.f32 %v3407_v16, %v2055_v1 }
 0x9f6   :  { %2374 = vmatpush.msrb.mxu1 %v2056_v46 }
 0x9f8   :  { %2375 = vmatpush.msrb.mxu1 %v2053_v20 }
 0x9f9   :  { %3189 = vmatmul.msk.bf16.vlgmr.msra.gmra.mxu0 %vm152_vm1, %v4050_v51  ;;  %v4239_v51 = vadd.f32 %v1772_v45, %v3796_v31  ;;  %v1728_v45 = vadd.f32 %v3400_v38, %v4127_v59 }
 0x9fa   :  { %2376 = vmatpush.msrb.mxu1 %v2051_v21 }
 0x9fb   :  { %v2057_v2 = vpop.f32.mrf.mxu1 }
 0xa09   :  { %3190 = vmatmul.msk.bf16.gmra.mxu0 %vm152_vm1, %v4063_v19  ;;  %v2130_v19 = vsel %vm806_vm12, %v4239_v51, -inf }
 0xa22   :  { %v2126_v54 = vpop.xlane.xlu0 %2125 }
 0xa23   :  { %v2154_v8 = vsub.f32 %v4191_v39, %v2126_v54 }
 0xa25   :  { %v2169_v63 = vmul.f32 1.442695, %v2154_v8 }
 0xa27   :  { %3472 = vpow2.f32 %v2169_v63 }
 0xa2a   :  { %v2129_v56 = vpop.xlane.xlu1 %2128 }
 0xa2b   :  { %v2155_v60 = vsub.f32 %v4196_v42, %v2129_v56 }
 0xa2d   :  { %v2171_v4 = vmul.f32 1.442695, %v2155_v60 }
 0xa5e   :  { %v1930_v3 = vpop.f32.mrf.mxu0 }
 0xa5f   :  { %v2109_v22 = vadd.f32 %v1930_v3, %v3801_v35 }
 0xa61   :  { %v2133_v43 = vsel %vm806_vm12, %v2109_v22, -inf }
 0xa62   :  { %2134 = vmax.xlane.f32.xlu2 %v2133_v43 }
 0xa66   :  { %v1933_v25 = vpop.f32.mrf.mxu0 }
 0xa67   :  { %v4234_v28 = vadd.f32 %v1933_v25, %v3791_v26 }
 0xa69   :  { %v2136_v29 = vsel %vm806_vm12, %v4234_v28, -inf }
 0xa6a   :  { %2137 = vmax.xlane.f32.xlu2 %v2136_v29 }
 0xa6e   :  { %v1936_v30 = vpop.f32.mrf.mxu0 }
 0xa6f   :  { %v2111_v10 = vadd.f32 %v1936_v30, %v3796_v31 }
 0xa71   :  { %v2139_v13 = vsel %vm806_vm12, %v2111_v10, -inf }
 0xa72   :  { %2131 = vmax.xlane.f32.xlu2 %v2130_v19 }
 0xa76   :  { %v2010_v32 = vpop.f32.mrf.mxu0 }
 0xa77   :  { %v2011_v44 = vadd.f32 %v3408_v34, %v2010_v32 }
 0xa7e   :  { %v2012_v33 = vpop.f32.mrf.mxu0 }
 0xa7f   :  { %v2013_v37 = vadd.f32 %v3408_v34, %v2012_v33 }
 0xa86   :  { %v2015_v36 = vpop.f32.mrf.mxu0 }
 0xa87   :  { %v2016_v23 = vadd.f32 %v3408_v34, %v2015_v36 }
 0xa89   :  { %3206 = vmatpush.xpose.msk.msrb.mxu2 %vm257_vm2, %v2016_v23 }
 0xa8d   :  { %3207 = vmatpush.xpose.msk.msrb.mxu2 %vm257_vm2, %v2013_v37 }
 0xa8e   :  { %v2017_v41 = vpop.f32.mrf.mxu0 }
 0xa91   :  { %3208 = vmatpush.xpose.msk.msrb.mxu2 %vm257_vm2, %v2011_v44 }
 0xa94   :  { %3209 = vmatmul.msk.f32.vlgmr.msrb.gmra.mxu2 %vm257_vm2, %v1971_v27 }
 0xa95   :  { %2304 = vmatpush.msra.mxu2 %v1728_v45 }
 0xa97   :  { %2305 = vmatpush.msra.mxu2 %v1725_v47 }
 0xa99   :  { %2306 = vmatpush.msra.mxu2 %v1723_v48 }
 0xa9c   :  { %3210 = vmatmul.msk.f32.gmra.mxu2 %vm257_vm2, %v1973_v49 }
 0xaa4   :  { %3211 = vmatmul.msk.f32.gmra.mxu2 %vm257_vm2, %v1976_v50 }
 0xad5   :  { %v2135_v55 = vpop.xlane.xlu2 %2134 }
 0xad6   :  { %v2157_v9 = vsub.f32 %v2109_v22, %v2135_v55 }
 0xad8   :  { %v2175_v5 = vmul.f32 1.442695, %v2157_v9 }
 0xada   :  { %3474 = vpow2.f32 %v2175_v5 }
 0xadb   :  { %3476 = vpow2.f32 %v2171_v4 }
 0xadd   :  { %v2138_v39 = vpop.xlane.xlu2 %2137 }
 0xade   :  { %v2158_v42 = vsub.f32 %v4234_v28, %v2138_v39 }
 0xae5   :  { %v2132_v19 = vpop.xlane.xlu2 %2131 }
 0xae6   :  { %v2156_v37 = vsub.f32 %v4239_v51, %v2132_v19 }
 0xae8   :  { %v2173_v41 = vmul.f32 1.442695, %v2156_v37 }
 0xb17   :  { %v2094_v59 = vpop.f32.mrf.mxu2 }
 0xb18   :  { %v2112_v6 = vadd.f32 %v2094_v59, %v3801_v35  ;;  %v2104_v35 = vadd.f32 %v4154_v11, %v3791_v26  ;;  %v4281_v11 = vpop.eup %3472 }
 0xb19   :  { %v4283_v1 = vpop.eup %3474  ;;  %v2196_v21 = vsel %vm806_vm12, %v4281_v11, 0.0 }
 0xb1a   :  { %v2142_v53 = vsel %vm806_vm12, %v2112_v6, -inf  ;;  %v2118_v18 = vsel %vm806_vm12, %v2104_v35, -inf  ;;  %v4285_v46 = vpop.eup %3476  ;;  %v2205_v20 = vsel %vm806_vm12, %v4283_v1, 0.0 }
 0xb1b   :  { %2143 = vmax.xlane.f32.xlu0 %v2142_v53  ;;  %v2199_v2 = vsel %vm806_vm12, %v4285_v46, 0.0 }
 0xb1f   :  { %v2097_v57 = vpop.f32.mrf.mxu2 }
 0xb20   :  { %v2113_v58 = vadd.f32 %v2097_v57, %v3791_v26  ;;  %v2177_v26 = vmul.f32 1.442695, %v2158_v42 }
 0xb22   :  { %v2145_v62 = vsel %vm806_vm12, %v2113_v58, -inf  ;;  %3478 = vpow2.f32 %v2177_v26 }
 0xb23   :  { %2116 = vmax.xlane.f32.xlu0 %v2115_v61  ;;  %2146 = vmax.xlane.f32.xlu1 %v2145_v62 }
 0xb27   :  { %v2100_v15 = vpop.f32.mrf.mxu2 }
 0xb28   :  { %v2114_v0 = vadd.f32 %v2100_v15, %v3796_v31  ;;  %v4293_v3 = vpop.eup %3478  ;;  %v2121_v31 = vsel %vm806_vm12, %v4304_v40, -inf }
 0xb29   :  { %v2208_v22 = vsel %vm806_vm12, %v4293_v3, 0.0 }
 0xb2a   :  { %v2148_v16 = vsel %vm806_vm12, %v2114_v0, -inf }
 0xb2b   :  { %2140 = vmax.xlane.f32.xlu0 %v2139_v13  ;;  %2119 = vmax.xlane.f32.xlu1 %v2118_v18 }
 0xb2c   :  { %2149 = vmax.xlane.f32.xlu2 %v2148_v16 }
 0xb33   :  { %2206 = vadd.xlane.f32.xlu0 %v2205_v20  ;;  %2197 = vadd.xlane.f32.xlu1 %v2196_v21 }
 0xb34   :  { %2200 = vadd.xlane.f32.xlu2 %v2199_v2 }
 0xb3b   :  { %2209 = vadd.xlane.f32.xlu0 %v2208_v22 }
 0xb8e   :  { %v2144_v43 = vpop.xlane.xlu0 %2143 }
 0xb8f   :  { %v2160_v25 = vsub.f32 %v2112_v6, %v2144_v43 }
 0xb91   :  { %v2181_v28 = vmul.f32 1.442695, %v2160_v25 }
 0xb93   :  { %3480 = vpow2.f32 %v2181_v28 }
 0xb96   :  { %v2117_v29 = vpop.xlane.xlu0 %2116  ;;  %v2147_v30 = vpop.xlane.xlu1 %2146 }
 0xb97   :  { %v2151_v32 = vsub.f32 %v2103_v52, %v2117_v29  ;;  %v2161_v33 = vsub.f32 %v2113_v58, %v2147_v30 }
 0xb99   :  { %v4297_v34 = vpop.eup %3480  ;;  %v2163_v36 = vmul.f32 1.442695, %v2151_v32  ;;  %v2183_v23 = vmul.f32 1.442695, %v2161_v33 }
 0xb9a   :  { %v2214_v38 = vsel %vm806_vm12, %v4297_v34, 0.0 }
 0xb9b   :  { %3482 = vpow2.f32 %v2163_v36  ;;  %2215 = vadd.xlane.f32.xlu1 %v2214_v38 }
 0xb9c   :  { %3484 = vpow2.f32 %v2183_v23 }
 0xb9d   :  { %3486 = vpow2.f32 %v2173_v41 }
 0xb9e   :  { %v2141_v44 = vpop.xlane.xlu0 %2140  ;;  %v2120_v45 = vpop.xlane.xlu1 %2119 }
 0xb9f   :  { %v2159_v27 = vsub.f32 %v2111_v10, %v2141_v44  ;;  %v2152_v47 = vsub.f32 %v2104_v35, %v2120_v45  ;;  %v2150_v48 = vpop.xlane.xlu2 %2149 }
 0xba0   :  { %v2162_v6 = vsub.f32 %v2114_v0, %v2150_v48 }
 0xba1   :  { %v4306_v49 = vpop.eup %3482  ;;  %v2179_v50 = vmul.f32 1.442695, %v2159_v27  ;;  %v2165_v51 = vmul.f32 1.442695, %v2152_v47 }
 0xba2   :  { %v4308_v59 = vpop.eup %3484  ;;  %v2187_v53 = vsel %vm806_vm12, %v4306_v49, 0.0  ;;  %v2185_v55 = vmul.f32 1.442695, %v2162_v6 }
 0xba3   :  { %3488 = vpow2.f32 %v2179_v50  ;;  %2188 = vadd.xlane.f32.xlu0 %v2187_v53  ;;  %2122 = vmax.xlane.f32.xlu1 %v2121_v31  ;;  %v2217_v12 = vsel %vm806_vm12, %v4308_v59, 0.0  ;;  %v4316_v56 = vpop.eup %3486 }
 0xba4   :  { %3490 = vpow2.f32 %v2165_v51  ;;  %2218 = vadd.xlane.f32.xlu2 %v2217_v12  ;;  %v2202_v61 = vsel %vm806_vm12, %v4316_v56, 0.0 }
 0xba6   :  { %v2207_v54 = vpop.xlane.xlu0 %2206  ;;  %v2198_v52 = vpop.xlane.xlu1 %2197 }
 0xba7   :  { %3492 = vrcp.f32 %v2207_v54  ;;  %v2201_v9 = vpop.xlane.xlu2 %2200 }
 0xba8   :  { %3494 = vrcp.f32 %v2198_v52  ;;  %v3338_v52 = vld [vmem:[%s4448_s5 + $0x18] sm:$0xff] }
 0xba9   :  { %v3489_v57 = vpop.eup %3488  ;;  %3496 = vpow2.f32 %v2185_v55  ;;  %2464 = vmatpush.bf16.msrb.mxu3 %v3338_v52 }
 0xbaa   :  { %v3491_v8 = vpop.eup %3490  ;;  %v2211_v58 = vsel %vm806_vm12, %v3489_v57, 0.0  ;;  %3498 = vrcp.f32 %v2201_v9 }
 0xbab   :  { %2212 = vadd.xlane.f32.xlu0 %v2211_v58  ;;  %v2190_v60 = vsel %vm806_vm12, %v3491_v8, 0.0 }
 0xbac   :  { %2191 = vadd.xlane.f32.xlu1 %v2190_v60  ;;  %2203 = vadd.xlane.f32.xlu2 %v2202_v61 }
 0xbad   :  { %v3493_v62 = vpop.eup %3492 }
 0xbae   :  { %v3495_v63 = vpop.eup %3494  ;;  %v2241_v5 = vmul.f32 %v3493_v62, %v4283_v1  ;;  %v2210_v35 = vpop.xlane.xlu0 %2209 }
 0xbaf   :  { %v2238_v4 = vmul.f32 %v3495_v63, %v4281_v11  ;;  %3500 = vrcp.f32 %v2210_v35  ;;  %v3497_v10 = vpop.eup %3496 }
 0xbb0   :  { %3218 = vmatmul.msk.f32.vlgmr.msrb.gmra.mxu0 %vm806_vm12, %v2241_v5  ;;  %v2220_v39 = vsel %vm806_vm12, %v3497_v10, 0.0  ;;  %v3499_v15 = vpop.eup %3498 }
 0xbb1   :  { %3215 = vmatmul.msk.f32.vlgmr.msra.gmra.mxu2 %vm806_vm12, %v2238_v4  ;;  %v2239_v13 = vmul.f32 %v3499_v15, %v4285_v46 }
 0xbb4   :  { %2221 = vadd.xlane.f32.xlu2 %v2220_v39 }
 0xbb5   :  { %v3501_v0 = vpop.eup %3500 }
 0xbb6   :  { %v2242_v42 = vmul.f32 %v3501_v0, %v4293_v3 }
 0xbb8   :  { %3219 = vmatmul.msk.f32.gmra.mxu0 %vm806_vm12, %v2242_v42 }
 0xbb9   :  { %3216 = vmatmul.msk.f32.gmra.mxu2 %vm806_vm12, %v2239_v13 }
 0xc0e   :  { %v2216_v18 = vpop.xlane.xlu1 %2215 }
 0xc0f   :  { %3502 = vrcp.f32 %v2216_v18 }
 0xc15   :  { %v3503_v16 = vpop.eup %3502 }
 0xc16   :  { %v2244_v26 = vmul.f32 %v3503_v16, %v4297_v34  ;;  %v2189_v11 = vpop.xlane.xlu0 %2188  ;;  %v2123_v1 = vpop.xlane.xlu1 %2122 }
 0xc17   :  { %3504 = vrcp.f32 %v2189_v11  ;;  %v2153_v20 = vsub.f32 %v4304_v40, %v2123_v1  ;;  %v2219_v21 = vpop.xlane.xlu2 %2218 }
 0xc18   :  { %3506 = vrcp.f32 %v2219_v21  ;;  %3221 = vmatmul.msk.f32.vlgmr.msrb.gmra.mxu1 %vm806_vm12, %v2244_v26 }
 0xc19   :  { %v2167_v2 = vmul.f32 1.442695, %v2153_v20 }
 0xc1b   :  { %3508 = vpow2.f32 %v2167_v2 }
 0xc1d   :  { %v3505_v46 = vpop.eup %3504 }
 0xc1e   :  { %v3507_v3 = vpop.eup %3506  ;;  %v2235_v22 = vmul.f32 %v3505_v46, %v4306_v49  ;;  %v2213_v43 = vpop.xlane.xlu0 %2212 }
 0xc1f   :  { %3510 = vrcp.f32 %v2213_v43  ;;  %v2192_v25 = vpop.xlane.xlu1 %2191  ;;  %v2204_v28 = vpop.xlane.xlu2 %2203  ;;  %v2245_v29 = vmul.f32 %v3507_v3, %v4308_v59  ;;  %v4371_v3 = vld [vmem:[%s4449_s8 + $0x8] sm:$0x3f] }
 0xc20   :  { %3512 = vrcp.f32 %v2192_v25  ;;  %3212 = vmatmul.msk.f32.vlgmr.msra.gmra.mxu3 %vm806_vm12, %v2235_v22  ;;  %v2439_v22 = vperm.slane %v4371_v3, 0 }
 0xc21   :  { %v3509_v30 = vpop.eup %3508  ;;  %3514 = vrcp.f32 %v2204_v28  ;;  %3222 = vmatmul.msk.f32.gmra.mxu1 %vm806_vm12, %v2245_v29 }
 0xc22   :  { %v2193_v19 = vsel %vm806_vm12, %v3509_v30, 0.0 }
 0xc23   :  { %2194 = vadd.xlane.f32.xlu1 %v2193_v19 }
 0xc25   :  { %v3511_v32 = vpop.eup %3510 }
 0xc26   :  { %v3513_v33 = vpop.eup %3512  ;;  %v2243_v34 = vmul.f32 %v3511_v32, %v3489_v57 }
 0xc27   :  { %v3515_v36 = vpop.eup %3514  ;;  %v2222_v23 = vpop.xlane.xlu2 %2221  ;;  %v2236_v37 = vmul.f32 %v3513_v33, %v3491_v8 }
 0xc28   :  { %3516 = vrcp.f32 %v2222_v23  ;;  %v2240_v38 = vmul.f32 %v3515_v36, %v4316_v56  ;;  %3220 = vmatmul.msk.f32.gmra.mxu0 %vm806_vm12, %v2243_v34  ;;  %v3337_v56 = vld [vmem:[%s4448_s5 + $0x10] sm:$0xff] }
 0xc29   :  { %3213 = vmatmul.msk.f32.gmra.mxu3 %vm806_vm12, %v2236_v37 }
 0xc2a   :  { %3217 = vmatmul.msk.f32.gmra.mxu2 %vm806_vm12, %v2240_v38  ;;  %2465 = vmatpush.bf16.msrb.mxu3 %v3337_v56 }
 0xc2d   :  { %v2343_v40 = vpop.f32.mrf.mxu0 }
 0xc2e   :  { %v3517_v41 = vpop.eup %3516 }
 0xc2f   :  { %v2246_v44 = vmul.f32 %v3517_v41, %v3497_v10 }
 0xc31   :  { %3223 = vmatmul.msk.f32.gmra.mxu1 %vm806_vm12, %v2246_v44 }
 0xc34   :  { %v2308_v45 = vpop.f32.mrf.mxu2 }
 0xc35   :  { %v2346_v27 = vpop.f32.mrf.mxu0 }
 0xc36   :  { %v3374_v47 = vpack.i.bf16 %v2346_v27, %v2343_v40 }
 0xc38   :  { %3375 = vrot.lane.b32.xlu2 %v3374_v47, %s3533_s27 }
 0xc3c   :  { %v2311_v48 = vpop.f32.mrf.mxu2 }
 0xc3d   :  { %v3369_v49 = vpack.i.bf16 %v2311_v48, %v2308_v45 }
 0xc3f   :  { %3370 = vrot.lane.b32.xlu0 %v3369_v49, %s3535_s1 }
 0xc92   :  { %v3376_v60 = vpop.permute.xlu2 %3375 }
 0xc93   :  { %v3378_v5 = vunpack.i.h.bf16 %v3376_v60  ;;  %v3377_v35 = vunpack.i.l.bf16 %v3376_v60 }
 0xc95   :  { %v2378_v50 = vpop.f32.mrf.mxu1 }
 0xc96   :  { %v2195_v51 = vpop.xlane.xlu1 %2194 }
 0xc97   :  { %3518 = vrcp.f32 %v2195_v51 }
 0xc9d   :  { %v3519_v59 = vpop.eup %3518 }
 0xc9e   :  { %v2381_v6 = vpop.f32.mrf.mxu1  ;;  %v2237_v53 = vmul.f32 %v3519_v59, %v3509_v30 }
 0xc9f   :  { %v3379_v31 = vpack.i.bf16 %v2381_v6, %v2378_v50 }
 0xca0   :  { %3214 = vmatmul.msk.f32.gmra.mxu3 %vm806_vm12, %v2237_v53  ;;  %v3340_v53 = vld [vmem:[%s4451_s6 + $0x18] sm:$0xff] }
 0xca1   :  { %3380 = vrot.lane.b32.xlu1 %v3379_v31, %s3534_s28  ;;  %2589 = vmatpush.bf16.msrb.mxu2 %v3340_v53  ;;  %v2615_v53 = vperm.slane %v4371_v3, 3 }
 0xca3   :  { %v2273_v57 = vpop.f32.mrf.mxu3 }
 0xca5   :  { %v2349_v12 = vpop.f32.mrf.mxu0 }
 0xca6   :  { %2406 = vrot.lane.b32.xlu2 %v2349_v12, %s3533_s27 }
 0xcac   :  { %v2276_v61 = vpop.f32.mrf.mxu3 }
 0xcad   :  { %v2314_v55 = vpop.f32.mrf.mxu2 }
 0xcae   :  { %2394 = vrot.lane.b32.xlu0 %v2314_v55, %s3535_s1  ;;  %v2384_v54 = vpop.f32.mrf.mxu1 }
 0xcb1   :  { %v3371_v8 = vpop.permute.xlu0 %3370 }
 0xcb2   :  { %v3373_v58 = vunpack.i.h.bf16 %v3371_v8  ;;  %v3372_v9 = vunpack.i.l.bf16 %v3371_v8 }
 0xcb4   :  { %v2424_v62 = vsel %vm257_vm2, %v2276_v61, %v3373_v58  ;;  %v2423_v63 = vsel %vm257_vm2, %v2273_v57, %v3372_v9 }
 0xcb5   :  { %v2426_v15 = vsel %vm58_vm0, %v2423_v63, %v3377_v35  ;;  %v2427_v0 = vsel %vm58_vm0, %v2424_v62, %v3378_v5 }
 0xcb6   :  { %2418 = vrot.lane.b32.xlu0 %v2384_v54, %s3534_s28  ;;  %v3339_v54 = vld [vmem:[%s4451_s6 + $0x10] sm:$0xff] }
 0xcb7   :  { %2590 = vmatpush.bf16.msrb.mxu2 %v3339_v54 }
 0xd00   :  { %v2407_v1 = vpop.permute.xlu2 %2406 }
 0xd13   :  { %v3381_v4 = vpop.permute.xlu1 %3380 }
 0xd14   :  { %v3383_v10 = vunpack.i.h.bf16 %v3381_v4  ;;  %v3382_v39 = vunpack.i.l.bf16 %v3381_v4 }
 0xd16   :  { %v2429_v42 = vsel %vm806_vm12, %v2426_v15, %v3382_v39  ;;  %v2430_v13 = vsel %vm806_vm12, %v2427_v0, %v3383_v10 }
 0xd17   :  { %v2432_v18 = vpack.c.bf16 %v2430_v13, %v2429_v42  ;;  %v2545_v13 = vperm.slane %v4371_v3, 1 }
 0xd19   :  { %3236 = vmatmul.msk.bf16.vlgmr.msrb.gmra.mxu3 %vm152_vm1, %v2432_v18 }
 0xd20   :  { %v2395_v16 = vpop.permute.xlu0 %2394 }
 0xd23   :  { %v2279_v26 = vpop.f32.mrf.mxu3 }
 0xd24   :  { %v2425_v11 = vsel %vm257_vm2, %v2279_v26, %v2395_v16 }
 0xd25   :  { %v2428_v20 = vsel %vm58_vm0, %v2425_v11, %v2407_v1  ;;  %v2549_v1 = vperm.slane %v4371_v3, 2 }
 0xd28   :  { %v2419_v21 = vpop.permute.xlu0 %2418 }
 0xd29   :  { %v2431_v2 = vsel %vm806_vm12, %v2428_v20, %v2419_v21 }
 0xd2a   :  { %v2433_v46 = vpack.c.bf16 %v2431_v2, %v2431_v2 }
 0xd2c   :  { %3237 = vmatmul.msk.bf16.gmra.mxu3 %vm152_vm1, %v2433_v46 }
 0xd9c   :  { %v2467_v43 = vpop.f32.mrf.mxu3 }
 0xd9d   :  { %v2468_v25 = vadd.f32 %v2467_v43, %v2439_v22 }
 0xd9f   :  { %v2476_v28 = vadd.f32 %v2468_v25, %v4044_v7 }
 0xda1   :  { %v2479_v29 = vsel %vm152_vm1, %v2476_v28, 0.0 }
 0xda2   :  { %2480 = vadd.xlane.f32.xlu1 %v2479_v29 }
 0xda4   :  { %v2469_v30 = vpop.f32.mrf.mxu3 }
 0xda5   :  { %v2470_v19 = vadd.f32 %v2469_v30, %v2439_v22 }
 0xda7   :  { %v2477_v32 = vadd.f32 %v2470_v19, %v4046_v14 }
 0xda9   :  { %v2482_v33 = vsel %vm152_vm1, %v2477_v32, 0.0 }
 0xdaa   :  { %2483 = vadd.xlane.f32.xlu2 %v2482_v33 }
 0xdaf   :  { %v2472_v34 = vpop.f32.mrf.mxu3 }
 0xdb0   :  { %v2473_v36 = vadd.f32 %v2472_v34, %v2439_v22 }
 0xdb2   :  { %v2478_v23 = vadd.f32 %v2473_v36, %v4059_v17 }
 0xdb4   :  { %v2485_v37 = vsel %vm152_vm1, %v2478_v23, 0.0 }
 0xdb5   :  { %2486 = vadd.xlane.f32.xlu0 %v2485_v37  ;;  %v3344_v37 = vld [vmem:[%s4452_s7 + $0x38] sm:$0xff] }
 0xdb6   :  { %2650 = vmatpush.bf16.msra.mxu0 %v3344_v37 }
 0xdb7   :  { %v2474_v38 = vpop.f32.mrf.mxu3 }
 0xdb8   :  { %v3343_v38 = vld [vmem:[%s4452_s7 + $0x30] sm:$0xff] }
 0xdba   :  { %2651 = vmatpush.bf16.msra.mxu0 %v3343_v38  ;;  %v2733_v38 = vperm.slane %v4371_v3, 4 }
 0xe15   :  { %v2481_v40 = vpop.xlane.xlu1 %2480 }
 0xe16   :  { %v2488_v7 = vmul.f32 %v2481_v40, %v3947_v24  ;;  %v3342_v40 = vld [vmem:[%s4452_s7 + $0x28] sm:$0xff] }
 0xe17   :  { %2652 = vmatpush.bf16.msra.mxu0 %v3342_v40 }
 0xe18   :  { %v2491_v41 = vsub.f32 %v2476_v28, %v2488_v7  ;;  %v3341_v7 = vld [vmem:[%s4452_s7 + $0x20] sm:$0xff] }
 0xe1a   :  { %v2494_v44 = vmul.f32 %v2491_v41, %v2491_v41 }
 0xe1b   :  { %2653 = vmatpush.bf16.msra.mxu0 %v3341_v7 }
 0xe1c   :  { %v2497_v45 = vsel %vm152_vm1, %v2494_v44, 0.0  ;;  %v3409_v44 = vld [vmem:[%s4450_s9 + $0x1] ss:$0 sm:$0xff] }
 0xe1d   :  { %v2484_v27 = vpop.xlane.xlu2 %2483  ;;  %2498 = vadd.xlane.f32.xlu1 %v2497_v45 }
 0xe1e   :  { %v2489_v14 = vmul.f32 %v2484_v27, %v3947_v24 }
 0xe20   :  { %v2492_v47 = vsub.f32 %v2477_v32, %v2489_v14 }
 0xe22   :  { %v2495_v48 = vmul.f32 %v2492_v47, %v2492_v47 }
 0xe24   :  { %v2500_v49 = vsel %vm152_vm1, %v2495_v48, 0.0 }
 0xe25   :  { %2501 = vadd.xlane.f32.xlu2 %v2500_v49 }
 0xe28   :  { %v2487_v17 = vpop.xlane.xlu0 %2486 }
 0xe29   :  { %v2490_v50 = vmul.f32 %v2487_v17, %v3947_v24 }
 0xe2b   :  { %v2493_v51 = vsub.f32 %v2478_v23, %v2490_v50 }
 0xe2d   :  { %v2496_v59 = vmul.f32 %v2493_v51, %v2493_v51 }
 0xe2f   :  { %v2503_v6 = vsel %vm152_vm1, %v2496_v59, 0.0 }
 0xe30   :  { %2504 = vadd.xlane.f32.xlu0 %v2503_v6 }
 0xe90   :  { %v2499_v31 = vpop.xlane.xlu1 %2498 }
 0xe91   :  { %v2506_v12 = vmul.f32 %v2499_v31, %v3947_v24 }
 0xe93   :  { %v2509_v55 = vadd.f32 1e-05, %v2506_v12 }
 0xe95   :  { %3520 = vrsqrt.f32 %v2509_v55  ;;  %vm2518_vm2 = vweird.f32 %v2509_v55 }
 0xe98   :  { %v2502_v52 = vpop.xlane.xlu2 %2501 }
 0xe99   :  { %v2507_v56 = vmul.f32 %v2502_v52, %v3947_v24 }
 0xe9b   :  { %v3521_v57 = vpop.eup %3520  ;;  %v2510_v8 = vadd.f32 1e-05, %v2507_v56 }
 0xe9c   :  { %v2513_v58 = vmul.f32 %v3521_v57, %v2509_v55  ;;  %vm2519_vm0 = vweird.f32 %v3521_v57 }
 0xe9d   :  { %3522 = vrsqrt.f32 %v2510_v8  ;;  %vm2520_vm12 = vmor %vm2518_vm2, %vm2519_vm0  ;;  %vm2528_vm10 = vweird.f32 %v2510_v8 }
 0xe9e   :  { %v2514_v9 = vmul.f32 %v3521_v57, %v2513_v58 }
 0xea0   :  { %v2515_v60 = vmul.f32 0.5, %v2514_v9 }
 0xea2   :  { %v2516_v61 = vsub.f32 1.5, %v2515_v60 }
 0xea3   :  { %v3523_v62 = vpop.eup %3522  ;;  %v2505_v63 = vpop.xlane.xlu0 %2504 }
 0xea4   :  { %v2517_v5 = vmul.f32 %v3521_v57, %v2516_v61  ;;  %v2523_v35 = vmul.f32 %v3523_v62, %v2510_v8  ;;  %v2508_v4 = vmul.f32 %v2505_v63, %v3947_v24  ;;  %vm2529_vm9 = vweird.f32 %v3523_v62 }
 0xea5   :  { %vm2530_vm13 = vmor %vm2528_vm10, %vm2529_vm9 }
 0xea6   :  { %v2524_v10 = vmul.f32 %v3523_v62, %v2523_v35  ;;  %v2511_v39 = vadd.f32 1e-05, %v2508_v4  ;;  %v2521_v15 = vsel %vm2520_vm12, %v3521_v57, %v2517_v5 }
 0xea7   :  { %v2542_v18 = vmul.f32 %v2521_v15, %v2491_v41 }
 0xea8   :  { %v2525_v0 = vmul.f32 0.5, %v2524_v10  ;;  %3524 = vrsqrt.f32 %v2511_v39  ;;  %vm2538_vm15 = vweird.f32 %v2511_v39 }
 0xea9   :  { %v2546_v20 = vmul.f32 %v2545_v13, %v2542_v18 }
 0xeaa   :  { %v2526_v42 = vsub.f32 1.5, %v2525_v0 }
 0xeab   :  { %v2550_v43 = vadd.f32 %v2549_v1, %v2546_v20 }
 0xeac   :  { %v2527_v16 = vmul.f32 %v3523_v62, %v2526_v42 }
 0xeae   :  { %v3525_v26 = vpop.eup %3524  ;;  %v2531_v11 = vsel %vm2530_vm13, %v3523_v62, %v2527_v16 }
 0xeaf   :  { %v2543_v21 = vmul.f32 %v2531_v11, %v2492_v47  ;;  %v2533_v2 = vmul.f32 %v3525_v26, %v2511_v39  ;;  %vm2539_vm14 = vweird.f32 %v3525_v26 }
 0xeb0   :  { %vm2540_vm3 = vmor %vm2538_vm15, %vm2539_vm14 }
 0xeb1   :  { %v2547_v46 = vmul.f32 %v2545_v13, %v2543_v21  ;;  %v2534_v22 = vmul.f32 %v3525_v26, %v2533_v2 }
 0xeb3   :  { %v2551_v25 = vadd.f32 %v2549_v1, %v2547_v46  ;;  %v2535_v28 = vmul.f32 0.5, %v2534_v22 }
 0xeb5   :  { %v2553_v29 = vpack.c.bf16 %v2551_v25, %v2550_v43  ;;  %v2536_v30 = vsub.f32 1.5, %v2535_v28 }
 0xeb7   :  { %v2537_v19 = vmul.f32 %v3525_v26, %v2536_v30  ;;  %3251 = vmatmul.msk.bf16.vlgmr.msrb.gmra.mxu2 %vm152_vm1, %v2553_v29 }
 0xeb9   :  { %v2541_v32 = vsel %vm2540_vm3, %v3525_v26, %v2537_v19 }
 0xeba   :  { %v2544_v33 = vmul.f32 %v2541_v32, %v2493_v51 }
 0xebc   :  { %v2548_v34 = vmul.f32 %v2545_v13, %v2544_v33 }
 0xebe   :  { %v2552_v36 = vadd.f32 %v2549_v1, %v2548_v34 }
 0xec0   :  { %v2554_v23 = vpack.c.bf16 %v2552_v36, %v2552_v36 }
 0xec7   :  { %3252 = vmatmul.msk.bf16.gmra.mxu2 %vm152_vm1, %v2554_v23 }
 0xf3a   :  { %v2592_v41 = vpop.f32.mrf.mxu2 }
 0xf3b   :  { %v2593_v45 = vadd.f32 %v3409_v44, %v2592_v41  ;;  %v2737_v41 = vperm.slane %v4371_v3, 5 }
 0xf3d   :  { %v2601_v47 = vmax.f32 %v2593_v45, 0.0 }
 0xf42   :  { %v2594_v27 = vpop.f32.mrf.mxu2 }
 0xf43   :  { %v2595_v14 = vadd.f32 %v3409_v44, %v2594_v27 }
 0xf45   :  { %v2602_v48 = vmax.f32 %v2595_v14, 0.0 }
 0xf47   :  { %v2604_v49 = vpack.c.bf16 %v2602_v48, %v2601_v47 }
 0xf49   :  { %3277 = vmatmul.msk.bf16.vlgmr.msra.gmra.mxu0 %vm1335_vm11, %v2604_v49 }
 0xf4a   :  { %v2597_v17 = vpop.f32.mrf.mxu2 }
 0xf4b   :  { %v2598_v50 = vadd.f32 %v3409_v44, %v2597_v17 }
 0xf4d   :  { %v2603_v59 = vmax.f32 %v2598_v50, 0.0 }
 0xf4f   :  { %v2605_v6 = vpack.c.bf16 %v2603_v59, %v2603_v59 }
 0xf52   :  { %v2599_v51 = vpop.f32.mrf.mxu2 }
 0xf59   :  { %3278 = vmatmul.msk.bf16.gmra.mxu0 %vm1335_vm11, %v2605_v6 }
 0xfc6   :  { %v2655_v31 = vpop.f32.mrf.mxu0 }
 0xfc7   :  { %v2656_v12 = vadd.f32 %v2655_v31, %v2615_v53 }
 0xfc9   :  { %v2664_v55 = vadd.f32 %v2656_v12, %v2550_v43 }
 0xfcb   :  { %v2667_v54 = vsel %vm152_vm1, %v2664_v55, 0.0 }
 0xfcc   :  { %2668 = vadd.xlane.f32.xlu1 %v2667_v54 }
 0xfce   :  { %v2657_v52 = vpop.f32.mrf.mxu0 }
 0xfcf   :  { %v2658_v56 = vadd.f32 %v2657_v52, %v2615_v53 }
 0xfd1   :  { %v2665_v57 = vadd.f32 %v2658_v56, %v2551_v25 }
 0xfd3   :  { %v2670_v8 = vsel %vm152_vm1, %v2665_v57, 0.0 }
 0xfd4   :  { %2671 = vadd.xlane.f32.xlu2 %v2670_v8 }
 0xfd6   :  { %v2660_v58 = vpop.f32.mrf.mxu0 }
 0xfd7   :  { %v2661_v9 = vadd.f32 %v2660_v58, %v2615_v53 }
 0xfd9   :  { %v2666_v60 = vadd.f32 %v2661_v9, %v2552_v36 }
 0xfdb   :  { %v2673_v61 = vsel %vm152_vm1, %v2666_v60, 0.0 }
 0xfdc   :  { %2674 = vadd.xlane.f32.xlu0 %v2673_v61 }
 0xfde   :  { %v2662_v62 = vpop.f32.mrf.mxu0 }
0x103f   :  { %v2669_v63 = vpop.xlane.xlu1 %2668 }
0x1040   :  { %v2676_v5 = vmul.f32 %v2669_v63, %v3947_v24 }
0x1042   :  { %v2679_v35 = vsub.f32 %v2664_v55, %v2676_v5 }
0x1044   :  { %v2682_v4 = vmul.f32 %v2679_v35, %v2679_v35 }
0x1046   :  { %v2685_v10 = vsel %vm152_vm1, %v2682_v4, 0.0 }
0x1047   :  { %v2672_v39 = vpop.xlane.xlu2 %2671  ;;  %2686 = vadd.xlane.f32.xlu1 %v2685_v10 }
0x1048   :  { %v2677_v15 = vmul.f32 %v2672_v39, %v3947_v24 }
0x104a   :  { %v2680_v0 = vsub.f32 %v2665_v57, %v2677_v15 }
0x104c   :  { %v2683_v42 = vmul.f32 %v2680_v0, %v2680_v0 }
0x104e   :  { %v2688_v13 = vsel %vm152_vm1, %v2683_v42, 0.0 }
0x104f   :  { %v2675_v18 = vpop.xlane.xlu0 %2674  ;;  %2689 = vadd.xlane.f32.xlu2 %v2688_v13 }
0x1050   :  { %v2678_v16 = vmul.f32 %v2675_v18, %v3947_v24 }
0x1052   :  { %v2681_v26 = vsub.f32 %v2666_v60, %v2678_v16 }
0x1054   :  { %v2684_v11 = vmul.f32 %v2681_v26, %v2681_v26 }
0x1056   :  { %v2691_v1 = vsel %vm152_vm1, %v2684_v11, 0.0 }
0x1057   :  { %2692 = vadd.xlane.f32.xlu0 %v2691_v1 }
0x10ba   :  { %v2687_v20 = vpop.xlane.xlu1 %2686 }
0x10bb   :  { %v2694_v21 = vmul.f32 %v2687_v20, %v3947_v24 }
0x10bd   :  { %v2697_v2 = vadd.f32 1e-05, %v2694_v21 }
0x10bf   :  { %3526 = vrsqrt.f32 %v2697_v2  ;;  %vm2706_vm4 = vweird.f32 %v2697_v2 }
0x10c2   :  { %v2690_v46 = vpop.xlane.xlu2 %2689 }
0x10c3   :  { %v2695_v22 = vmul.f32 %v2690_v46, %v3947_v24 }
0x10c5   :  { %v3527_v43 = vpop.eup %3526  ;;  %v2698_v25 = vadd.f32 1e-05, %v2695_v22 }
0x10c6   :  { %v2701_v28 = vmul.f32 %v3527_v43, %v2697_v2  ;;  %vm2707_vm11 = vweird.f32 %v3527_v43 }
0x10c7   :  { %3528 = vrsqrt.f32 %v2698_v25  ;;  %vm2708_vm5 = vmor %vm2706_vm4, %vm2707_vm11  ;;  %vm2716_vm7 = vweird.f32 %v2698_v25 }
0x10c8   :  { %v2702_v29 = vmul.f32 %v3527_v43, %v2701_v28 }
0x10ca   :  { %v2703_v30 = vmul.f32 0.5, %v2702_v29  ;;  %v2693_v19 = vpop.xlane.xlu0 %2692 }
0x10cb   :  { %v2696_v32 = vmul.f32 %v2693_v19, %v3947_v24 }
0x10cc   :  { %v2704_v33 = vsub.f32 1.5, %v2703_v30 }
0x10cd   :  { %v3529_v34 = vpop.eup %3528  ;;  %v2699_v36 = vadd.f32 1e-05, %v2696_v32 }
0x10ce   :  { %v2705_v23 = vmul.f32 %v3527_v43, %v2704_v33  ;;  %v2711_v37 = vmul.f32 %v3529_v34, %v2698_v25  ;;  %vm2717_vm6 = vweird.f32 %v3529_v34 }
0x10cf   :  { %3530 = vrsqrt.f32 %v2699_v36  ;;  %vm2718_vm8 = vmor %vm2716_vm7, %vm2717_vm6  ;;  %vm2726_vm2 = vweird.f32 %v2699_v36 }
0x10d0   :  { %v2709_v40 = vsel %vm2708_vm5, %v3527_v43, %v2705_v23  ;;  %v2712_v7 = vmul.f32 %v3529_v34, %v2711_v37 }
0x10d1   :  { %v2730_v44 = vmul.f32 %v2709_v40, %v2679_v35 }
0x10d2   :  { %v2713_v45 = vmul.f32 0.5, %v2712_v7 }
0x10d3   :  { %v2734_v27 = vmul.f32 %v2733_v38, %v2730_v44 }
0x10d4   :  { %v2714_v14 = vsub.f32 1.5, %v2713_v45 }
0x10d5   :  { %v3531_v24 = vpop.eup %3530  ;;  %v2738_v47 = vadd.f32 %v2737_v41, %v2734_v27 }
0x10d6   :  { %v2715_v48 = vmul.f32 %v3529_v34, %v2714_v14  ;;  %v2721_v49 = vmul.f32 %v3531_v24, %v2699_v36  ;;  %vm2727_vm0 = vweird.f32 %v3531_v24 }
0x10d7   :  { %2741 = vst.msk [vmem:[%s4453_s10] sm:$0xff] %vm152_vm1, %v2738_v47  ;;  %vm2728_vm12 = vmor %vm2726_vm2, %vm2727_vm0 }
0x10d8   :  { %v2719_v17 = vsel %vm2718_vm8, %v3529_v34, %v2715_v48  ;;  %v2722_v50 = vmul.f32 %v3531_v24, %v2721_v49 }
0x10d9   :  { %v2731_v51 = vmul.f32 %v2719_v17, %v2680_v0 }
0x10da   :  { %v2723_v3 = vmul.f32 0.5, %v2722_v50 }
0x10db   :  { %v2735_v59 = vmul.f32 %v2733_v38, %v2731_v51 }
0x10dc   :  { %v2724_v6 = vsub.f32 1.5, %v2723_v3 }
0x10dd   :  { %v2739_v53 = vadd.f32 %v2737_v41, %v2735_v59 }
0x10de   :  { %v2725_v31 = vmul.f32 %v3531_v24, %v2724_v6 }
0x10df   :  { %2742 = vst.msk [vmem:[%s4453_s10 + $0x8] sm:$0xff] %vm152_vm1, %v2739_v53 }
0x10e0   :  { %v2729_v12 = vsel %vm2728_vm12, %v3531_v24, %v2725_v31 }
0x10e1   :  { %v2732_v55 = vmul.f32 %v2729_v12, %v2681_v26 }
0x10e3   :  { %v2736_v54 = vmul.f32 %v2733_v38, %v2732_v55 }
0x10e5   :  { %v2740_v52 = vadd.f32 %v2737_v41, %v2736_v54 }
0x10e7   :  { %2743 = vst.msk [vmem:[%s4453_s10 + $0x10] sm:$0xff] %vm152_vm1, %v2740_v52 }

</bundles_post_ra>
